<compile_context>
chip_gen: v5e
topology: v5e:2x2
jax: 0.10.0
libtpu: 0.0.40
codegen_flags: <defaults>
</compile_context>

<pallas_src>
import functools
import math

import jax
import jax.numpy as jnp
from jax.experimental import pallas as pl
from jax.experimental.pallas import tpu as pltpu

_EPS = 1e-6
_NEG = -1e9
_VMEM_LIMIT = 32 * 1024 * 1024  # safe on v5e/v6e/v7x at these tile sizes


# ----------------------------- in-kernel helpers ----------------------------

def _layer_norm(x, a, b, eps):
    # torch: mean/std over last dim; std is the unbiased estimator (ddof=1); eps on std.
    d = x.shape[-1]
    mean = jnp.mean(x, axis=-1, keepdims=True)
    xc = x - mean
    var = jnp.sum(xc * xc, axis=-1, keepdims=True) * (1.0 / (d - 1))
    return a * xc / (jnp.sqrt(var) + eps) + b       # exact reciprocal for LN parity


def _mha_core(q, k, v, mask_add, wo, bo, h):
    """Multi-head attention core + output projection.

    q: (T, D) f32, k/v: (S, D) f32, mask_add: (Tm, S) f32 additive (0 or -1e9),
    wo: (D, D) bf16, bo: (1, D) f32.  Returns (T, D) f32.
    """
    t, d = q.shape
    s = k.shape[0]
    dk = d // h
    scale = 1.0 / math.sqrt(dk)

    # Head-batched layout (h, T/S, dk): batched MXU contractions, no per-head lane slices.
    qh = (q * scale).astype(jnp.bfloat16).reshape(t, h, dk).transpose(1, 0, 2)  # (h,T,dk)
    kh = k.astype(jnp.bfloat16).reshape(s, h, dk).transpose(1, 0, 2)            # (h,S,dk)
    vh = v.astype(jnp.bfloat16).reshape(s, h, dk).transpose(1, 0, 2)            # (h,S,dk)

    # Scores: bf16 x bf16 -> f32 accumulation on the MXU.
    sc = jnp.einsum('htd,hsd->hts', qh, kh,
                    preferred_element_type=jnp.float32)                          # (h,T,S)
    sc = sc + mask_add                                                           # additive mask
    sc = sc - jnp.max(sc, axis=-1, keepdims=True)
    p = jnp.exp(sc)
    p = p * pl.reciprocal(jnp.sum(p, axis=-1, keepdims=True), approx=True)

    o = jnp.einsum('hts,hsd->htd', p.astype(jnp.bfloat16), vh,
                   preferred_element_type=jnp.float32)                           # (h,T,dk)
    o = o.transpose(1, 0, 2).reshape(t, d)                                       # (T, D)

    # Single full-contraction output projection (K = D), bf16 operands.
    return jnp.dot(o.astype(jnp.bfloat16), wo,
                   preferred_element_type=jnp.float32) + bo


# ----------------------------- fused per-layer kernel -----------------------

def _decoder_layer_kernel(x_ref, mem_ref, tmask_ref, smask_ref,
                          ln0a_ref, ln0b_ref,
                          sa_wqkv_ref, sa_bqkv_ref, sa_wo_ref, sa_bo_ref,
                          ln1a_ref, ln1b_ref,
                          ca_wq_ref, ca_bq_ref, ca_wkv_ref, ca_bkv_ref,
                          ca_wo_ref, ca_bo_ref,
                          ln2a_ref, ln2b_ref,
                          ff_w1_ref, ff_b1_ref, ff_w2_ref, ff_b2_ref,
                          fin_a_ref, fin_b_ref,
                          o_ref, *, h, eps, apply_final):
    x = x_ref[0]                                        # (T, D) f32
    d = x.shape[-1]

    # ---- sublayer 0: self-attention (fused QKV projection) ----
    ln = _layer_norm(x, ln0a_ref[...], ln0b_ref[...], eps)
    ln_bf = ln.astype(jnp.bfloat16)
    qkv = jnp.dot(ln_bf, sa_wqkv_ref[...],
                  preferred_element_type=jnp.float32) + sa_bqkv_ref[...]         # (T, 3D)
    q, k, v = qkv[:, :d], qkv[:, d:2 * d], qkv[:, 2 * d:]
    x = x + _mha_core(q, k, v, tmask_ref[0], sa_wo_ref[...], sa_bo_ref[...], h)

    # ---- sublayer 1: cross-attention (fused KV projection on raw memory) ----
    ln = _layer_norm(x, ln1a_ref[...], ln1b_ref[...], eps)
    ln_bf = ln.astype(jnp.bfloat16)
    mem = mem_ref[0]                                    # (S, D) bf16
    q = jnp.dot(ln_bf, ca_wq_ref[...],
                preferred_element_type=jnp.float32) + ca_bq_ref[...]             # (T, D)
    kv = jnp.dot(mem, ca_wkv_ref[...],
                 preferred_element_type=jnp.float32) + ca_bkv_ref[...]           # (S, 2D)
    k, v = kv[:, :d], kv[:, d:]
    x = x + _mha_core(q, k, v, smask_ref[0], ca_wo_ref[...], ca_bo_ref[...], h)

    # ---- sublayer 2: position-wise FFN ----
    ln = _layer_norm(x, ln2a_ref[...], ln2b_ref[...], eps)
    hdn = jnp.dot(ln.astype(jnp.bfloat16), ff_w1_ref[...],
                  preferred_element_type=jnp.float32) + ff_b1_ref[...]
    hdn = jnp.maximum(hdn, 0.0)
    y = jnp.dot(hdn.astype(jnp.bfloat16), ff_w2_ref[...],
                preferred_element_type=jnp.float32) + ff_b2_ref[...]
    x = x + y

    # ---- final LayerNorm folded into the last layer's kernel ----
    if apply_final:
        x = _layer_norm(x, fin_a_ref[...], fin_b_ref[...], eps)

    o_ref[0] = x.astype(o_ref.dtype)


# ----------------------------- pallas_call wrapper --------------------------

def _const_spec(shape):
    return pl.BlockSpec(shape, lambda b: (0,) * len(shape))


def _mask_spec(mask, batch):
    # Batch-shared mask (leading dim 1) is DMA'd once; per-batch masks indexed per step.
    blk = (1,) + mask.shape[1:]
    if mask.shape[0] == batch and batch > 1:
        return pl.BlockSpec(blk, lambda b: (b, 0, 0))
    return pl.BlockSpec(blk, lambda b: (0, 0, 0))


def decoder_layer_fused(x, memory_bf16, tgt_mask_add, src_mask_add, p, final_a, final_b,
                        h, apply_final, eps=_EPS):
    B, T, D = x.shape
    S = memory_bf16.shape[1]
    Dff = p["ff_w1"].shape[1]
    sa, ca = p["self_attn"], p["src_attn"]

    kernel = functools.partial(_decoder_layer_kernel, h=h, eps=eps,
                               apply_final=apply_final)
    return pl.pallas_call(
        kernel,
        out_shape=jax.ShapeDtypeStruct((B, T, D), x.dtype),
        grid=(B,),
        in_specs=[
            pl.BlockSpec((1, T, D), lambda b: (b, 0, 0)),     # x
            pl.BlockSpec((1, S, D), lambda b: (b, 0, 0)),     # memory (bf16)
            _mask_spec(tgt_mask_add, B),                      # additive tgt mask
            _mask_spec(src_mask_add, B),                      # additive src mask
            _const_spec((1, D)), _const_spec((1, D)),                         # LN0
            _const_spec((D, 3 * D)), _const_spec((1, 3 * D)),                 # self QKV
            _const_spec((D, D)), _const_spec((1, D)),                         # self out
            _const_spec((1, D)), _const_spec((1, D)),                         # LN1
            _const_spec((D, D)), _const_spec((1, D)),                         # cross Q
            _const_spec((D, 2 * D)), _const_spec((1, 2 * D)),                 # cross KV
            _const_spec((D, D)), _const_spec((1, D)),                         # cross out
            _const_spec((1, D)), _const_spec((1, D)),                         # LN2
            _const_spec((D, Dff)), _const_spec((1, Dff)),                     # FFN W1
            _const_spec((Dff, D)), _const_spec((1, D)),                       # FFN W2
            _const_spec((1, D)), _const_spec((1, D)),                         # final LN
        ],
        out_specs=pl.BlockSpec((1, T, D), lambda b: (b, 0, 0)),
        compiler_params=pltpu.CompilerParams(
            dimension_semantics=("parallel",), vmem_limit_bytes=_VMEM_LIMIT),
    )(x, memory_bf16, tgt_mask_add, src_mask_add,
      p["ln0_a"], p["ln0_b"],
      sa["wqkv"], sa["bqkv"], sa["wo"], sa["bo"],
      p["ln1_a"], p["ln1_b"],
      ca["wq"], ca["bq"], ca["wkv"], ca["bkv"], ca["wo"], ca["bo"],
      p["ln2_a"], p["ln2_b"],
      p["ff_w1"], p["ff_b1"], p["ff_w2"], p["ff_b2"],
      final_a, final_b)


# ----------------------------- model glue (plain JAX) -----------------------

def decoder_forward(params, x, memory, src_mask, tgt_mask, h):
    # Hoisted, one-time wrapper work: additive masks and bf16 memory.
    tgt_add = jnp.where(tgt_mask == 0, _NEG, 0.0).astype(jnp.float32)
    src_add = jnp.where(src_mask == 0, _NEG, 0.0).astype(jnp.float32)
    mem_bf = memory.astype(jnp.bfloat16)

    n = len(params["layers"])
    for i, layer_p in enumerate(params["layers"]):
        x = decoder_layer_fused(x, mem_bf, tgt_add, src_add, layer_p,
                                params["norm_a"], params["norm_b"], h,
                                apply_final=(i == n - 1))
    return x


# ----------------------------- deterministic init ---------------------------

def init_params(key, d_model, d_ff, h, N):
    def lin(k, din, dout):
        kw, kb = jax.random.split(k)
        w = jax.random.normal(kw, (din, dout), jnp.float32) / math.sqrt(din)
        b = jax.random.normal(kb, (1, dout), jnp.float32) * 0.02
        return w, b

    keys = jax.random.split(key, 10)

    def self_attn_params(ks):
        wq, bq = lin(ks[0], d_model, d_model)
        wk, bk = lin(ks[1], d_model, d_model)
        wv, bv = lin(ks[2], d_model, d_model)
        wo, bo = lin(ks[3], d_model, d_model)
        return dict(
            wqkv=jnp.concatenate([wq, wk, wv], axis=1).astype(jnp.bfloat16),
            bqkv=jnp.concatenate([bq, bk, bv], axis=1),
            wo=wo.astype(jnp.bfloat16), bo=bo)

    def cross_attn_params(ks):
        wq, bq = lin(ks[0], d_model, d_model)
        wk, bk = lin(ks[1], d_model, d_model)
        wv, bv = lin(ks[2], d_model, d_model)
        wo, bo = lin(ks[3], d_model, d_model)
        return dict(
            wq=wq.astype(jnp.bfloat16), bq=bq,
            wkv=jnp.concatenate([wk, wv], axis=1).astype(jnp.bfloat16),
            bkv=jnp.concatenate([bk, bv], axis=1),
            wo=wo.astype(jnp.bfloat16), bo=bo)

    self_attn = self_attn_params(keys[0:4])
    src_attn = cross_attn_params(keys[4:8])
    w1, b1 = lin(keys[8], d_model, d_ff)
    w2, b2 = lin(keys[9], d_ff, d_model)
    ones = jnp.ones((1, d_model), jnp.float32)
    zeros = jnp.zeros((1, d_model), jnp.float32)
    layer_p = dict(self_attn=self_attn, src_attn=src_attn,
                   ff_w1=w1.astype(jnp.bfloat16), ff_b1=b1,
                   ff_w2=w2.astype(jnp.bfloat16), ff_b2=b2,
                   ln0_a=ones, ln0_b=zeros, ln1_a=ones, ln1_b=zeros,
                   ln2_a=ones, ln2_b=zeros)
    # clones() deep-copies the prototype, so all N layers start with identical weights.
    layers = [layer_p for _ in range(N)]
    return dict(layers=layers, norm_a=ones, norm_b=zeros)


if __name__ == "__main__":
    B, T, S, D, H, Dff, N = 2, 8, 8, 32, 4, 64, 2
    key = jax.random.PRNGKey(0)
    kx, km, kp = jax.random.split(key, 3)
    x = jax.random.normal(kx, (B, T, D), jnp.float32)
    memory = jax.random.normal(km, (B, S, D), jnp.float32)
    tgt_mask = jnp.tril(jnp.ones((T, T), jnp.int32))[None, :, :]   # (1, T, T) causal
    src_mask = jnp.ones((1, 1, S), jnp.int32)                      # (1, 1, S) no padding
    params = init_params(kp, D, Dff, H, N)

    fwd = jax.jit(functools.partial(decoder_forward, h=H))
    out = fwd(params, x, memory, src_mask, tgt_mask)
    out = jax.block_until_ready(out)
    assert out.shape == (B, T, D) and out.dtype == jnp.float32
    assert bool(jnp.all(jnp.isfinite(out)))
    print("KERNEL_OK")
</pallas_src>

<mosaic_0001>
module attributes {stable_mosaic.version = 11 : i64} {
  func.func @_decoder_layer_kernel(%arg0: i32, %arg1: memref<1x8x32xf32, #tpu.memory_space<vmem>>, %arg2: memref<1x8x32xbf16, #tpu.memory_space<vmem>>, %arg3: memref<1x8x8xf32, #tpu.memory_space<vmem>>, %arg4: memref<1x1x8xf32, #tpu.memory_space<vmem>>, %arg5: memref<1x32xf32, #tpu.memory_space<vmem>>, %arg6: memref<1x32xf32, #tpu.memory_space<vmem>>, %arg7: memref<32x96xbf16, #tpu.memory_space<vmem>>, %arg8: memref<1x96xf32, #tpu.memory_space<vmem>>, %arg9: memref<32x32xbf16, #tpu.memory_space<vmem>>, %arg10: memref<1x32xf32, #tpu.memory_space<vmem>>, %arg11: memref<1x32xf32, #tpu.memory_space<vmem>>, %arg12: memref<1x32xf32, #tpu.memory_space<vmem>>, %arg13: memref<32x32xbf16, #tpu.memory_space<vmem>>, %arg14: memref<1x32xf32, #tpu.memory_space<vmem>>, %arg15: memref<32x64xbf16, #tpu.memory_space<vmem>>, %arg16: memref<1x64xf32, #tpu.memory_space<vmem>>, %arg17: memref<32x32xbf16, #tpu.memory_space<vmem>>, %arg18: memref<1x32xf32, #tpu.memory_space<vmem>>, %arg19: memref<1x32xf32, #tpu.memory_space<vmem>>, %arg20: memref<1x32xf32, #tpu.memory_space<vmem>>, %arg21: memref<32x64xbf16, #tpu.memory_space<vmem>>, %arg22: memref<1x64xf32, #tpu.memory_space<vmem>>, %arg23: memref<64x32xbf16, #tpu.memory_space<vmem>>, %arg24: memref<1x32xf32, #tpu.memory_space<vmem>>, %arg25: memref<1x32xf32, #tpu.memory_space<vmem>>, %arg26: memref<1x32xf32, #tpu.memory_space<vmem>>, %arg27: memref<1x8x32xf32, #tpu.memory_space<vmem>>) attributes {dimension_semantics = [#tpu.dimension_semantics<parallel>], iteration_bounds = array<i64: 2>, scalar_prefetch = 0 : i64, scratch_operands = 0 : i64, tpu.core_type = #tpu.core_type<tc>, window_params = [{transform_indices = @transform_0, window_bounds = array<i64: 1, 8, 32>}, {transform_indices = @transform_1, window_bounds = array<i64: 1, 8, 32>}, {pipeline_mode = #tpu.pipeline_mode<synchronous>, transform_indices = @transform_2, window_bounds = array<i64: 1, 8, 8>}, {pipeline_mode = #tpu.pipeline_mode<synchronous>, transform_indices = @transform_3, window_bounds = array<i64: 1, 1, 8>}, {pipeline_mode = #tpu.pipeline_mode<synchronous>, transform_indices = @transform_4, window_bounds = array<i64: 1, 32>}, {pipeline_mode = #tpu.pipeline_mode<synchronous>, transform_indices = @transform_5, window_bounds = array<i64: 1, 32>}, {pipeline_mode = #tpu.pipeline_mode<synchronous>, transform_indices = @transform_6, window_bounds = array<i64: 32, 96>}, {pipeline_mode = #tpu.pipeline_mode<synchronous>, transform_indices = @transform_7, window_bounds = array<i64: 1, 96>}, {pipeline_mode = #tpu.pipeline_mode<synchronous>, transform_indices = @transform_8, window_bounds = array<i64: 32, 32>}, {pipeline_mode = #tpu.pipeline_mode<synchronous>, transform_indices = @transform_9, window_bounds = array<i64: 1, 32>}, {pipeline_mode = #tpu.pipeline_mode<synchronous>, transform_indices = @transform_10, window_bounds = array<i64: 1, 32>}, {pipeline_mode = #tpu.pipeline_mode<synchronous>, transform_indices = @transform_11, window_bounds = array<i64: 1, 32>}, {pipeline_mode = #tpu.pipeline_mode<synchronous>, transform_indices = @transform_12, window_bounds = array<i64: 32, 32>}, {pipeline_mode = #tpu.pipeline_mode<synchronous>, transform_indices = @transform_13, window_bounds = array<i64: 1, 32>}, {pipeline_mode = #tpu.pipeline_mode<synchronous>, transform_indices = @transform_14, window_bounds = array<i64: 32, 64>}, {pipeline_mode = #tpu.pipeline_mode<synchronous>, transform_indices = @transform_15, window_bounds = array<i64: 1, 64>}, {pipeline_mode = #tpu.pipeline_mode<synchronous>, transform_indices = @transform_16, window_bounds = array<i64: 32, 32>}, {pipeline_mode = #tpu.pipeline_mode<synchronous>, transform_indices = @transform_17, window_bounds = array<i64: 1, 32>}, {pipeline_mode = #tpu.pipeline_mode<synchronous>, transform_indices = @transform_18, window_bounds = array<i64: 1, 32>}, {pipeline_mode = #tpu.pipeline_mode<synchronous>, transform_indices = @transform_19, window_bounds = array<i64: 1, 32>}, {pipeline_mode = #tpu.pipeline_mode<synchronous>, transform_indices = @transform_20, window_bounds = array<i64: 32, 64>}, {pipeline_mode = #tpu.pipeline_mode<synchronous>, transform_indices = @transform_21, window_bounds = array<i64: 1, 64>}, {pipeline_mode = #tpu.pipeline_mode<synchronous>, transform_indices = @transform_22, window_bounds = array<i64: 64, 32>}, {pipeline_mode = #tpu.pipeline_mode<synchronous>, transform_indices = @transform_23, window_bounds = array<i64: 1, 32>}, {pipeline_mode = #tpu.pipeline_mode<synchronous>, transform_indices = @transform_24, window_bounds = array<i64: 1, 32>}, {pipeline_mode = #tpu.pipeline_mode<synchronous>, transform_indices = @transform_25, window_bounds = array<i64: 1, 32>}, {transform_indices = @transform_26, window_bounds = array<i64: 1, 8, 32>}]} {
    %c0 = arith.constant 0 : index
    %c0_0 = arith.constant 0 : index
    %c0_1 = arith.constant 0 : index
    %0 = vector.load %arg1[%c0, %c0_0, %c0_1] : memref<1x8x32xf32, #tpu.memory_space<vmem>>, vector<1x8x32xf32>
    %1 = vector.shape_cast %0 : vector<1x8x32xf32> to vector<8x32xf32>
    %c0_2 = arith.constant 0 : index
    %c0_3 = arith.constant 0 : index
    %2 = vector.load %arg5[%c0_2, %c0_3] : memref<1x32xf32, #tpu.memory_space<vmem>>, vector<1x32xf32>
    %c0_4 = arith.constant 0 : index
    %c0_5 = arith.constant 0 : index
    %3 = vector.load %arg6[%c0_4, %c0_5] : memref<1x32xf32, #tpu.memory_space<vmem>>, vector<1x32xf32>
    %cst = arith.constant dense<0.000000e+00> : vector<8xf32>
    %4 = vector.multi_reduction <add>, %1, %cst [1] : vector<8x32xf32> to vector<8xf32>
    %5 = vector.shape_cast %4 : vector<8xf32> to vector<8x1xf32>
    %cst_6 = arith.constant 3.200000e+01 : f32
    %6 = vector.broadcast %cst_6 : f32 to vector<8x1xf32>
    %7 = arith.divf %5, %6 : vector<8x1xf32>
    %8 = vector.broadcast %7 : vector<8x1xf32> to vector<8x32xf32>
    %9 = arith.subf %1, %8 : vector<8x32xf32>
    %10 = arith.mulf %9, %9 : vector<8x32xf32>
    %cst_7 = arith.constant dense<0.000000e+00> : vector<8xf32>
    %11 = vector.multi_reduction <add>, %10, %cst_7 [1] : vector<8x32xf32> to vector<8xf32>
    %12 = vector.shape_cast %11 : vector<8xf32> to vector<8x1xf32>
    %cst_8 = arith.constant 0.0322580636 : f32
    %13 = vector.broadcast %cst_8 : f32 to vector<8x1xf32>
    %14 = arith.mulf %12, %13 : vector<8x1xf32>
    %15 = vector.broadcast %2 : vector<1x32xf32> to vector<8x32xf32>
    %16 = arith.mulf %15, %9 : vector<8x32xf32>
    %17 = math.sqrt %14 : vector<8x1xf32>
    %cst_9 = arith.constant 9.99999997E-7 : f32
    %18 = vector.broadcast %cst_9 : f32 to vector<8x1xf32>
    %19 = arith.addf %17, %18 : vector<8x1xf32>
    %20 = vector.broadcast %19 : vector<8x1xf32> to vector<8x32xf32>
    %21 = arith.divf %16, %20 : vector<8x32xf32>
    %22 = vector.broadcast %3 : vector<1x32xf32> to vector<8x32xf32>
    %23 = arith.addf %21, %22 : vector<8x32xf32>
    %24 = arith.truncf %23 : vector<8x32xf32> to vector<8x32xbf16>
    %c0_10 = arith.constant 0 : index
    %c0_11 = arith.constant 0 : index
    %25 = vector.load %arg7[%c0_10, %c0_11] : memref<32x96xbf16, #tpu.memory_space<vmem>>, vector<32x96xbf16>
    %cst_12 = arith.constant dense<0.000000e+00> : vector<8x96xf32>
    %26 = tpu.matmul %24, %25, %cst_12 {dimension_numbers = #tpu.dot_dimension_numbers<[1], [0], [0], [1], [0, 0, 1, 1], [], []>} : vector<8x32xbf16>, vector<32x96xbf16>, vector<8x96xf32> -> vector<8x96xf32>
    %c0_13 = arith.constant 0 : index
    %c0_14 = arith.constant 0 : index
    %27 = vector.load %arg8[%c0_13, %c0_14] : memref<1x96xf32, #tpu.memory_space<vmem>>, vector<1x96xf32>
    %28 = vector.broadcast %27 : vector<1x96xf32> to vector<8x96xf32>
    %29 = arith.addf %26, %28 : vector<8x96xf32>
    %30 = vector.extract_strided_slice %29 {offsets = [0, 0], sizes = [8, 32], strides = [1, 1]} : vector<8x96xf32> to vector<8x32xf32>
    %31 = vector.extract_strided_slice %29 {offsets = [0, 32], sizes = [8, 32], strides = [1, 1]} : vector<8x96xf32> to vector<8x32xf32>
    %32 = vector.extract_strided_slice %29 {offsets = [0, 64], sizes = [8, 32], strides = [1, 1]} : vector<8x96xf32> to vector<8x32xf32>
    %c0_15 = arith.constant 0 : index
    %c0_16 = arith.constant 0 : index
    %c0_17 = arith.constant 0 : index
    %33 = vector.load %arg3[%c0_15, %c0_16, %c0_17] : memref<1x8x8xf32, #tpu.memory_space<vmem>>, vector<1x8x8xf32>
    %34 = vector.shape_cast %33 : vector<1x8x8xf32> to vector<8x8xf32>
    %c0_18 = arith.constant 0 : index
    %c0_19 = arith.constant 0 : index
    %35 = vector.load %arg9[%c0_18, %c0_19] : memref<32x32xbf16, #tpu.memory_space<vmem>>, vector<32x32xbf16>
    %c0_20 = arith.constant 0 : index
    %c0_21 = arith.constant 0 : index
    %36 = vector.load %arg10[%c0_20, %c0_21] : memref<1x32xf32, #tpu.memory_space<vmem>>, vector<1x32xf32>
    %cst_22 = arith.constant 0.353553385 : f32
    %37 = vector.broadcast %cst_22 : f32 to vector<8x32xf32>
    %38 = arith.mulf %30, %37 : vector<8x32xf32>
    %39 = arith.truncf %38 : vector<8x32xf32> to vector<8x32xbf16>
    %40 = vector.shape_cast %39 : vector<8x32xbf16> to vector<8x4x8xbf16>
    %41 = tpu.transpose %40, [1, 0, 2] : vector<8x4x8xbf16> -> vector<4x8x8xbf16>
    %42 = arith.truncf %31 : vector<8x32xf32> to vector<8x32xbf16>
    %43 = vector.shape_cast %42 : vector<8x32xbf16> to vector<8x4x8xbf16>
    %44 = tpu.transpose %43, [1, 0, 2] : vector<8x4x8xbf16> -> vector<4x8x8xbf16>
    %45 = arith.truncf %32 : vector<8x32xf32> to vector<8x32xbf16>
    %46 = vector.shape_cast %45 : vector<8x32xbf16> to vector<8x4x8xbf16>
    %47 = tpu.transpose %46, [1, 0, 2] : vector<8x4x8xbf16> -> vector<4x8x8xbf16>
    "tpu.trace_start"() <{level = 10 : i32, message = "htd,hsd->hts"}> : () -> ()
    %cst_23 = arith.constant dense<0.000000e+00> : vector<4x8x8xf32>
    %48 = tpu.matmul %41, %44, %cst_23 {dimension_numbers = #tpu.dot_dimension_numbers<[2], [2], [1], [1], [0, 0, 0, 1, 1, 1], [0], [0]>} : vector<4x8x8xbf16>, vector<4x8x8xbf16>, vector<4x8x8xf32> -> vector<4x8x8xf32>
    "tpu.trace_stop"() : () -> ()
    %49 = vector.shape_cast %34 : vector<8x8xf32> to vector<1x8x8xf32>
    %50 = vector.broadcast %49 : vector<1x8x8xf32> to vector<4x8x8xf32>
    %51 = arith.addf %48, %50 : vector<4x8x8xf32>
    %cst_24 = arith.constant dense<0xFF800000> : vector<4x8xf32>
    %52 = vector.multi_reduction <maximumf>, %51, %cst_24 [2] : vector<4x8x8xf32> to vector<4x8xf32>
    %53 = vector.shape_cast %52 : vector<4x8xf32> to vector<4x8x1xf32>
    %54 = vector.broadcast %53 : vector<4x8x1xf32> to vector<4x8x8xf32>
    %55 = arith.subf %51, %54 : vector<4x8x8xf32>
    %56 = math.exp %55 : vector<4x8x8xf32>
    %cst_25 = arith.constant dense<0.000000e+00> : vector<4x8xf32>
    %57 = vector.multi_reduction <add>, %56, %cst_25 [2] : vector<4x8x8xf32> to vector<4x8xf32>
    %58 = vector.shape_cast %57 : vector<4x8xf32> to vector<4x8x1xf32>
    %59 = tpu.reciprocal %58 {approx = true} : vector<4x8x1xf32> -> vector<4x8x1xf32>
    %60 = vector.broadcast %59 : vector<4x8x1xf32> to vector<4x8x8xf32>
    %61 = arith.mulf %56, %60 : vector<4x8x8xf32>
    %62 = arith.truncf %61 : vector<4x8x8xf32> to vector<4x8x8xbf16>
    "tpu.trace_start"() <{level = 10 : i32, message = "hts,hsd->htd"}> : () -> ()
    %cst_26 = arith.constant dense<0.000000e+00> : vector<4x8x8xf32>
    %63 = tpu.matmul %62, %47, %cst_26 {dimension_numbers = #tpu.dot_dimension_numbers<[2], [1], [1], [2], [0, 0, 0, 1, 1, 2], [0], [0]>} : vector<4x8x8xbf16>, vector<4x8x8xbf16>, vector<4x8x8xf32> -> vector<4x8x8xf32>
    "tpu.trace_stop"() : () -> ()
    %64 = tpu.transpose %63, [1, 0, 2] : vector<4x8x8xf32> -> vector<8x4x8xf32>
    %65 = vector.shape_cast %64 : vector<8x4x8xf32> to vector<8x32xf32>
    %66 = arith.truncf %65 : vector<8x32xf32> to vector<8x32xbf16>
    %cst_27 = arith.constant dense<0.000000e+00> : vector<8x32xf32>
    %67 = tpu.matmul %66, %35, %cst_27 {dimension_numbers = #tpu.dot_dimension_numbers<[1], [0], [0], [1], [0, 0, 1, 1], [], []>} : vector<8x32xbf16>, vector<32x32xbf16>, vector<8x32xf32> -> vector<8x32xf32>
    %68 = vector.broadcast %36 : vector<1x32xf32> to vector<8x32xf32>
    %69 = arith.addf %67, %68 : vector<8x32xf32>
    %70 = arith.addf %1, %69 : vector<8x32xf32>
    %c0_28 = arith.constant 0 : index
    %c0_29 = arith.constant 0 : index
    %71 = vector.load %arg11[%c0_28, %c0_29] : memref<1x32xf32, #tpu.memory_space<vmem>>, vector<1x32xf32>
    %c0_30 = arith.constant 0 : index
    %c0_31 = arith.constant 0 : index
    %72 = vector.load %arg12[%c0_30, %c0_31] : memref<1x32xf32, #tpu.memory_space<vmem>>, vector<1x32xf32>
    %cst_32 = arith.constant dense<0.000000e+00> : vector<8xf32>
    %73 = vector.multi_reduction <add>, %70, %cst_32 [1] : vector<8x32xf32> to vector<8xf32>
    %74 = vector.shape_cast %73 : vector<8xf32> to vector<8x1xf32>
    %cst_33 = arith.constant 3.200000e+01 : f32
    %75 = vector.broadcast %cst_33 : f32 to vector<8x1xf32>
    %76 = arith.divf %74, %75 : vector<8x1xf32>
    %77 = vector.broadcast %76 : vector<8x1xf32> to vector<8x32xf32>
    %78 = arith.subf %70, %77 : vector<8x32xf32>
    %79 = arith.mulf %78, %78 : vector<8x32xf32>
    %cst_34 = arith.constant dense<0.000000e+00> : vector<8xf32>
    %80 = vector.multi_reduction <add>, %79, %cst_34 [1] : vector<8x32xf32> to vector<8xf32>
    %81 = vector.shape_cast %80 : vector<8xf32> to vector<8x1xf32>
    %cst_35 = arith.constant 0.0322580636 : f32
    %82 = vector.broadcast %cst_35 : f32 to vector<8x1xf32>
    %83 = arith.mulf %81, %82 : vector<8x1xf32>
    %84 = vector.broadcast %71 : vector<1x32xf32> to vector<8x32xf32>
    %85 = arith.mulf %84, %78 : vector<8x32xf32>
    %86 = math.sqrt %83 : vector<8x1xf32>
    %cst_36 = arith.constant 9.99999997E-7 : f32
    %87 = vector.broadcast %cst_36 : f32 to vector<8x1xf32>
    %88 = arith.addf %86, %87 : vector<8x1xf32>
    %89 = vector.broadcast %88 : vector<8x1xf32> to vector<8x32xf32>
    %90 = arith.divf %85, %89 : vector<8x32xf32>
    %91 = vector.broadcast %72 : vector<1x32xf32> to vector<8x32xf32>
    %92 = arith.addf %90, %91 : vector<8x32xf32>
    %93 = arith.truncf %92 : vector<8x32xf32> to vector<8x32xbf16>
    %c0_37 = arith.constant 0 : index
    %c0_38 = arith.constant 0 : index
    %c0_39 = arith.constant 0 : index
    %94 = vector.load %arg2[%c0_37, %c0_38, %c0_39] : memref<1x8x32xbf16, #tpu.memory_space<vmem>>, vector<1x8x32xbf16>
    %95 = vector.shape_cast %94 : vector<1x8x32xbf16> to vector<8x32xbf16>
    %c0_40 = arith.constant 0 : index
    %c0_41 = arith.constant 0 : index
    %96 = vector.load %arg13[%c0_40, %c0_41] : memref<32x32xbf16, #tpu.memory_space<vmem>>, vector<32x32xbf16>
    %cst_42 = arith.constant dense<0.000000e+00> : vector<8x32xf32>
    %97 = tpu.matmul %93, %96, %cst_42 {dimension_numbers = #tpu.dot_dimension_numbers<[1], [0], [0], [1], [0, 0, 1, 1], [], []>} : vector<8x32xbf16>, vector<32x32xbf16>, vector<8x32xf32> -> vector<8x32xf32>
    %c0_43 = arith.constant 0 : index
    %c0_44 = arith.constant 0 : index
    %98 = vector.load %arg14[%c0_43, %c0_44] : memref<1x32xf32, #tpu.memory_space<vmem>>, vector<1x32xf32>
    %99 = vector.broadcast %98 : vector<1x32xf32> to vector<8x32xf32>
    %100 = arith.addf %97, %99 : vector<8x32xf32>
    %c0_45 = arith.constant 0 : index
    %c0_46 = arith.constant 0 : index
    %101 = vector.load %arg15[%c0_45, %c0_46] : memref<32x64xbf16, #tpu.memory_space<vmem>>, vector<32x64xbf16>
    %cst_47 = arith.constant dense<0.000000e+00> : vector<8x64xf32>
    %102 = tpu.matmul %95, %101, %cst_47 {dimension_numbers = #tpu.dot_dimension_numbers<[1], [0], [0], [1], [0, 0, 1, 1], [], []>} : vector<8x32xbf16>, vector<32x64xbf16>, vector<8x64xf32> -> vector<8x64xf32>
    %c0_48 = arith.constant 0 : index
    %c0_49 = arith.constant 0 : index
    %103 = vector.load %arg16[%c0_48, %c0_49] : memref<1x64xf32, #tpu.memory_space<vmem>>, vector<1x64xf32>
    %104 = vector.broadcast %103 : vector<1x64xf32> to vector<8x64xf32>
    %105 = arith.addf %102, %104 : vector<8x64xf32>
    %106 = vector.extract_strided_slice %105 {offsets = [0, 0], sizes = [8, 32], strides = [1, 1]} : vector<8x64xf32> to vector<8x32xf32>
    %107 = vector.extract_strided_slice %105 {offsets = [0, 32], sizes = [8, 32], strides = [1, 1]} : vector<8x64xf32> to vector<8x32xf32>
    %c0_50 = arith.constant 0 : index
    %c0_51 = arith.constant 0 : index
    %c0_52 = arith.constant 0 : index
    %108 = vector.load %arg4[%c0_50, %c0_51, %c0_52] : memref<1x1x8xf32, #tpu.memory_space<vmem>>, vector<1x1x8xf32>
    %109 = vector.shape_cast %108 : vector<1x1x8xf32> to vector<1x8xf32>
    %c0_53 = arith.constant 0 : index
    %c0_54 = arith.constant 0 : index
    %110 = vector.load %arg17[%c0_53, %c0_54] : memref<32x32xbf16, #tpu.memory_space<vmem>>, vector<32x32xbf16>
    %c0_55 = arith.constant 0 : index
    %c0_56 = arith.constant 0 : index
    %111 = vector.load %arg18[%c0_55, %c0_56] : memref<1x32xf32, #tpu.memory_space<vmem>>, vector<1x32xf32>
    %cst_57 = arith.constant 0.353553385 : f32
    %112 = vector.broadcast %cst_57 : f32 to vector<8x32xf32>
    %113 = arith.mulf %100, %112 : vector<8x32xf32>
    %114 = arith.truncf %113 : vector<8x32xf32> to vector<8x32xbf16>
    %115 = vector.shape_cast %114 : vector<8x32xbf16> to vector<8x4x8xbf16>
    %116 = tpu.transpose %115, [1, 0, 2] : vector<8x4x8xbf16> -> vector<4x8x8xbf16>
    %117 = arith.truncf %106 : vector<8x32xf32> to vector<8x32xbf16>
    %118 = vector.shape_cast %117 : vector<8x32xbf16> to vector<8x4x8xbf16>
    %119 = tpu.transpose %118, [1, 0, 2] : vector<8x4x8xbf16> -> vector<4x8x8xbf16>
    %120 = arith.truncf %107 : vector<8x32xf32> to vector<8x32xbf16>
    %121 = vector.shape_cast %120 : vector<8x32xbf16> to vector<8x4x8xbf16>
    %122 = tpu.transpose %121, [1, 0, 2] : vector<8x4x8xbf16> -> vector<4x8x8xbf16>
    "tpu.trace_start"() <{level = 10 : i32, message = "htd,hsd->hts"}> : () -> ()
    %cst_58 = arith.constant dense<0.000000e+00> : vector<4x8x8xf32>
    %123 = tpu.matmul %116, %119, %cst_58 {dimension_numbers = #tpu.dot_dimension_numbers<[2], [2], [1], [1], [0, 0, 0, 1, 1, 1], [0], [0]>} : vector<4x8x8xbf16>, vector<4x8x8xbf16>, vector<4x8x8xf32> -> vector<4x8x8xf32>
    "tpu.trace_stop"() : () -> ()
    %124 = vector.shape_cast %109 : vector<1x8xf32> to vector<1x1x8xf32>
    %125 = vector.broadcast %124 : vector<1x1x8xf32> to vector<4x8x8xf32>
    %126 = arith.addf %123, %125 : vector<4x8x8xf32>
    %cst_59 = arith.constant dense<0xFF800000> : vector<4x8xf32>
    %127 = vector.multi_reduction <maximumf>, %126, %cst_59 [2] : vector<4x8x8xf32> to vector<4x8xf32>
    %128 = vector.shape_cast %127 : vector<4x8xf32> to vector<4x8x1xf32>
    %129 = vector.broadcast %128 : vector<4x8x1xf32> to vector<4x8x8xf32>
    %130 = arith.subf %126, %129 : vector<4x8x8xf32>
    %131 = math.exp %130 : vector<4x8x8xf32>
    %cst_60 = arith.constant dense<0.000000e+00> : vector<4x8xf32>
    %132 = vector.multi_reduction <add>, %131, %cst_60 [2] : vector<4x8x8xf32> to vector<4x8xf32>
    %133 = vector.shape_cast %132 : vector<4x8xf32> to vector<4x8x1xf32>
    %134 = tpu.reciprocal %133 {approx = true} : vector<4x8x1xf32> -> vector<4x8x1xf32>
    %135 = vector.broadcast %134 : vector<4x8x1xf32> to vector<4x8x8xf32>
    %136 = arith.mulf %131, %135 : vector<4x8x8xf32>
    %137 = arith.truncf %136 : vector<4x8x8xf32> to vector<4x8x8xbf16>
    "tpu.trace_start"() <{level = 10 : i32, message = "hts,hsd->htd"}> : () -> ()
    %cst_61 = arith.constant dense<0.000000e+00> : vector<4x8x8xf32>
    %138 = tpu.matmul %137, %122, %cst_61 {dimension_numbers = #tpu.dot_dimension_numbers<[2], [1], [1], [2], [0, 0, 0, 1, 1, 2], [0], [0]>} : vector<4x8x8xbf16>, vector<4x8x8xbf16>, vector<4x8x8xf32> -> vector<4x8x8xf32>
    "tpu.trace_stop"() : () -> ()
    %139 = tpu.transpose %138, [1, 0, 2] : vector<4x8x8xf32> -> vector<8x4x8xf32>
    %140 = vector.shape_cast %139 : vector<8x4x8xf32> to vector<8x32xf32>
    %141 = arith.truncf %140 : vector<8x32xf32> to vector<8x32xbf16>
    %cst_62 = arith.constant dense<0.000000e+00> : vector<8x32xf32>
    %142 = tpu.matmul %141, %110, %cst_62 {dimension_numbers = #tpu.dot_dimension_numbers<[1], [0], [0], [1], [0, 0, 1, 1], [], []>} : vector<8x32xbf16>, vector<32x32xbf16>, vector<8x32xf32> -> vector<8x32xf32>
    %143 = vector.broadcast %111 : vector<1x32xf32> to vector<8x32xf32>
    %144 = arith.addf %142, %143 : vector<8x32xf32>
    %145 = arith.addf %70, %144 : vector<8x32xf32>
    %c0_63 = arith.constant 0 : index
    %c0_64 = arith.constant 0 : index
    %146 = vector.load %arg19[%c0_63, %c0_64] : memref<1x32xf32, #tpu.memory_space<vmem>>, vector<1x32xf32>
    %c0_65 = arith.constant 0 : index
    %c0_66 = arith.constant 0 : index
    %147 = vector.load %arg20[%c0_65, %c0_66] : memref<1x32xf32, #tpu.memory_space<vmem>>, vector<1x32xf32>
    %cst_67 = arith.constant dense<0.000000e+00> : vector<8xf32>
    %148 = vector.multi_reduction <add>, %145, %cst_67 [1] : vector<8x32xf32> to vector<8xf32>
    %149 = vector.shape_cast %148 : vector<8xf32> to vector<8x1xf32>
    %cst_68 = arith.constant 3.200000e+01 : f32
    %150 = vector.broadcast %cst_68 : f32 to vector<8x1xf32>
    %151 = arith.divf %149, %150 : vector<8x1xf32>
    %152 = vector.broadcast %151 : vector<8x1xf32> to vector<8x32xf32>
    %153 = arith.subf %145, %152 : vector<8x32xf32>
    %154 = arith.mulf %153, %153 : vector<8x32xf32>
    %cst_69 = arith.constant dense<0.000000e+00> : vector<8xf32>
    %155 = vector.multi_reduction <add>, %154, %cst_69 [1] : vector<8x32xf32> to vector<8xf32>
    %156 = vector.shape_cast %155 : vector<8xf32> to vector<8x1xf32>
    %cst_70 = arith.constant 0.0322580636 : f32
    %157 = vector.broadcast %cst_70 : f32 to vector<8x1xf32>
    %158 = arith.mulf %156, %157 : vector<8x1xf32>
    %159 = vector.broadcast %146 : vector<1x32xf32> to vector<8x32xf32>
    %160 = arith.mulf %159, %153 : vector<8x32xf32>
    %161 = math.sqrt %158 : vector<8x1xf32>
    %cst_71 = arith.constant 9.99999997E-7 : f32
    %162 = vector.broadcast %cst_71 : f32 to vector<8x1xf32>
    %163 = arith.addf %161, %162 : vector<8x1xf32>
    %164 = vector.broadcast %163 : vector<8x1xf32> to vector<8x32xf32>
    %165 = arith.divf %160, %164 : vector<8x32xf32>
    %166 = vector.broadcast %147 : vector<1x32xf32> to vector<8x32xf32>
    %167 = arith.addf %165, %166 : vector<8x32xf32>
    %168 = arith.truncf %167 : vector<8x32xf32> to vector<8x32xbf16>
    %c0_72 = arith.constant 0 : index
    %c0_73 = arith.constant 0 : index
    %169 = vector.load %arg21[%c0_72, %c0_73] : memref<32x64xbf16, #tpu.memory_space<vmem>>, vector<32x64xbf16>
    %cst_74 = arith.constant dense<0.000000e+00> : vector<8x64xf32>
    %170 = tpu.matmul %168, %169, %cst_74 {dimension_numbers = #tpu.dot_dimension_numbers<[1], [0], [0], [1], [0, 0, 1, 1], [], []>} : vector<8x32xbf16>, vector<32x64xbf16>, vector<8x64xf32> -> vector<8x64xf32>
    %c0_75 = arith.constant 0 : index
    %c0_76 = arith.constant 0 : index
    %171 = vector.load %arg22[%c0_75, %c0_76] : memref<1x64xf32, #tpu.memory_space<vmem>>, vector<1x64xf32>
    %172 = vector.broadcast %171 : vector<1x64xf32> to vector<8x64xf32>
    %173 = arith.addf %170, %172 : vector<8x64xf32>
    %cst_77 = arith.constant 0.000000e+00 : f32
    %174 = vector.broadcast %cst_77 : f32 to vector<8x64xf32>
    %175 = arith.maximumf %173, %174 : vector<8x64xf32>
    %176 = arith.truncf %175 : vector<8x64xf32> to vector<8x64xbf16>
    %c0_78 = arith.constant 0 : index
    %c0_79 = arith.constant 0 : index
    %177 = vector.load %arg23[%c0_78, %c0_79] : memref<64x32xbf16, #tpu.memory_space<vmem>>, vector<64x32xbf16>
    %cst_80 = arith.constant dense<0.000000e+00> : vector<8x32xf32>
    %178 = tpu.matmul %176, %177, %cst_80 {dimension_numbers = #tpu.dot_dimension_numbers<[1], [0], [0], [1], [0, 0, 1, 1], [], []>} : vector<8x64xbf16>, vector<64x32xbf16>, vector<8x32xf32> -> vector<8x32xf32>
    %c0_81 = arith.constant 0 : index
    %c0_82 = arith.constant 0 : index
    %179 = vector.load %arg24[%c0_81, %c0_82] : memref<1x32xf32, #tpu.memory_space<vmem>>, vector<1x32xf32>
    %180 = vector.broadcast %179 : vector<1x32xf32> to vector<8x32xf32>
    %181 = arith.addf %178, %180 : vector<8x32xf32>
    %182 = arith.addf %145, %181 : vector<8x32xf32>
    %c0_83 = arith.constant 0 : index
    %c0_84 = arith.constant 0 : index
    %183 = vector.load %arg25[%c0_83, %c0_84] : memref<1x32xf32, #tpu.memory_space<vmem>>, vector<1x32xf32>
    %c0_85 = arith.constant 0 : index
    %c0_86 = arith.constant 0 : index
    %184 = vector.load %arg26[%c0_85, %c0_86] : memref<1x32xf32, #tpu.memory_space<vmem>>, vector<1x32xf32>
    %cst_87 = arith.constant dense<0.000000e+00> : vector<8xf32>
    %185 = vector.multi_reduction <add>, %182, %cst_87 [1] : vector<8x32xf32> to vector<8xf32>
    %186 = vector.shape_cast %185 : vector<8xf32> to vector<8x1xf32>
    %cst_88 = arith.constant 3.200000e+01 : f32
    %187 = vector.broadcast %cst_88 : f32 to vector<8x1xf32>
    %188 = arith.divf %186, %187 : vector<8x1xf32>
    %189 = vector.broadcast %188 : vector<8x1xf32> to vector<8x32xf32>
    %190 = arith.subf %182, %189 : vector<8x32xf32>
    %191 = arith.mulf %190, %190 : vector<8x32xf32>
    %cst_89 = arith.constant dense<0.000000e+00> : vector<8xf32>
    %192 = vector.multi_reduction <add>, %191, %cst_89 [1] : vector<8x32xf32> to vector<8xf32>
    %193 = vector.shape_cast %192 : vector<8xf32> to vector<8x1xf32>
    %cst_90 = arith.constant 0.0322580636 : f32
    %194 = vector.broadcast %cst_90 : f32 to vector<8x1xf32>
    %195 = arith.mulf %193, %194 : vector<8x1xf32>
    %196 = vector.broadcast %183 : vector<1x32xf32> to vector<8x32xf32>
    %197 = arith.mulf %196, %190 : vector<8x32xf32>
    %198 = math.sqrt %195 : vector<8x1xf32>
    %cst_91 = arith.constant 9.99999997E-7 : f32
    %199 = vector.broadcast %cst_91 : f32 to vector<8x1xf32>
    %200 = arith.addf %198, %199 : vector<8x1xf32>
    %201 = vector.broadcast %200 : vector<8x1xf32> to vector<8x32xf32>
    %202 = arith.divf %197, %201 : vector<8x32xf32>
    %203 = vector.broadcast %184 : vector<1x32xf32> to vector<8x32xf32>
    %204 = arith.addf %202, %203 : vector<8x32xf32>
    %c0_92 = arith.constant 0 : index
    %c0_93 = arith.constant 0 : index
    %c0_94 = arith.constant 0 : index
    %205 = vector.load %arg27[%c0_92, %c0_93, %c0_94] : memref<1x8x32xf32, #tpu.memory_space<vmem>>, vector<1x8x32xf32>
    %206 = vector.shape_cast %205 : vector<1x8x32xf32> to vector<8x32xf32>
    %207 = vector.shape_cast %204 : vector<8x32xf32> to vector<1x8x32xf32>
    tpu.vector_store %arg27[%c0_92, %c0_93, %c0_94], %207 {strides = array<i32>} : memref<1x8x32xf32, #tpu.memory_space<vmem>>, vector<1x8x32xf32>,
    return
  }
  func.func @transform_0(%arg0: i32) -> (i32, i32, i32) {
    %c0_i32 = arith.constant 0 : i32
    %c0_i32_0 = arith.constant 0 : i32
    %c0_i32_1 = arith.constant 0 : i32
    return %arg0, %c0_i32, %c0_i32_0 : i32, i32, i32
  }
  func.func @transform_1(%arg0: i32) -> (i32, i32, i32) {
    %c0_i32 = arith.constant 0 : i32
    %c0_i32_0 = arith.constant 0 : i32
    %c0_i32_1 = arith.constant 0 : i32
    return %arg0, %c0_i32, %c0_i32_0 : i32, i32, i32
  }
  func.func @transform_2(%arg0: i32) -> (i32, i32, i32) {
    %c0_i32 = arith.constant 0 : i32
    %c0_i32_0 = arith.constant 0 : i32
    %c0_i32_1 = arith.constant 0 : i32
    %c0_i32_2 = arith.constant 0 : i32
    return %c0_i32, %c0_i32_0, %c0_i32_1 : i32, i32, i32
  }
  func.func @transform_3(%arg0: i32) -> (i32, i32, i32) {
    %c0_i32 = arith.constant 0 : i32
    %c0_i32_0 = arith.constant 0 : i32
    %c0_i32_1 = arith.constant 0 : i32
    %c0_i32_2 = arith.constant 0 : i32
    return %c0_i32, %c0_i32_0, %c0_i32_1 : i32, i32, i32
  }
  func.func @transform_4(%arg0: i32) -> (i32, i32) {
    %c0_i32 = arith.constant 0 : i32
    %c0_i32_0 = arith.constant 0 : i32
    %c0_i32_1 = arith.constant 0 : i32
    return %c0_i32, %c0_i32_0 : i32, i32
  }
  func.func @transform_5(%arg0: i32) -> (i32, i32) {
    %c0_i32 = arith.constant 0 : i32
    %c0_i32_0 = arith.constant 0 : i32
    %c0_i32_1 = arith.constant 0 : i32
    return %c0_i32, %c0_i32_0 : i32, i32
  }
  func.func @transform_6(%arg0: i32) -> (i32, i32) {
    %c0_i32 = arith.constant 0 : i32
    %c0_i32_0 = arith.constant 0 : i32
    %c0_i32_1 = arith.constant 0 : i32
    return %c0_i32, %c0_i32_0 : i32, i32
  }
  func.func @transform_7(%arg0: i32) -> (i32, i32) {
    %c0_i32 = arith.constant 0 : i32
    %c0_i32_0 = arith.constant 0 : i32
    %c0_i32_1 = arith.constant 0 : i32
    return %c0_i32, %c0_i32_0 : i32, i32
  }
  func.func @transform_8(%arg0: i32) -> (i32, i32) {
    %c0_i32 = arith.constant 0 : i32
    %c0_i32_0 = arith.constant 0 : i32
    %c0_i32_1 = arith.constant 0 : i32
    return %c0_i32, %c0_i32_0 : i32, i32
  }
  func.func @transform_9(%arg0: i32) -> (i32, i32) {
    %c0_i32 = arith.constant 0 : i32
    %c0_i32_0 = arith.constant 0 : i32
    %c0_i32_1 = arith.constant 0 : i32
    return %c0_i32, %c0_i32_0 : i32, i32
  }
  func.func @transform_10(%arg0: i32) -> (i32, i32) {
    %c0_i32 = arith.constant 0 : i32
    %c0_i32_0 = arith.constant 0 : i32
    %c0_i32_1 = arith.constant 0 : i32
    return %c0_i32, %c0_i32_0 : i32, i32
  }
  func.func @transform_11(%arg0: i32) -> (i32, i32) {
    %c0_i32 = arith.constant 0 : i32
    %c0_i32_0 = arith.constant 0 : i32
    %c0_i32_1 = arith.constant 0 : i32
    return %c0_i32, %c0_i32_0 : i32, i32
  }
  func.func @transform_12(%arg0: i32) -> (i32, i32) {
    %c0_i32 = arith.constant 0 : i32
    %c0_i32_0 = arith.constant 0 : i32
    %c0_i32_1 = arith.constant 0 : i32
    return %c0_i32, %c0_i32_0 : i32, i32
  }
  func.func @transform_13(%arg0: i32) -> (i32, i32) {
    %c0_i32 = arith.constant 0 : i32
    %c0_i32_0 = arith.constant 0 : i32
    %c0_i32_1 = arith.constant 0 : i32
    return %c0_i32, %c0_i32_0 : i32, i32
  }
  func.func @transform_14(%arg0: i32) -> (i32, i32) {
    %c0_i32 = arith.constant 0 : i32
    %c0_i32_0 = arith.constant 0 : i32
    %c0_i32_1 = arith.constant 0 : i32
    return %c0_i32, %c0_i32_0 : i32, i32
  }
  func.func @transform_15(%arg0: i32) -> (i32, i32) {
    %c0_i32 = arith.constant 0 : i32
    %c0_i32_0 = arith.constant 0 : i32
    %c0_i32_1 = arith.constant 0 : i32
    return %c0_i32, %c0_i32_0 : i32, i32
  }
  func.func @transform_16(%arg0: i32) -> (i32, i32) {
    %c0_i32 = arith.constant 0 : i32
    %c0_i32_0 = arith.constant 0 : i32
    %c0_i32_1 = arith.constant 0 : i32
    return %c0_i32, %c0_i32_0 : i32, i32
  }
  func.func @transform_17(%arg0: i32) -> (i32, i32) {
    %c0_i32 = arith.constant 0 : i32
    %c0_i32_0 = arith.constant 0 : i32
    %c0_i32_1 = arith.constant 0 : i32
    return %c0_i32, %c0_i32_0 : i32, i32
  }
  func.func @transform_18(%arg0: i32) -> (i32, i32) {
    %c0_i32 = arith.constant 0 : i32
    %c0_i32_0 = arith.constant 0 : i32
    %c0_i32_1 = arith.constant 0 : i32
    return %c0_i32, %c0_i32_0 : i32, i32
  }
  func.func @transform_19(%arg0: i32) -> (i32, i32) {
    %c0_i32 = arith.constant 0 : i32
    %c0_i32_0 = arith.constant 0 : i32
    %c0_i32_1 = arith.constant 0 : i32
    return %c0_i32, %c0_i32_0 : i32, i32
  }
  func.func @transform_20(%arg0: i32) -> (i32, i32) {
    %c0_i32 = arith.constant 0 : i32
    %c0_i32_0 = arith.constant 0 : i32
    %c0_i32_1 = arith.constant 0 : i32
    return %c0_i32, %c0_i32_0 : i32, i32
  }
  func.func @transform_21(%arg0: i32) -> (i32, i32) {
    %c0_i32 = arith.constant 0 : i32
    %c0_i32_0 = arith.constant 0 : i32
    %c0_i32_1 = arith.constant 0 : i32
    return %c0_i32, %c0_i32_0 : i32, i32
  }
  func.func @transform_22(%arg0: i32) -> (i32, i32) {
    %c0_i32 = arith.constant 0 : i32
    %c0_i32_0 = arith.constant 0 : i32
    %c0_i32_1 = arith.constant 0 : i32
    return %c0_i32, %c0_i32_0 : i32, i32
  }
  func.func @transform_23(%arg0: i32) -> (i32, i32) {
    %c0_i32 = arith.constant 0 : i32
    %c0_i32_0 = arith.constant 0 : i32
    %c0_i32_1 = arith.constant 0 : i32
    return %c0_i32, %c0_i32_0 : i32, i32
  }
  func.func @transform_24(%arg0: i32) -> (i32, i32) {
    %c0_i32 = arith.constant 0 : i32
    %c0_i32_0 = arith.constant 0 : i32
    %c0_i32_1 = arith.constant 0 : i32
    return %c0_i32, %c0_i32_0 : i32, i32
  }
  func.func @transform_25(%arg0: i32) -> (i32, i32) {
    %c0_i32 = arith.constant 0 : i32
    %c0_i32_0 = arith.constant 0 : i32
    %c0_i32_1 = arith.constant 0 : i32
    return %c0_i32, %c0_i32_0 : i32, i32
  }
  func.func @transform_26(%arg0: i32) -> (i32, i32, i32) {
    %c0_i32 = arith.constant 0 : i32
    %c0_i32_0 = arith.constant 0 : i32
    %c0_i32_1 = arith.constant 0 : i32
    return %arg0, %c0_i32, %c0_i32_0 : i32, i32, i32
  }
}

module attributes {stable_mosaic.version = 11 : i64} {
  func.func @_decoder_layer_kernel(%arg0: i32, %arg1: memref<1x8x32xf32, #tpu.memory_space<vmem>>, %arg2: memref<1x8x32xbf16, #tpu.memory_space<vmem>>, %arg3: memref<1x8x8xf32, #tpu.memory_space<vmem>>, %arg4: memref<1x1x8xf32, #tpu.memory_space<vmem>>, %arg5: memref<1x32xf32, #tpu.memory_space<vmem>>, %arg6: memref<1x32xf32, #tpu.memory_space<vmem>>, %arg7: memref<32x96xbf16, #tpu.memory_space<vmem>>, %arg8: memref<1x96xf32, #tpu.memory_space<vmem>>, %arg9: memref<32x32xbf16, #tpu.memory_space<vmem>>, %arg10: memref<1x32xf32, #tpu.memory_space<vmem>>, %arg11: memref<1x32xf32, #tpu.memory_space<vmem>>, %arg12: memref<1x32xf32, #tpu.memory_space<vmem>>, %arg13: memref<32x32xbf16, #tpu.memory_space<vmem>>, %arg14: memref<1x32xf32, #tpu.memory_space<vmem>>, %arg15: memref<32x64xbf16, #tpu.memory_space<vmem>>, %arg16: memref<1x64xf32, #tpu.memory_space<vmem>>, %arg17: memref<32x32xbf16, #tpu.memory_space<vmem>>, %arg18: memref<1x32xf32, #tpu.memory_space<vmem>>, %arg19: memref<1x32xf32, #tpu.memory_space<vmem>>, %arg20: memref<1x32xf32, #tpu.memory_space<vmem>>, %arg21: memref<32x64xbf16, #tpu.memory_space<vmem>>, %arg22: memref<1x64xf32, #tpu.memory_space<vmem>>, %arg23: memref<64x32xbf16, #tpu.memory_space<vmem>>, %arg24: memref<1x32xf32, #tpu.memory_space<vmem>>, %arg25: memref<1x32xf32, #tpu.memory_space<vmem>>, %arg26: memref<1x32xf32, #tpu.memory_space<vmem>>, %arg27: memref<1x8x32xf32, #tpu.memory_space<vmem>>) attributes {dimension_semantics = [#tpu.dimension_semantics<parallel>], iteration_bounds = array<i64: 2>, scalar_prefetch = 0 : i64, scratch_operands = 0 : i64, tpu.core_type = #tpu.core_type<tc>, window_params = [{transform_indices = @transform_0, window_bounds = array<i64: 1, 8, 32>}, {transform_indices = @transform_1, window_bounds = array<i64: 1, 8, 32>}, {pipeline_mode = #tpu.pipeline_mode<synchronous>, transform_indices = @transform_2, window_bounds = array<i64: 1, 8, 8>}, {pipeline_mode = #tpu.pipeline_mode<synchronous>, transform_indices = @transform_3, window_bounds = array<i64: 1, 1, 8>}, {pipeline_mode = #tpu.pipeline_mode<synchronous>, transform_indices = @transform_4, window_bounds = array<i64: 1, 32>}, {pipeline_mode = #tpu.pipeline_mode<synchronous>, transform_indices = @transform_5, window_bounds = array<i64: 1, 32>}, {pipeline_mode = #tpu.pipeline_mode<synchronous>, transform_indices = @transform_6, window_bounds = array<i64: 32, 96>}, {pipeline_mode = #tpu.pipeline_mode<synchronous>, transform_indices = @transform_7, window_bounds = array<i64: 1, 96>}, {pipeline_mode = #tpu.pipeline_mode<synchronous>, transform_indices = @transform_8, window_bounds = array<i64: 32, 32>}, {pipeline_mode = #tpu.pipeline_mode<synchronous>, transform_indices = @transform_9, window_bounds = array<i64: 1, 32>}, {pipeline_mode = #tpu.pipeline_mode<synchronous>, transform_indices = @transform_10, window_bounds = array<i64: 1, 32>}, {pipeline_mode = #tpu.pipeline_mode<synchronous>, transform_indices = @transform_11, window_bounds = array<i64: 1, 32>}, {pipeline_mode = #tpu.pipeline_mode<synchronous>, transform_indices = @transform_12, window_bounds = array<i64: 32, 32>}, {pipeline_mode = #tpu.pipeline_mode<synchronous>, transform_indices = @transform_13, window_bounds = array<i64: 1, 32>}, {pipeline_mode = #tpu.pipeline_mode<synchronous>, transform_indices = @transform_14, window_bounds = array<i64: 32, 64>}, {pipeline_mode = #tpu.pipeline_mode<synchronous>, transform_indices = @transform_15, window_bounds = array<i64: 1, 64>}, {pipeline_mode = #tpu.pipeline_mode<synchronous>, transform_indices = @transform_16, window_bounds = array<i64: 32, 32>}, {pipeline_mode = #tpu.pipeline_mode<synchronous>, transform_indices = @transform_17, window_bounds = array<i64: 1, 32>}, {pipeline_mode = #tpu.pipeline_mode<synchronous>, transform_indices = @transform_18, window_bounds = array<i64: 1, 32>}, {pipeline_mode = #tpu.pipeline_mode<synchronous>, transform_indices = @transform_19, window_bounds = array<i64: 1, 32>}, {pipeline_mode = #tpu.pipeline_mode<synchronous>, transform_indices = @transform_20, window_bounds = array<i64: 32, 64>}, {pipeline_mode = #tpu.pipeline_mode<synchronous>, transform_indices = @transform_21, window_bounds = array<i64: 1, 64>}, {pipeline_mode = #tpu.pipeline_mode<synchronous>, transform_indices = @transform_22, window_bounds = array<i64: 64, 32>}, {pipeline_mode = #tpu.pipeline_mode<synchronous>, transform_indices = @transform_23, window_bounds = array<i64: 1, 32>}, {pipeline_mode = #tpu.pipeline_mode<synchronous>, transform_indices = @transform_24, window_bounds = array<i64: 1, 32>}, {pipeline_mode = #tpu.pipeline_mode<synchronous>, transform_indices = @transform_25, window_bounds = array<i64: 1, 32>}, {transform_indices = @transform_26, window_bounds = array<i64: 1, 8, 32>}]} {
    %c0 = arith.constant 0 : index
    %c0_0 = arith.constant 0 : index
    %c0_1 = arith.constant 0 : index
    %0 = vector.load %arg1[%c0, %c0_0, %c0_1] : memref<1x8x32xf32, #tpu.memory_space<vmem>>, vector<1x8x32xf32>
    %1 = vector.shape_cast %0 : vector<1x8x32xf32> to vector<8x32xf32>
    %c0_2 = arith.constant 0 : index
    %c0_3 = arith.constant 0 : index
    %2 = vector.load %arg5[%c0_2, %c0_3] : memref<1x32xf32, #tpu.memory_space<vmem>>, vector<1x32xf32>
    %c0_4 = arith.constant 0 : index
    %c0_5 = arith.constant 0 : index
    %3 = vector.load %arg6[%c0_4, %c0_5] : memref<1x32xf32, #tpu.memory_space<vmem>>, vector<1x32xf32>
    %cst = arith.constant dense<0.000000e+00> : vector<8xf32>
    %4 = vector.multi_reduction <add>, %1, %cst [1] : vector<8x32xf32> to vector<8xf32>
    %5 = vector.shape_cast %4 : vector<8xf32> to vector<8x1xf32>
    %cst_6 = arith.constant 3.200000e+01 : f32
    %6 = vector.broadcast %cst_6 : f32 to vector<8x1xf32>
    %7 = arith.divf %5, %6 : vector<8x1xf32>
    %8 = vector.broadcast %7 : vector<8x1xf32> to vector<8x32xf32>
    %9 = arith.subf %1, %8 : vector<8x32xf32>
    %10 = arith.mulf %9, %9 : vector<8x32xf32>
    %cst_7 = arith.constant dense<0.000000e+00> : vector<8xf32>
    %11 = vector.multi_reduction <add>, %10, %cst_7 [1] : vector<8x32xf32> to vector<8xf32>
    %12 = vector.shape_cast %11 : vector<8xf32> to vector<8x1xf32>
    %cst_8 = arith.constant 0.0322580636 : f32
    %13 = vector.broadcast %cst_8 : f32 to vector<8x1xf32>
    %14 = arith.mulf %12, %13 : vector<8x1xf32>
    %15 = vector.broadcast %2 : vector<1x32xf32> to vector<8x32xf32>
    %16 = arith.mulf %15, %9 : vector<8x32xf32>
    %17 = math.sqrt %14 : vector<8x1xf32>
    %cst_9 = arith.constant 9.99999997E-7 : f32
    %18 = vector.broadcast %cst_9 : f32 to vector<8x1xf32>
    %19 = arith.addf %17, %18 : vector<8x1xf32>
    %20 = vector.broadcast %19 : vector<8x1xf32> to vector<8x32xf32>
    %21 = arith.divf %16, %20 : vector<8x32xf32>
    %22 = vector.broadcast %3 : vector<1x32xf32> to vector<8x32xf32>
    %23 = arith.addf %21, %22 : vector<8x32xf32>
    %24 = arith.truncf %23 : vector<8x32xf32> to vector<8x32xbf16>
    %c0_10 = arith.constant 0 : index
    %c0_11 = arith.constant 0 : index
    %25 = vector.load %arg7[%c0_10, %c0_11] : memref<32x96xbf16, #tpu.memory_space<vmem>>, vector<32x96xbf16>
    %cst_12 = arith.constant dense<0.000000e+00> : vector<8x96xf32>
    %26 = tpu.matmul %24, %25, %cst_12 {dimension_numbers = #tpu.dot_dimension_numbers<[1], [0], [0], [1], [0, 0, 1, 1], [], []>} : vector<8x32xbf16>, vector<32x96xbf16>, vector<8x96xf32> -> vector<8x96xf32>
    %c0_13 = arith.constant 0 : index
    %c0_14 = arith.constant 0 : index
    %27 = vector.load %arg8[%c0_13, %c0_14] : memref<1x96xf32, #tpu.memory_space<vmem>>, vector<1x96xf32>
    %28 = vector.broadcast %27 : vector<1x96xf32> to vector<8x96xf32>
    %29 = arith.addf %26, %28 : vector<8x96xf32>
    %30 = vector.extract_strided_slice %29 {offsets = [0, 0], sizes = [8, 32], strides = [1, 1]} : vector<8x96xf32> to vector<8x32xf32>
    %31 = vector.extract_strided_slice %29 {offsets = [0, 32], sizes = [8, 32], strides = [1, 1]} : vector<8x96xf32> to vector<8x32xf32>
    %32 = vector.extract_strided_slice %29 {offsets = [0, 64], sizes = [8, 32], strides = [1, 1]} : vector<8x96xf32> to vector<8x32xf32>
    %c0_15 = arith.constant 0 : index
    %c0_16 = arith.constant 0 : index
    %c0_17 = arith.constant 0 : index
    %33 = vector.load %arg3[%c0_15, %c0_16, %c0_17] : memref<1x8x8xf32, #tpu.memory_space<vmem>>, vector<1x8x8xf32>
    %34 = vector.shape_cast %33 : vector<1x8x8xf32> to vector<8x8xf32>
    %c0_18 = arith.constant 0 : index
    %c0_19 = arith.constant 0 : index
    %35 = vector.load %arg9[%c0_18, %c0_19] : memref<32x32xbf16, #tpu.memory_space<vmem>>, vector<32x32xbf16>
    %c0_20 = arith.constant 0 : index
    %c0_21 = arith.constant 0 : index
    %36 = vector.load %arg10[%c0_20, %c0_21] : memref<1x32xf32, #tpu.memory_space<vmem>>, vector<1x32xf32>
    %cst_22 = arith.constant 0.353553385 : f32
    %37 = vector.broadcast %cst_22 : f32 to vector<8x32xf32>
    %38 = arith.mulf %30, %37 : vector<8x32xf32>
    %39 = arith.truncf %38 : vector<8x32xf32> to vector<8x32xbf16>
    %40 = vector.shape_cast %39 : vector<8x32xbf16> to vector<8x4x8xbf16>
    %41 = tpu.transpose %40, [1, 0, 2] : vector<8x4x8xbf16> -> vector<4x8x8xbf16>
    %42 = arith.truncf %31 : vector<8x32xf32> to vector<8x32xbf16>
    %43 = vector.shape_cast %42 : vector<8x32xbf16> to vector<8x4x8xbf16>
    %44 = tpu.transpose %43, [1, 0, 2] : vector<8x4x8xbf16> -> vector<4x8x8xbf16>
    %45 = arith.truncf %32 : vector<8x32xf32> to vector<8x32xbf16>
    %46 = vector.shape_cast %45 : vector<8x32xbf16> to vector<8x4x8xbf16>
    %47 = tpu.transpose %46, [1, 0, 2] : vector<8x4x8xbf16> -> vector<4x8x8xbf16>
    "tpu.trace_start"() <{level = 10 : i32, message = "htd,hsd->hts"}> : () -> ()
    %cst_23 = arith.constant dense<0.000000e+00> : vector<4x8x8xf32>
    %48 = tpu.matmul %41, %44, %cst_23 {dimension_numbers = #tpu.dot_dimension_numbers<[2], [2], [1], [1], [0, 0, 0, 1, 1, 1], [0], [0]>} : vector<4x8x8xbf16>, vector<4x8x8xbf16>, vector<4x8x8xf32> -> vector<4x8x8xf32>
    "tpu.trace_stop"() : () -> ()
    %49 = vector.shape_cast %34 : vector<8x8xf32> to vector<1x8x8xf32>
    %50 = vector.broadcast %49 : vector<1x8x8xf32> to vector<4x8x8xf32>
    %51 = arith.addf %48, %50 : vector<4x8x8xf32>
    %cst_24 = arith.constant dense<0xFF800000> : vector<4x8xf32>
    %52 = vector.multi_reduction <maximumf>, %51, %cst_24 [2] : vector<4x8x8xf32> to vector<4x8xf32>
    %53 = vector.shape_cast %52 : vector<4x8xf32> to vector<4x8x1xf32>
    %54 = vector.broadcast %53 : vector<4x8x1xf32> to vector<4x8x8xf32>
    %55 = arith.subf %51, %54 : vector<4x8x8xf32>
    %56 = math.exp %55 : vector<4x8x8xf32>
    %cst_25 = arith.constant dense<0.000000e+00> : vector<4x8xf32>
    %57 = vector.multi_reduction <add>, %56, %cst_25 [2] : vector<4x8x8xf32> to vector<4x8xf32>
    %58 = vector.shape_cast %57 : vector<4x8xf32> to vector<4x8x1xf32>
    %59 = tpu.reciprocal %58 {approx = true} : vector<4x8x1xf32> -> vector<4x8x1xf32>
    %60 = vector.broadcast %59 : vector<4x8x1xf32> to vector<4x8x8xf32>
    %61 = arith.mulf %56, %60 : vector<4x8x8xf32>
    %62 = arith.truncf %61 : vector<4x8x8xf32> to vector<4x8x8xbf16>
    "tpu.trace_start"() <{level = 10 : i32, message = "hts,hsd->htd"}> : () -> ()
    %cst_26 = arith.constant dense<0.000000e+00> : vector<4x8x8xf32>
    %63 = tpu.matmul %62, %47, %cst_26 {dimension_numbers = #tpu.dot_dimension_numbers<[2], [1], [1], [2], [0, 0, 0, 1, 1, 2], [0], [0]>} : vector<4x8x8xbf16>, vector<4x8x8xbf16>, vector<4x8x8xf32> -> vector<4x8x8xf32>
    "tpu.trace_stop"() : () -> ()
    %64 = tpu.transpose %63, [1, 0, 2] : vector<4x8x8xf32> -> vector<8x4x8xf32>
    %65 = vector.shape_cast %64 : vector<8x4x8xf32> to vector<8x32xf32>
    %66 = arith.truncf %65 : vector<8x32xf32> to vector<8x32xbf16>
    %cst_27 = arith.constant dense<0.000000e+00> : vector<8x32xf32>
    %67 = tpu.matmul %66, %35, %cst_27 {dimension_numbers = #tpu.dot_dimension_numbers<[1], [0], [0], [1], [0, 0, 1, 1], [], []>} : vector<8x32xbf16>, vector<32x32xbf16>, vector<8x32xf32> -> vector<8x32xf32>
    %68 = vector.broadcast %36 : vector<1x32xf32> to vector<8x32xf32>
    %69 = arith.addf %67, %68 : vector<8x32xf32>
    %70 = arith.addf %1, %69 : vector<8x32xf32>
    %c0_28 = arith.constant 0 : index
    %c0_29 = arith.constant 0 : index
    %71 = vector.load %arg11[%c0_28, %c0_29] : memref<1x32xf32, #tpu.memory_space<vmem>>, vector<1x32xf32>
    %c0_30 = arith.constant 0 : index
    %c0_31 = arith.constant 0 : index
    %72 = vector.load %arg12[%c0_30, %c0_31] : memref<1x32xf32, #tpu.memory_space<vmem>>, vector<1x32xf32>
    %cst_32 = arith.constant dense<0.000000e+00> : vector<8xf32>
    %73 = vector.multi_reduction <add>, %70, %cst_32 [1] : vector<8x32xf32> to vector<8xf32>
    %74 = vector.shape_cast %73 : vector<8xf32> to vector<8x1xf32>
    %cst_33 = arith.constant 3.200000e+01 : f32
    %75 = vector.broadcast %cst_33 : f32 to vector<8x1xf32>
    %76 = arith.divf %74, %75 : vector<8x1xf32>
    %77 = vector.broadcast %76 : vector<8x1xf32> to vector<8x32xf32>
    %78 = arith.subf %70, %77 : vector<8x32xf32>
    %79 = arith.mulf %78, %78 : vector<8x32xf32>
    %cst_34 = arith.constant dense<0.000000e+00> : vector<8xf32>
    %80 = vector.multi_reduction <add>, %79, %cst_34 [1] : vector<8x32xf32> to vector<8xf32>
    %81 = vector.shape_cast %80 : vector<8xf32> to vector<8x1xf32>
    %cst_35 = arith.constant 0.0322580636 : f32
    %82 = vector.broadcast %cst_35 : f32 to vector<8x1xf32>
    %83 = arith.mulf %81, %82 : vector<8x1xf32>
    %84 = vector.broadcast %71 : vector<1x32xf32> to vector<8x32xf32>
    %85 = arith.mulf %84, %78 : vector<8x32xf32>
    %86 = math.sqrt %83 : vector<8x1xf32>
    %cst_36 = arith.constant 9.99999997E-7 : f32
    %87 = vector.broadcast %cst_36 : f32 to vector<8x1xf32>
    %88 = arith.addf %86, %87 : vector<8x1xf32>
    %89 = vector.broadcast %88 : vector<8x1xf32> to vector<8x32xf32>
    %90 = arith.divf %85, %89 : vector<8x32xf32>
    %91 = vector.broadcast %72 : vector<1x32xf32> to vector<8x32xf32>
    %92 = arith.addf %90, %91 : vector<8x32xf32>
    %93 = arith.truncf %92 : vector<8x32xf32> to vector<8x32xbf16>
    %c0_37 = arith.constant 0 : index
    %c0_38 = arith.constant 0 : index
    %c0_39 = arith.constant 0 : index
    %94 = vector.load %arg2[%c0_37, %c0_38, %c0_39] : memref<1x8x32xbf16, #tpu.memory_space<vmem>>, vector<1x8x32xbf16>
    %95 = vector.shape_cast %94 : vector<1x8x32xbf16> to vector<8x32xbf16>
    %c0_40 = arith.constant 0 : index
    %c0_41 = arith.constant 0 : index
    %96 = vector.load %arg13[%c0_40, %c0_41] : memref<32x32xbf16, #tpu.memory_space<vmem>>, vector<32x32xbf16>
    %cst_42 = arith.constant dense<0.000000e+00> : vector<8x32xf32>
    %97 = tpu.matmul %93, %96, %cst_42 {dimension_numbers = #tpu.dot_dimension_numbers<[1], [0], [0], [1], [0, 0, 1, 1], [], []>} : vector<8x32xbf16>, vector<32x32xbf16>, vector<8x32xf32> -> vector<8x32xf32>
    %c0_43 = arith.constant 0 : index
    %c0_44 = arith.constant 0 : index
    %98 = vector.load %arg14[%c0_43, %c0_44] : memref<1x32xf32, #tpu.memory_space<vmem>>, vector<1x32xf32>
    %99 = vector.broadcast %98 : vector<1x32xf32> to vector<8x32xf32>
    %100 = arith.addf %97, %99 : vector<8x32xf32>
    %c0_45 = arith.constant 0 : index
    %c0_46 = arith.constant 0 : index
    %101 = vector.load %arg15[%c0_45, %c0_46] : memref<32x64xbf16, #tpu.memory_space<vmem>>, vector<32x64xbf16>
    %cst_47 = arith.constant dense<0.000000e+00> : vector<8x64xf32>
    %102 = tpu.matmul %95, %101, %cst_47 {dimension_numbers = #tpu.dot_dimension_numbers<[1], [0], [0], [1], [0, 0, 1, 1], [], []>} : vector<8x32xbf16>, vector<32x64xbf16>, vector<8x64xf32> -> vector<8x64xf32>
    %c0_48 = arith.constant 0 : index
    %c0_49 = arith.constant 0 : index
    %103 = vector.load %arg16[%c0_48, %c0_49] : memref<1x64xf32, #tpu.memory_space<vmem>>, vector<1x64xf32>
    %104 = vector.broadcast %103 : vector<1x64xf32> to vector<8x64xf32>
    %105 = arith.addf %102, %104 : vector<8x64xf32>
    %106 = vector.extract_strided_slice %105 {offsets = [0, 0], sizes = [8, 32], strides = [1, 1]} : vector<8x64xf32> to vector<8x32xf32>
    %107 = vector.extract_strided_slice %105 {offsets = [0, 32], sizes = [8, 32], strides = [1, 1]} : vector<8x64xf32> to vector<8x32xf32>
    %c0_50 = arith.constant 0 : index
    %c0_51 = arith.constant 0 : index
    %c0_52 = arith.constant 0 : index
    %108 = vector.load %arg4[%c0_50, %c0_51, %c0_52] : memref<1x1x8xf32, #tpu.memory_space<vmem>>, vector<1x1x8xf32>
    %109 = vector.shape_cast %108 : vector<1x1x8xf32> to vector<1x8xf32>
    %c0_53 = arith.constant 0 : index
    %c0_54 = arith.constant 0 : index
    %110 = vector.load %arg17[%c0_53, %c0_54] : memref<32x32xbf16, #tpu.memory_space<vmem>>, vector<32x32xbf16>
    %c0_55 = arith.constant 0 : index
    %c0_56 = arith.constant 0 : index
    %111 = vector.load %arg18[%c0_55, %c0_56] : memref<1x32xf32, #tpu.memory_space<vmem>>, vector<1x32xf32>
    %cst_57 = arith.constant 0.353553385 : f32
    %112 = vector.broadcast %cst_57 : f32 to vector<8x32xf32>
    %113 = arith.mulf %100, %112 : vector<8x32xf32>
    %114 = arith.truncf %113 : vector<8x32xf32> to vector<8x32xbf16>
    %115 = vector.shape_cast %114 : vector<8x32xbf16> to vector<8x4x8xbf16>
    %116 = tpu.transpose %115, [1, 0, 2] : vector<8x4x8xbf16> -> vector<4x8x8xbf16>
    %117 = arith.truncf %106 : vector<8x32xf32> to vector<8x32xbf16>
    %118 = vector.shape_cast %117 : vector<8x32xbf16> to vector<8x4x8xbf16>
    %119 = tpu.transpose %118, [1, 0, 2] : vector<8x4x8xbf16> -> vector<4x8x8xbf16>
    %120 = arith.truncf %107 : vector<8x32xf32> to vector<8x32xbf16>
    %121 = vector.shape_cast %120 : vector<8x32xbf16> to vector<8x4x8xbf16>
    %122 = tpu.transpose %121, [1, 0, 2] : vector<8x4x8xbf16> -> vector<4x8x8xbf16>
    "tpu.trace_start"() <{level = 10 : i32, message = "htd,hsd->hts"}> : () -> ()
    %cst_58 = arith.constant dense<0.000000e+00> : vector<4x8x8xf32>
    %123 = tpu.matmul %116, %119, %cst_58 {dimension_numbers = #tpu.dot_dimension_numbers<[2], [2], [1], [1], [0, 0, 0, 1, 1, 1], [0], [0]>} : vector<4x8x8xbf16>, vector<4x8x8xbf16>, vector<4x8x8xf32> -> vector<4x8x8xf32>
    "tpu.trace_stop"() : () -> ()
    %124 = vector.shape_cast %109 : vector<1x8xf32> to vector<1x1x8xf32>
    %125 = vector.broadcast %124 : vector<1x1x8xf32> to vector<4x8x8xf32>
    %126 = arith.addf %123, %125 : vector<4x8x8xf32>
    %cst_59 = arith.constant dense<0xFF800000> : vector<4x8xf32>
    %127 = vector.multi_reduction <maximumf>, %126, %cst_59 [2] : vector<4x8x8xf32> to vector<4x8xf32>
    %128 = vector.shape_cast %127 : vector<4x8xf32> to vector<4x8x1xf32>
    %129 = vector.broadcast %128 : vector<4x8x1xf32> to vector<4x8x8xf32>
    %130 = arith.subf %126, %129 : vector<4x8x8xf32>
    %131 = math.exp %130 : vector<4x8x8xf32>
    %cst_60 = arith.constant dense<0.000000e+00> : vector<4x8xf32>
    %132 = vector.multi_reduction <add>, %131, %cst_60 [2] : vector<4x8x8xf32> to vector<4x8xf32>
    %133 = vector.shape_cast %132 : vector<4x8xf32> to vector<4x8x1xf32>
    %134 = tpu.reciprocal %133 {approx = true} : vector<4x8x1xf32> -> vector<4x8x1xf32>
    %135 = vector.broadcast %134 : vector<4x8x1xf32> to vector<4x8x8xf32>
    %136 = arith.mulf %131, %135 : vector<4x8x8xf32>
    %137 = arith.truncf %136 : vector<4x8x8xf32> to vector<4x8x8xbf16>
    "tpu.trace_start"() <{level = 10 : i32, message = "hts,hsd->htd"}> : () -> ()
    %cst_61 = arith.constant dense<0.000000e+00> : vector<4x8x8xf32>
    %138 = tpu.matmul %137, %122, %cst_61 {dimension_numbers = #tpu.dot_dimension_numbers<[2], [1], [1], [2], [0, 0, 0, 1, 1, 2], [0], [0]>} : vector<4x8x8xbf16>, vector<4x8x8xbf16>, vector<4x8x8xf32> -> vector<4x8x8xf32>
    "tpu.trace_stop"() : () -> ()
    %139 = tpu.transpose %138, [1, 0, 2] : vector<4x8x8xf32> -> vector<8x4x8xf32>
    %140 = vector.shape_cast %139 : vector<8x4x8xf32> to vector<8x32xf32>
    %141 = arith.truncf %140 : vector<8x32xf32> to vector<8x32xbf16>
    %cst_62 = arith.constant dense<0.000000e+00> : vector<8x32xf32>
    %142 = tpu.matmul %141, %110, %cst_62 {dimension_numbers = #tpu.dot_dimension_numbers<[1], [0], [0], [1], [0, 0, 1, 1], [], []>} : vector<8x32xbf16>, vector<32x32xbf16>, vector<8x32xf32> -> vector<8x32xf32>
    %143 = vector.broadcast %111 : vector<1x32xf32> to vector<8x32xf32>
    %144 = arith.addf %142, %143 : vector<8x32xf32>
    %145 = arith.addf %70, %144 : vector<8x32xf32>
    %c0_63 = arith.constant 0 : index
    %c0_64 = arith.constant 0 : index
    %146 = vector.load %arg19[%c0_63, %c0_64] : memref<1x32xf32, #tpu.memory_space<vmem>>, vector<1x32xf32>
    %c0_65 = arith.constant 0 : index
    %c0_66 = arith.constant 0 : index
    %147 = vector.load %arg20[%c0_65, %c0_66] : memref<1x32xf32, #tpu.memory_space<vmem>>, vector<1x32xf32>
    %cst_67 = arith.constant dense<0.000000e+00> : vector<8xf32>
    %148 = vector.multi_reduction <add>, %145, %cst_67 [1] : vector<8x32xf32> to vector<8xf32>
    %149 = vector.shape_cast %148 : vector<8xf32> to vector<8x1xf32>
    %cst_68 = arith.constant 3.200000e+01 : f32
    %150 = vector.broadcast %cst_68 : f32 to vector<8x1xf32>
    %151 = arith.divf %149, %150 : vector<8x1xf32>
    %152 = vector.broadcast %151 : vector<8x1xf32> to vector<8x32xf32>
    %153 = arith.subf %145, %152 : vector<8x32xf32>
    %154 = arith.mulf %153, %153 : vector<8x32xf32>
    %cst_69 = arith.constant dense<0.000000e+00> : vector<8xf32>
    %155 = vector.multi_reduction <add>, %154, %cst_69 [1] : vector<8x32xf32> to vector<8xf32>
    %156 = vector.shape_cast %155 : vector<8xf32> to vector<8x1xf32>
    %cst_70 = arith.constant 0.0322580636 : f32
    %157 = vector.broadcast %cst_70 : f32 to vector<8x1xf32>
    %158 = arith.mulf %156, %157 : vector<8x1xf32>
    %159 = vector.broadcast %146 : vector<1x32xf32> to vector<8x32xf32>
    %160 = arith.mulf %159, %153 : vector<8x32xf32>
    %161 = math.sqrt %158 : vector<8x1xf32>
    %cst_71 = arith.constant 9.99999997E-7 : f32
    %162 = vector.broadcast %cst_71 : f32 to vector<8x1xf32>
    %163 = arith.addf %161, %162 : vector<8x1xf32>
    %164 = vector.broadcast %163 : vector<8x1xf32> to vector<8x32xf32>
    %165 = arith.divf %160, %164 : vector<8x32xf32>
    %166 = vector.broadcast %147 : vector<1x32xf32> to vector<8x32xf32>
    %167 = arith.addf %165, %166 : vector<8x32xf32>
    %168 = arith.truncf %167 : vector<8x32xf32> to vector<8x32xbf16>
    %c0_72 = arith.constant 0 : index
    %c0_73 = arith.constant 0 : index
    %169 = vector.load %arg21[%c0_72, %c0_73] : memref<32x64xbf16, #tpu.memory_space<vmem>>, vector<32x64xbf16>
    %cst_74 = arith.constant dense<0.000000e+00> : vector<8x64xf32>
    %170 = tpu.matmul %168, %169, %cst_74 {dimension_numbers = #tpu.dot_dimension_numbers<[1], [0], [0], [1], [0, 0, 1, 1], [], []>} : vector<8x32xbf16>, vector<32x64xbf16>, vector<8x64xf32> -> vector<8x64xf32>
    %c0_75 = arith.constant 0 : index
    %c0_76 = arith.constant 0 : index
    %171 = vector.load %arg22[%c0_75, %c0_76] : memref<1x64xf32, #tpu.memory_space<vmem>>, vector<1x64xf32>
    %172 = vector.broadcast %171 : vector<1x64xf32> to vector<8x64xf32>
    %173 = arith.addf %170, %172 : vector<8x64xf32>
    %cst_77 = arith.constant 0.000000e+00 : f32
    %174 = vector.broadcast %cst_77 : f32 to vector<8x64xf32>
    %175 = arith.maximumf %173, %174 : vector<8x64xf32>
    %176 = arith.truncf %175 : vector<8x64xf32> to vector<8x64xbf16>
    %c0_78 = arith.constant 0 : index
    %c0_79 = arith.constant 0 : index
    %177 = vector.load %arg23[%c0_78, %c0_79] : memref<64x32xbf16, #tpu.memory_space<vmem>>, vector<64x32xbf16>
    %cst_80 = arith.constant dense<0.000000e+00> : vector<8x32xf32>
    %178 = tpu.matmul %176, %177, %cst_80 {dimension_numbers = #tpu.dot_dimension_numbers<[1], [0], [0], [1], [0, 0, 1, 1], [], []>} : vector<8x64xbf16>, vector<64x32xbf16>, vector<8x32xf32> -> vector<8x32xf32>
    %c0_81 = arith.constant 0 : index
    %c0_82 = arith.constant 0 : index
    %179 = vector.load %arg24[%c0_81, %c0_82] : memref<1x32xf32, #tpu.memory_space<vmem>>, vector<1x32xf32>
    %180 = vector.broadcast %179 : vector<1x32xf32> to vector<8x32xf32>
    %181 = arith.addf %178, %180 : vector<8x32xf32>
    %182 = arith.addf %145, %181 : vector<8x32xf32>
    %c0_83 = arith.constant 0 : index
    %c0_84 = arith.constant 0 : index
    %c0_85 = arith.constant 0 : index
    %183 = vector.load %arg27[%c0_83, %c0_84, %c0_85] : memref<1x8x32xf32, #tpu.memory_space<vmem>>, vector<1x8x32xf32>
    %184 = vector.shape_cast %183 : vector<1x8x32xf32> to vector<8x32xf32>
    %185 = vector.shape_cast %182 : vector<8x32xf32> to vector<1x8x32xf32>
    tpu.vector_store %arg27[%c0_83, %c0_84, %c0_85], %185 {strides = array<i32>} : memref<1x8x32xf32, #tpu.memory_space<vmem>>, vector<1x8x32xf32>,
    return
  }
  func.func @transform_0(%arg0: i32) -> (i32, i32, i32) {
    %c0_i32 = arith.constant 0 : i32
    %c0_i32_0 = arith.constant 0 : i32
    %c0_i32_1 = arith.constant 0 : i32
    return %arg0, %c0_i32, %c0_i32_0 : i32, i32, i32
  }
  func.func @transform_1(%arg0: i32) -> (i32, i32, i32) {
    %c0_i32 = arith.constant 0 : i32
    %c0_i32_0 = arith.constant 0 : i32
    %c0_i32_1 = arith.constant 0 : i32
    return %arg0, %c0_i32, %c0_i32_0 : i32, i32, i32
  }
  func.func @transform_2(%arg0: i32) -> (i32, i32, i32) {
    %c0_i32 = arith.constant 0 : i32
    %c0_i32_0 = arith.constant 0 : i32
    %c0_i32_1 = arith.constant 0 : i32
    %c0_i32_2 = arith.constant 0 : i32
    return %c0_i32, %c0_i32_0, %c0_i32_1 : i32, i32, i32
  }
  func.func @transform_3(%arg0: i32) -> (i32, i32, i32) {
    %c0_i32 = arith.constant 0 : i32
    %c0_i32_0 = arith.constant 0 : i32
    %c0_i32_1 = arith.constant 0 : i32
    %c0_i32_2 = arith.constant 0 : i32
    return %c0_i32, %c0_i32_0, %c0_i32_1 : i32, i32, i32
  }
  func.func @transform_4(%arg0: i32) -> (i32, i32) {
    %c0_i32 = arith.constant 0 : i32
    %c0_i32_0 = arith.constant 0 : i32
    %c0_i32_1 = arith.constant 0 : i32
    return %c0_i32, %c0_i32_0 : i32, i32
  }
  func.func @transform_5(%arg0: i32) -> (i32, i32) {
    %c0_i32 = arith.constant 0 : i32
    %c0_i32_0 = arith.constant 0 : i32
    %c0_i32_1 = arith.constant 0 : i32
    return %c0_i32, %c0_i32_0 : i32, i32
  }
  func.func @transform_6(%arg0: i32) -> (i32, i32) {
    %c0_i32 = arith.constant 0 : i32
    %c0_i32_0 = arith.constant 0 : i32
    %c0_i32_1 = arith.constant 0 : i32
    return %c0_i32, %c0_i32_0 : i32, i32
  }
  func.func @transform_7(%arg0: i32) -> (i32, i32) {
    %c0_i32 = arith.constant 0 : i32
    %c0_i32_0 = arith.constant 0 : i32
    %c0_i32_1 = arith.constant 0 : i32
    return %c0_i32, %c0_i32_0 : i32, i32
  }
  func.func @transform_8(%arg0: i32) -> (i32, i32) {
    %c0_i32 = arith.constant 0 : i32
    %c0_i32_0 = arith.constant 0 : i32
    %c0_i32_1 = arith.constant 0 : i32
    return %c0_i32, %c0_i32_0 : i32, i32
  }
  func.func @transform_9(%arg0: i32) -> (i32, i32) {
    %c0_i32 = arith.constant 0 : i32
    %c0_i32_0 = arith.constant 0 : i32
    %c0_i32_1 = arith.constant 0 : i32
    return %c0_i32, %c0_i32_0 : i32, i32
  }
  func.func @transform_10(%arg0: i32) -> (i32, i32) {
    %c0_i32 = arith.constant 0 : i32
    %c0_i32_0 = arith.constant 0 : i32
    %c0_i32_1 = arith.constant 0 : i32
    return %c0_i32, %c0_i32_0 : i32, i32
  }
  func.func @transform_11(%arg0: i32) -> (i32, i32) {
    %c0_i32 = arith.constant 0 : i32
    %c0_i32_0 = arith.constant 0 : i32
    %c0_i32_1 = arith.constant 0 : i32
    return %c0_i32, %c0_i32_0 : i32, i32
  }
  func.func @transform_12(%arg0: i32) -> (i32, i32) {
    %c0_i32 = arith.constant 0 : i32
    %c0_i32_0 = arith.constant 0 : i32
    %c0_i32_1 = arith.constant 0 : i32
    return %c0_i32, %c0_i32_0 : i32, i32
  }
  func.func @transform_13(%arg0: i32) -> (i32, i32) {
    %c0_i32 = arith.constant 0 : i32
    %c0_i32_0 = arith.constant 0 : i32
    %c0_i32_1 = arith.constant 0 : i32
    return %c0_i32, %c0_i32_0 : i32, i32
  }
  func.func @transform_14(%arg0: i32) -> (i32, i32) {
    %c0_i32 = arith.constant 0 : i32
    %c0_i32_0 = arith.constant 0 : i32
    %c0_i32_1 = arith.constant 0 : i32
    return %c0_i32, %c0_i32_0 : i32, i32
  }
  func.func @transform_15(%arg0: i32) -> (i32, i32) {
    %c0_i32 = arith.constant 0 : i32
    %c0_i32_0 = arith.constant 0 : i32
    %c0_i32_1 = arith.constant 0 : i32
    return %c0_i32, %c0_i32_0 : i32, i32
  }
  func.func @transform_16(%arg0: i32) -> (i32, i32) {
    %c0_i32 = arith.constant 0 : i32
    %c0_i32_0 = arith.constant 0 : i32
    %c0_i32_1 = arith.constant 0 : i32
    return %c0_i32, %c0_i32_0 : i32, i32
  }
  func.func @transform_17(%arg0: i32) -> (i32, i32) {
    %c0_i32 = arith.constant 0 : i32
    %c0_i32_0 = arith.constant 0 : i32
    %c0_i32_1 = arith.constant 0 : i32
    return %c0_i32, %c0_i32_0 : i32, i32
  }
  func.func @transform_18(%arg0: i32) -> (i32, i32) {
    %c0_i32 = arith.constant 0 : i32
    %c0_i32_0 = arith.constant 0 : i32
    %c0_i32_1 = arith.constant 0 : i32
    return %c0_i32, %c0_i32_0 : i32, i32
  }
  func.func @transform_19(%arg0: i32) -> (i32, i32) {
    %c0_i32 = arith.constant 0 : i32
    %c0_i32_0 = arith.constant 0 : i32
    %c0_i32_1 = arith.constant 0 : i32
    return %c0_i32, %c0_i32_0 : i32, i32
  }
  func.func @transform_20(%arg0: i32) -> (i32, i32) {
    %c0_i32 = arith.constant 0 : i32
    %c0_i32_0 = arith.constant 0 : i32
    %c0_i32_1 = arith.constant 0 : i32
    return %c0_i32, %c0_i32_0 : i32, i32
  }
  func.func @transform_21(%arg0: i32) -> (i32, i32) {
    %c0_i32 = arith.constant 0 : i32
    %c0_i32_0 = arith.constant 0 : i32
    %c0_i32_1 = arith.constant 0 : i32
    return %c0_i32, %c0_i32_0 : i32, i32
  }
  func.func @transform_22(%arg0: i32) -> (i32, i32) {
    %c0_i32 = arith.constant 0 : i32
    %c0_i32_0 = arith.constant 0 : i32
    %c0_i32_1 = arith.constant 0 : i32
    return %c0_i32, %c0_i32_0 : i32, i32
  }
  func.func @transform_23(%arg0: i32) -> (i32, i32) {
    %c0_i32 = arith.constant 0 : i32
    %c0_i32_0 = arith.constant 0 : i32
    %c0_i32_1 = arith.constant 0 : i32
    return %c0_i32, %c0_i32_0 : i32, i32
  }
  func.func @transform_24(%arg0: i32) -> (i32, i32) {
    %c0_i32 = arith.constant 0 : i32
    %c0_i32_0 = arith.constant 0 : i32
    %c0_i32_1 = arith.constant 0 : i32
    return %c0_i32, %c0_i32_0 : i32, i32
  }
  func.func @transform_25(%arg0: i32) -> (i32, i32) {
    %c0_i32 = arith.constant 0 : i32
    %c0_i32_0 = arith.constant 0 : i32
    %c0_i32_1 = arith.constant 0 : i32
    return %c0_i32, %c0_i32_0 : i32, i32
  }
  func.func @transform_26(%arg0: i32) -> (i32, i32, i32) {
    %c0_i32 = arith.constant 0 : i32
    %c0_i32_0 = arith.constant 0 : i32
    %c0_i32_1 = arith.constant 0 : i32
    return %arg0, %c0_i32, %c0_i32_0 : i32, i32, i32
  }
}

</mosaic_0001>

<bundles_post_ra>
// kernel: decoder_forward.3
= control target key start
LH: loop header
LB: loop body
LE: loop exit
PB: predicated region body
PF: predicated region fallthrough
CT: control target
= control target key end

     0   :  { %s4979_s0 = inlined_call_operand.vmem [shape: f32[2,8,32], index: 0, kind: input, shape index: {}]   ;;  %s4980_s1 = inlined_call_operand.vmem [shape: bf16[2,8,32], index: 1, kind: input, shape index: {}]   ;;  %s4981_s2 = inlined_call_operand.vmem [shape: f32[1,8,8], index: 2, kind: input, shape index: {}]   ;;  %s4982_s3 = inlined_call_operand.vmem [shape: f32[1,1,8], index: 3, kind: input, shape index: {}]   ;;  %s4983_s4 = inlined_call_operand.hbm [shape: f32[1,32], index: 4, kind: input, shape index: {}]   ;;  %s4984_s5 = inlined_call_operand.hbm [shape: f32[1,32], index: 5, kind: input, shape index: {}]   ;;  %s4985_s6 = inlined_call_operand.vmem [shape: bf16[32,96], index: 6, kind: input, shape index: {}]   ;;  %s4986_s7 = inlined_call_operand.hbm [shape: f32[1,96], index: 7, kind: input, shape index: {}]   ;;  %s4987_s8 = inlined_call_operand.vmem [shape: bf16[32,32], index: 8, kind: input, shape index: {}]   ;;  %s4988_s9 = inlined_call_operand.hbm [shape: f32[1,32], index: 9, kind: input, shape index: {}]   ;;  %s4989_s10 = inlined_call_operand.hbm [shape: f32[1,32], index: 10, kind: input, shape index: {}]   ;;  %s4990_s11 = inlined_call_operand.hbm [shape: f32[1,32], index: 11, kind: input, shape index: {}]   ;;  %s4991_s12 = inlined_call_operand.vmem [shape: bf16[32,32], index: 12, kind: input, shape index: {}]   ;;  %s4992_s13 = inlined_call_operand.hbm [shape: f32[1,32], index: 13, kind: input, shape index: {}]   ;;  %s4993_s14 = inlined_call_operand.vmem [shape: bf16[32,64], index: 14, kind: input, shape index: {}]   ;;  %s4994_s15 = inlined_call_operand.hbm [shape: f32[1,64], index: 15, kind: input, shape index: {}]   ;;  %s4995_s16 = inlined_call_operand.hbm [shape: bf16[32,32], index: 16, kind: input, shape index: {}]   ;;  %s4996_s17 = inlined_call_operand.hbm [shape: f32[1,32], index: 17, kind: input, shape index: {}]   ;;  %s4997_s18 = inlined_call_operand.hbm [shape: f32[1,32], index: 18, kind: input, shape index: {}]   ;;  %s4998_s19 = inlined_call_operand.hbm [shape: f32[1,32], index: 19, kind: input, shape index: {}]   ;;  %s4999_s20 = inlined_call_operand.hbm [shape: bf16[32,64], index: 20, kind: input, shape index: {}]   ;;  %s5000_s21 = inlined_call_operand.hbm [shape: f32[1,64], index: 21, kind: input, shape index: {}]   ;;  %s5001_s22 = inlined_call_operand.vmem [shape: bf16[64,32], index: 22, kind: input, shape index: {}]   ;;  %s5002_s23 = inlined_call_operand.hbm [shape: f32[1,32], index: 23, kind: input, shape index: {}]   ;;  %s5003_s24 = inlined_call_operand.vmem [shape: f32[1,32], index: 24, kind: input, shape index: {}]   ;;  %s5004_s25 = inlined_call_operand.vmem [shape: f32[1,32], index: 25, kind: input, shape index: {}]   ;;  %s5005_s26 = inlined_call_operand.hbm [shape: f32[2,8,32], index: 26, kind: output, shape index: {}]  }
   0x1   :  { %5019 = sst [smem:[#allocation43_spill]] %s4979_s0 }
   0x2   :  { %5020 = sst [smem:[#allocation44_spill]] %s4980_s1 }
   0x3   :  { %5021 = sst [smem:[#allocation45_spill]] %s4981_s2 }
   0x4   :  { %5022 = sst [smem:[#allocation46_spill]] %s4982_s3 }
   0x5   :  { %5023 = sst [smem:[#allocation47_spill]] %s4983_s4 }
   0x6   :  { %5024 = sst [smem:[#allocation48_spill]] %s4984_s5 }
   0x7   :  { %5025 = sst [smem:[#allocation49_spill]] %s4985_s6 }
   0x8   :  { %5026 = sst [smem:[#allocation50_spill]] %s4986_s7 }
   0x9   :  { %5027 = sst [smem:[#allocation51_spill]] %s4987_s8 }
   0xa   :  { %5028 = sst [smem:[#allocation52_spill]] %s4988_s9 }
   0xb   :  { %5029 = sst [smem:[#allocation53_spill]] %s4989_s10 }
   0xc   :  { %5030 = sst [smem:[#allocation54_spill]] %s4990_s11 }
   0xd   :  { %5031 = sst [smem:[#allocation55_spill]] %s4994_s15 }
   0xe   :  { %5032 = sst [smem:[#allocation56_spill]] %s5004_s25 }
   0xf   :  { %5033 = sst [smem:[#allocation57_spill]] %s5005_s26 }
  0x10   :  { %31 = vsyncpa [#allocation3], 0 }
  0x11   :  { %32 = vsyncpa [#allocation6], 0 }
  0x12   :  { %33 = vsyncpa [#allocation9], 0 }
  0x13   :  { %34 = vsyncpa [#allocation12], 0 }
  0x14   :  { %35 = vsyncpa [#allocation15], 0 }
  0x15   :  { %36 = vsyncpa [#allocation18], 0 }
  0x16   :  { %37 = vsyncpa [#allocation21], 0 }
  0x17   :  { %38 = vsyncpa [#allocation24], 0 }
  0x18   :  { %39 = vsyncpa [#allocation4], 0 }
  0x19   :  { %41 = vsyncpa [#allocation4 + $0x1], 0  ;;  %s4266_s27 = smov 0   ;;  %s4268_s3 = smov 0  }
  0x1a   :  { %s4270_s7 = smov 0   ;;  %s4272_s28 = smov 0  }
  0x1b LB: > { %5034 = sst [smem:[#allocation36_spill]] %s4089_s27  ;;  %s4287_s8 = sadd.s32 4294967295, %s4101_s28   ;;  %s4101_s28 = sphi %s4272_s28, %s5067_s28   ;;  %s4097_s7 = sphi %s4270_s7, %s5069_s7   ;;  %s4093_s3 = sphi %s4268_s3, %s5071_s3   ;;  %s4089_s27 = sphi %s4266_s27, %s5070_s27  }
  0x1c   : > { %5035 = sst [smem:[#allocation37_spill]] %s4097_s7  ;;  %s3144_s4 = sadd.s32 4294967294, %s4101_s28  }
  0x1d   : > { %5036 = sst [smem:[#allocation38_spill]] %s4101_s28  ;;  %s4291_s29 = sadd.s32 1, %s4101_s28  }
  0x1e   : > { %5037 = sst [smem:[#allocation39_spill]] %s4291_s29  ;;  %s610_s0 = sadd.s32 1, %s4097_s7 }
  0x1f   : > { %s607_s9 = ssub.s32 %s4101_s28, %s4291_s29  ;;  %p620_p0 = scmp.ne.s32.totalorder %s4097_s7, %s4093_s3 }
  0x20   : > { %p608_p1 = scmp.eq.s32.totalorder %s607_s9, 0  ;;  %p621_p2 = scmp.eq.s32.totalorder %s4287_s8, 1 }
  0x21   : > { %p626_p3 = scmp.ne.s32.totalorder %s4093_s3, %s4089_s27  ;;  %p627_p4 = scmp.eq.s32.totalorder %s3144_s4, 1 }
  0x22   : > { %s4302_s30 = scalar_select %p608_p1, %s4097_s7, %s610_s0  }
  0x23   : > { %p4304_p5 = por %p621_p2, %p620_p0  ;;  %p4308_p6 = por %p627_p4, %p626_p3 }
  0x24   : > { %5038 = sst [smem:[#allocation40_spill]] %s4302_s30  ;;  %p3145_p7 = scmp.ge.s32.totalorder %s4101_s28, 1 }
  0x25   : > { %s5039_s2 = scalar_select %p4304_p5, 1, 0 }
  0x26   : > { %s5041_s5 = scalar_select %p4308_p6, 1, 0 }
  0x27   : > { %5040 = sst [smem:[#allocation41_spill]] %s5039_s2  ;;  %p634_p8 = scmp.lt.s32.totalorder %s4101_s28, 3 }
  0x28   : > { %5042 = sst [smem:[#allocation42_spill]] %s5041_s5  ;;  %p3400_p9 = scmp.eq.s32.totalorder %s4287_s8, 0 }
  0x29   : > { %p4315_p10 = pnand %p3145_p7, %p634_p8  ;;  %s5044_s4 = sld [smem:[#allocation48_spill]] }
  0x2a   : > { %s4103_s9 = smov [#allocation5]   ;;  %s5045_s5 = sld [smem:[#allocation52_spill]] }
  0x2b   : > { %p3350_p11 = pneg %p4315_p10  ;;  %s666_s30 = sshll.u32 %s4103_s9, 4  ;;  %s667_s30 = int_to_ptr.vmem [resolvable:$true] %s666_s30 }
  0x2c   : > { %s5047_s11 = sld [smem:[#allocation54_spill]]  ;;  %s4104_s2 = smov [#allocation8]  }
  0x2d   : > { %p4329_p12 = pnand %p3400_p9, %p3350_p11  ;;  %s696_s9 = sshll.u32 %s4104_s2, 4  ;;  %s697_s9 = int_to_ptr.vmem [resolvable:$true] %s696_s9 }
  0x2e   : > { %s5048_s15 = sld [smem:[#allocation55_spill]]  ;;  %s4105_s25 = smov [#allocation11]  }
  0x2f   : > { %s664_s0 = sshll.u32 %s5044_s4, 4  ;;  %s720_s26 = sshll.u32 %s4105_s25, 4  ;;  %s665_s0 = int_to_ptr.hbm [resolvable:$true] %s664_s0  ;;  %s721_s26 = int_to_ptr.vmem [resolvable:$true] %s720_s26 }
  0x30   : > { %s694_s27 = sshll.u32 %s5045_s5, 4  ;;  %s4106_s6 = smov [#allocation14]   ;;  %s695_s27 = int_to_ptr.hbm [resolvable:$true] %s694_s27 }
  0x31   : > { %3356 = dma.hbm_to_vmem [thread:$0]  (!%p4329_p12), %s665_s0, 16, %s667_s30, [#allocation6]  }
  0x32   : > { %s718_s4 = sshll.u32 %s5047_s11, 4  ;;  %s750_s2 = sshll.u32 %s4106_s6, 4  ;;  %s719_s4 = int_to_ptr.hbm [resolvable:$true] %s718_s4  ;;  %s751_s2 = int_to_ptr.vmem [resolvable:$true] %s750_s2 }
  0x33   : > { %3362 = dma.hbm_to_vmem [thread:$0]  (!%p4329_p12), %s695_s27, 16, %s697_s9, [#allocation9]  }
  0x34   : > { %s748_s5 = sshll.u32 %s5048_s15, 4  ;;  %s774_s30 = sshll.u32 %s4996_s17, 4  ;;  %s749_s5 = int_to_ptr.hbm [resolvable:$true] %s748_s5  ;;  %s775_s30 = int_to_ptr.hbm [resolvable:$true] %s774_s30 }
  0x35   : > { %3368 = dma.hbm_to_vmem [thread:$0]  (!%p4329_p12), %s719_s4, 16, %s721_s26, [#allocation12]  }
  0x36   : > { %3374 = dma.hbm_to_vmem [thread:$0]  (!%p4329_p12), %s749_s5, 16, %s751_s2, [#allocation15]  }
  0x37   : > { %s798_s9 = sshll.u32 %s4998_s19, 4  ;;  %s4107_s25 = smov [#allocation17]   ;;  %s799_s9 = int_to_ptr.hbm [resolvable:$true] %s798_s9 }
  0x38   : > { %s776_s7 = sshll.u32 %s4107_s25, 4  ;;  %s4108_s26 = smov [#allocation20]   ;;  %s777_s7 = int_to_ptr.vmem [resolvable:$true] %s776_s7 }
  0x39   : > { %3380 = dma.hbm_to_vmem [thread:$0]  (!%p4329_p12), %s775_s30, 16, %s777_s7, [#allocation18]  }
  0x3a   : > { %s800_s4 = sshll.u32 %s4108_s26, 4  ;;  %s824_s6 = sshll.u32 %s5000_s21, 4  ;;  %s801_s4 = int_to_ptr.vmem [resolvable:$true] %s800_s4  ;;  %s825_s6 = int_to_ptr.hbm [resolvable:$true] %s824_s6 }
  0x3b   : > { %3386 = dma.hbm_to_vmem [thread:$0]  (!%p4329_p12), %s799_s9, 16, %s801_s4, [#allocation21]  }
  0x3c   : > { %s5049_s1 = sld [smem:[#allocation47_spill]]  ;;  %s4109_s0 = smov [#allocation23]  }
  0x3d   : > { %s826_s25 = sshll.u32 %s4109_s0, 4  ;;  %s4110_s30 = smov [#allocation2]   ;;  %s827_s25 = int_to_ptr.vmem [resolvable:$true] %s826_s25 }
  0x3e   : > { %3392 = dma.hbm_to_vmem [thread:$0]  (!%p4329_p12), %s825_s6, 16, %s827_s25, [#allocation24]  }
  0x3f   : > { %s654_s7 = sshll.u32 %s4110_s30, 4  ;;  %s5050_s29 = sld [smem:[#allocation50_spill]]  ;;  %s655_s7 = int_to_ptr.vmem [resolvable:$true] %s654_s7 }
  0x40   : > { %s5051_s5 = sld [smem:[#allocation53_spill]]  ;;  %s4112_s6 = smov [#allocation10]  }
  0x41   : > { %s708_s25 = sshll.u32 %s4112_s6, 4  ;;  %s733_s11 = sshll.u32 %s4992_s13, 4  ;;  %s709_s25 = int_to_ptr.vmem [resolvable:$true] %s708_s25  ;;  %s734_s11 = int_to_ptr.hbm [resolvable:$true] %s733_s11 }
  0x42   : > { %s652_s27 = sshll.u32 %s5049_s1, 4  ;;  %s4111_s1 = smov [#allocation7]   ;;  %s653_s27 = int_to_ptr.hbm [resolvable:$true] %s652_s27 }
  0x43   : > { %3353 = dma.hbm_to_vmem [thread:$0]  (!%p4329_p12), %s653_s27, 16, %s655_s7, [#allocation3]  }
  0x44   : > { %s681_s0 = sshll.u32 %s4111_s1, 4  ;;  %s4113_s9 = smov [#allocation13]   ;;  %s682_s0 = int_to_ptr.vmem [resolvable:$true] %s681_s0 }
  0x45   : > { %s679_s15 = sshll.u32 %s5050_s29, 4  ;;  %s759_s29 = sshll.u32 %s4995_s16, 4  ;;  %s680_s15 = int_to_ptr.hbm [resolvable:$true] %s679_s15  ;;  %s760_s29 = int_to_ptr.hbm [resolvable:$true] %s759_s29 }
  0x46   : > { %s706_s2 = sshll.u32 %s5051_s5, 4  ;;  %s735_s4 = sshll.u32 %s4113_s9, 4  ;;  %s707_s2 = int_to_ptr.hbm [resolvable:$true] %s706_s2  ;;  %s736_s4 = int_to_ptr.vmem [resolvable:$true] %s735_s4 }
  0x47   : > { %3359 = dma.hbm_to_vmem [thread:$0]  (!%p4329_p12), %s680_s15, 16, %s682_s0, [#allocation6]  }
  0x48   : > { %3365 = dma.hbm_to_vmem [thread:$0]  (!%p4329_p12), %s707_s2, 16, %s709_s25, [#allocation9]  }
  0x49   : > { %3371 = dma.hbm_to_vmem [thread:$0]  (!%p4329_p12), %s734_s11, 16, %s736_s4, [#allocation12]  }
  0x4a   : > { %s4114_s15 = smov [#allocation16]   ;;  %s4115_s1 = smov 64  }
  0x4b   : > { %s761_s5 = sshll.u32 %s4114_s15, 4  ;;  %s4116_s0 = smov 4   ;;  %s762_s5 = int_to_ptr.vmem [resolvable:$true] %s761_s5 }
  0x4c   : > { %3377 = dma.hbm_to_vmem [thread:$0]  (!%p4329_p12), %s760_s29, 256, %s762_s5, [#allocation15], %s4115_s1, %s4115_s1, %s4116_s0  }
  0x4d   : > { %s786_s25 = sshll.u32 %s4997_s18, 4  ;;  %s4117_s30 = smov [#allocation19]   ;;  %s787_s25 = int_to_ptr.hbm [resolvable:$true] %s786_s25 }
  0x4e   : > { %s788_s26 = sshll.u32 %s4117_s30, 4  ;;  %s809_s11 = sshll.u32 %s4999_s20, 4  ;;  %s789_s26 = int_to_ptr.vmem [resolvable:$true] %s788_s26  ;;  %s810_s11 = int_to_ptr.hbm [resolvable:$true] %s809_s11 }
  0x4f   : > { %3383 = dma.hbm_to_vmem [thread:$0]  (!%p4329_p12), %s787_s25, 16, %s789_s26, [#allocation18]  }
  0x50   : > { %s4118_s9 = smov [#allocation22]   ;;  %s839_s5 = sshll.u32 %s5002_s23, 4  ;;  %s840_s5 = int_to_ptr.hbm [resolvable:$true] %s839_s5 }
  0x51   : > { %s811_s4 = sshll.u32 %s4118_s9, 4  ;;  %s4119_s2 = smov [#allocation25]   ;;  %s812_s4 = int_to_ptr.vmem [resolvable:$true] %s811_s4 }
  0x52   : > { %3389 = dma.hbm_to_vmem [thread:$0]  (!%p4329_p12), %s810_s11, 256, %s812_s4, [#allocation21], %s4115_s1, %s4115_s1, %s4116_s0  }
  0x53   : > { %s841_s6 = sshll.u32 %s4119_s2, 4  ;;  %874 = sbr.rel (%p4315_p10) target bundleno = 3890 (0xf32), region = 124  ;;  %s842_s6 = int_to_ptr.vmem [resolvable:$true] %s841_s6 }
  0x54   : > { %3395 = dma.hbm_to_vmem [thread:$0]  (!%p4329_p12), %s840_s5, 16, %s842_s6, [#allocation24]  }
  0x58   : > { %4052 = dma.done.wait (%p3400_p9), [#allocation3], 16  }
  0x59   : > { %4054 = vsyncadd (%p3400_p9), [#allocation3], 4294967280 }
  0x5a   : > { %4056 = dma.done.wait (%p3400_p9), [#allocation6], 32  }
  0x5b   : > { %4058 = vsyncadd (%p3400_p9), [#allocation6], 4294967264 }
  0x5c   : > { %4060 = dma.done.wait (%p3400_p9), [#allocation9], 32  }
  0x5d   : > { %4062 = vsyncadd (%p3400_p9), [#allocation9], 4294967264 }
  0x5e   : > { %4064 = dma.done.wait (%p3400_p9), [#allocation12], 32  }
  0x5f   : > { %4066 = vsyncadd (%p3400_p9), [#allocation12], 4294967264 }
  0x60   : > { %4068 = dma.done.wait (%p3400_p9), [#allocation15], 272  }
  0x61   : > { %4070 = vsyncadd (%p3400_p9), [#allocation15], 4294967024 }
  0x62   : > { %4072 = dma.done.wait (%p3400_p9), [#allocation18], 32  }
  0x63   : > { %4074 = vsyncadd (%p3400_p9), [#allocation18], 4294967264 }
  0x64   : > { %4076 = dma.done.wait (%p3400_p9), [#allocation21], 272  }
  0x65   : > { %4078 = vsyncadd (%p3400_p9), [#allocation21], 4294967024 }
  0x66   : > { %4080 = dma.done.wait (%p3400_p9), [#allocation24], 32  }
  0x67   : > { %4082 = vsyncadd (%p3400_p9), [#allocation24], 4294967264  ;;  %p1018_p13 = scmp.lt.s32.totalorder %s4287_s8, 1  ;;  %s5052_s25 = sld [smem:[#allocation43_spill]]  ;;  %vm1030_vm0 = vcmask 261120   ;;  %v4120_v2 = vmov 32.0  }
  0x68   : > { %3507 = vrcp.f32 %v4120_v2  ;;  %s5053_s7 = sld [smem:[#allocation49_spill]]  ;;  %v3491_v33 = vld [vmem:[#allocation2] ss:$0 sm:$0xff]  ;;  %v3492_v40 = vld [vmem:[#allocation5] ss:$0 sm:$0xff]  ;;  %s4121_s15 = smov 104  }
  0x69   : > { %s4438_s28 = scalar_select %p1018_p13, %s4287_s8, 1  ;;  %v3493_v45 = vld [vmem:[#allocation7] ss:$0 sm:$0xff]  ;;  %v4126_v58 = vmov 1983009808   ;;  %vm1159_vm8 = vcmask 1047556  }
  0x6a   : > { %s4122_s29 = smov 120   ;;  %s4123_s5 = smov 96   ;;  %v1150_v59 = vunpack.c.l.s4 %v4126_v58  ;;  %vm1503_vm9 = vcmask 64512   ;;  %vm1631_vm10 = vcmask 1043456   ;;  %vm1829_vm11 = vcmask 130048  }
  0x6b   : > { %s3179_s10 = sshll.u32 %s4438_s28, 3  ;;  %s4124_s2 = smov 112   ;;  %vm1831_vm12 = vcmask 195584  }
  0x6c   : > { %s4125_s6 = smov 64   ;;  %s5055_s0 = sld [smem:[#allocation45_spill]] }
  0x6d   : > { %s1021_s30 = scalar_lea.vmem %s5052_s25, %s3179_s10  ;;  %s5017_s25 = smov 16  }
  0x6e   : > { %v4444_v0 = vld [vmem:[%s1021_s30] sm:$0xff]  ;;  %v3508_v3 = vpop.eup %3507  ;;  %s5054_s11 = smov %s5053_s7  ;;  %v3273_v14 = vld [vmem:[%s5053_s7 + $0x8] sm:$0xff]  ;;  %s4129_s30 = smov 24  }
  0x6f   : > { %v1031_v1 = vsel %vm1030_vm0, %v4444_v0, 0.0  ;;  %v1035_v4 = vmul.f32 32.0, %v3508_v3  ;;  %vm1039_vm1 = vweird.f32 %v3508_v3  ;;  %1114 = vmatpush.bf16.msra.mxu0 %v3273_v14  ;;  %v3272_v15 = vld [vmem:[%s5054_s11] sm:$0xff]  ;;  %s5018_s26 = smov 8   ;;  %s5056_s9 = sld [smem:[#allocation51_spill]] }
  0x70   : > { %1032 = vadd.xlane.f32.xlu0 %v1031_v1  ;;  %v4480_v1 = vunpack.c.0.s8 %v1150_v59  ;;  %s1015_s1 = sand.u32 1, %s4093_s3   ;;  %s5062_s7 = sld [smem:[#allocation56_spill]] }
  0x71   : > { %v1036_v5 = vsub.f32 1.0, %v1035_v4 }
  0x73   : > { %v1037_v6 = vmul.f32 %v3508_v3, %v1036_v5  ;;  %1115 = vmatpush.bf16.msra.mxu0 %v3272_v15 }
  0x75   : > { %v1038_v7 = vadd.f32 %v3508_v3, %v1037_v6 }
  0x77   : > { %v4448_v8 = vsel %vm1039_vm1, %v3508_v3, %v1038_v7  ;;  %v4127_v3 = vmov 1934713408  }
  0x78   : > { %v1164_v4 = vunpack.c.l.s4 %v4127_v3 }
  0x7a   : > { %v4484_v14 = vunpack.c.0.s8 %v1164_v4 }
  0xe3   : > { %v1033_v9 = vpop.xlane.xlu0 %1032 }
  0xe4   : > { %v1041_v10 = vmul.f32 %v4448_v8, %v1033_v9 }
  0xe6   : > { %v1042_v11 = vsub.f32 %v4444_v0, %v1041_v10 }
  0xe8   : > { %v1043_v12 = vmul.f32 %v1042_v11, %v1042_v11  ;;  %v1051_v38 = vmul.f32 %v3491_v33, %v1042_v11 }
  0xea   : > { %v1044_v13 = vsel %vm1030_vm0, %v1043_v12, 0.0 }
  0xeb   : > { %1045 = vadd.xlane.f32.xlu0 %v1044_v13 }
 0x15e   : > { %v1046_v16 = vpop.xlane.xlu0 %1045 }
 0x15f   : > { %v1047_v17 = vmul.f32 0.032258064, %v1046_v16 }
 0x161   : > { %3509 = vrsqrt.f32 %v1047_v17  ;;  %vm1059_vm2 = vcmp.eq.f32.partialorder %v1047_v17, inf  ;;  %v1062_v25 = vand.u32 2147483648, %v1047_v17  ;;  %vm1061_vm3 = vcmp.eq.f32.partialorder %v1047_v17, 0.0 }
 0x167   : > { %v3510_v18 = vpop.eup %3509 }
 0x168   : > { %v1053_v19 = vmul.f32 %v3510_v18, %v1047_v17 }
 0x16a   : > { %v1054_v20 = vmul.f32 %v3510_v18, %v1053_v19 }
 0x16c   : > { %v1055_v21 = vmul.f32 0.5, %v1054_v20 }
 0x16e   : > { %v1056_v22 = vsub.f32 1.5, %v1055_v21 }
 0x170   : > { %v1057_v23 = vmul.f32 %v3510_v18, %v1056_v22 }
 0x172   : > { %v1058_v24 = vmul.f32 %v1057_v23, %v1047_v17 }
 0x174   : > { %v1060_v26 = vsel %vm1059_vm2, %v1047_v17, %v1058_v24 }
 0x175   : > { %v1063_v27 = vsel %vm1061_vm3, %v1062_v25, %v1060_v26 }
 0x176   : > { %v1064_v28 = vadd.f32 1e-06, %v1063_v27 }
 0x178   : > { %3511 = vrcp.f32 %v1064_v28  ;;  %v1076_v32 = vand.u32 2147483648, %v1064_v28  ;;  %v1074_v35 = vand.u32 2147483647, %v1064_v28  ;;  %vm1070_vm5 = vweird.f32 %v1064_v28 }
 0x17a   : > { %v1077_v37 = vor.u32 1.1754944e-38, %v1076_v32  ;;  %vm1075_vm7 = vcmp.eq.f32.partialorder %v1074_v35, 8.507059e+37 }
 0x17e   : > { %v3512_v29 = vpop.eup %3511 }
 0x17f   : > { %v1066_v30 = vmul.f32 %v3512_v29, %v1064_v28  ;;  %vm1071_vm4 = vweird.f32 %v3512_v29 }
 0x180   : > { %vm1072_vm6 = vmor %vm1070_vm5, %vm1071_vm4 }
 0x181   : > { %v1067_v31 = vsub.f32 1.0, %v1066_v30 }
 0x183   : > { %v1068_v34 = vmul.f32 %v3512_v29, %v1067_v31 }
 0x185   : > { %v1069_v36 = vadd.f32 %v3512_v29, %v1068_v34 }
 0x187   : > { %v1073_v39 = vsel %vm1072_vm6, %v3512_v29, %v1069_v36 }
 0x188   : > { %v1078_v41 = vsel %vm1075_vm7, %v1077_v37, %v1073_v39 }
 0x189   : > { %v1079_v42 = vmul.f32 %v1078_v41, %v1051_v38 }
 0x18b   : > { %v1083_v43 = vadd.f32 %v3492_v40, %v1079_v42 }
 0x18d   : > { %v1084_v44 = vpack.c.bf16 %v1083_v43, %v1083_v43 }
 0x18f   : > { %3189 = vmatmul.msk.bf16.vlgmr.msra.gmra.mxu0 %vm1030_vm0, %v1084_v44 }
 0x20c   : > { %v1117_v46 = vpop.f32.mrf.mxu0 }
 0x20d   : > { %v1118_v47 = vadd.f32 %v3493_v45, %v1117_v46 }
 0x20f   : > { %v1251_v48 = vpack.c.bf16 %v1118_v47, %v1118_v47  ;;  %v1127_v50 = vmul.f32 0.35355338, %v1118_v47 }
 0x211   : > { %1257 = vrot.lane.b32.xlu2 %v1251_v48, %s4121_s15  ;;  %1253 = vrot.lane.b32.xlu1 %v1251_v48, %s4122_s29  ;;  %v1128_v51 = vpack.c.bf16 %v1127_v50, %v1127_v50 }
 0x213   : > { %v1139_v13 = vshrl.u32 %v1128_v51, 16 }
 0x214   : > { %v1119_v49 = vpop.f32.mrf.mxu0 }
 0x219   : > { %1259 = vrot.lane.b32.xlu2 %v1251_v48, %s4123_s5  ;;  %1255 = vrot.lane.b32.xlu1 %v1251_v48, %s4124_s2 }
 0x221   : > { %1130 = vrot.lane.b32.xlu1 %v1128_v51, %s4122_s29 }
 0x26b   : > { %v4465_v52 = vpop.permute.xlu2 %1257 }
 0x26c   : > { %1265 = vrot.lane.b32.xlu2 %v4465_v52, %s4123_s5 }
 0x273   : > { %v1260_v55 = vpop.permute.xlu2 %1259 }
 0x274   : > { %1132 = vrot.lane.b32.xlu2 %v1128_v51, %s4124_s2  ;;  %v1270_v61 = vshrl.u32 %v1260_v55, 16 }
 0x283   : > { %v4470_v53 = vpop.permute.xlu1 %1253 }
 0x284   : > { %1261 = vrot.lane.b32.xlu0 %v4470_v53, %s4123_s5 }
 0x28b   : > { %v4474_v54 = vpop.permute.xlu1 %1255 }
 0x28c   : > { %1381 = vrot.lane.b32.xlu0 %v1251_v48, %s4125_s6  ;;  %1263 = vrot.lane.b32.xlu1 %v4474_v54, %s4123_s5 }
 0x293   : > { %v1131_v56 = vpop.permute.xlu1 %1130 }
 0x294   : > { %1134 = vrot.lane.b32.xlu1 %v1128_v51, %s4121_s15  ;;  %v1140_v6 = vshrl.u32 %v1131_v56, 16  ;;  %v1138_v15 = vpack.i.b16 %v1131_v56, %v1128_v51 }
 0x296   : > { %v1141_v19 = vpack.i.b16 %v1140_v6, %v1139_v13  ;;  %v1152_v26 = vperm.slane %v1138_v15, %v4480_v1 }
 0x298   : > { %v1179_v30 = vperm.slane %v1141_v19, %v4480_v1  ;;  %v1161_v43 = vrot.slane %v1152_v26, 4 }
 0x29a   : > { %v1187_v47 = vrot.slane %v1179_v30, 4 }
 0x2c6   : > { %v1266_v63 = vpop.permute.xlu2 %1265 }
 0x2c7   : > { %v1277_v9 = vshrl.u32 %v1266_v63, 16 }
 0x2ce   : > { %v1133_v24 = vpop.permute.xlu2 %1132 }
 0x2cf   : > { %v1145_v35 = vshrl.u32 %v1133_v24, 16 }
 0x2f6   : > { %v1262_v57 = vpop.permute.xlu0 %1261 }
 0x2f7   : > { %v1271_v60 = vshrl.u32 %v1262_v57, 16  ;;  %v1269_v62 = vpack.i.b16 %v1262_v57, %v1260_v55 }
 0x2f9   : > { %v1272_v2 = vpack.i.b16 %v1271_v60, %v1270_v61  ;;  %v1283_v5 = vperm.slane %v1269_v62, %v4480_v1 }
 0x2fb   : > { %v1309_v10 = vperm.slane %v1272_v2, %v4480_v1  ;;  %v1291_v16 = vrot.slane %v1283_v5, 4 }
 0x2fd   : > { %v1317_v20 = vrot.slane %v1309_v10, 4 }
 0x2fe   : > { %v1264_v7 = vpop.permute.xlu1 %1263 }
 0x2ff   : > { %v1275_v11 = vpack.i.b16 %v1266_v63, %v1264_v7  ;;  %v1276_v12 = vshrl.u32 %v1264_v7, 16 }
 0x301   : > { %v1278_v17 = vpack.i.b16 %v1277_v9, %v1276_v12  ;;  %v1288_v18 = vperm.slane %v1275_v11, %v4480_v1 }
 0x303   : > { %v1289_v21 = vrot.slane %v1288_v18, 4  ;;  %v1292_v22 = vsel %vm1159_vm8, %v1288_v18, %v1291_v16  ;;  %v1314_v23 = vperm.slane %v1278_v17, %v4480_v1 }
 0x304   : > { %v1300_v25 = vperm.slane %v1292_v22, %v4484_v14 }
 0x305   : > { %v1290_v27 = vsel %vm1159_vm8, %v1289_v21, %v1283_v5  ;;  %v1315_v28 = vrot.slane %v1314_v23, 4  ;;  %v1318_v29 = vsel %vm1159_vm8, %v1314_v23, %v1317_v20 }
 0x306   : > { %v1296_v31 = vperm.slane %v1290_v27, %v4484_v14  ;;  %v1303_v32 = vrot.slane %v1300_v25, 4  ;;  %v1326_v33 = vperm.slane %v1318_v29, %v4484_v14  ;;  %v1135_v34 = vpop.permute.xlu1 %1134 }
 0x307   : > { %v1316_v36 = vsel %vm1159_vm8, %v1315_v28, %v1309_v10  ;;  %v1144_v37 = vpack.i.b16 %v1135_v34, %v1133_v24  ;;  %v1146_v38 = vshrl.u32 %v1135_v34, 16 }
 0x308   : > { %v1301_v39 = vrot.slane %v1296_v31, 4  ;;  %v1304_v40 = vsel %vm1159_vm8, 0, %v1303_v32  ;;  %v1322_v41 = vperm.slane %v1316_v36, %v4484_v14  ;;  %v1329_v42 = vrot.slane %v1326_v33, 4 }
 0x309   : > { %v1336_v44 = vrot.slane %v1304_v40, 4  ;;  %v1147_v45 = vpack.i.b16 %v1146_v38, %v1145_v35  ;;  %v1157_v46 = vperm.slane %v1144_v37, %v4480_v1  ;;  %v1331_v60 = vsel %vm1159_vm8, %v1303_v32, %v1296_v31 }
 0x30a   : > { %v1302_v48 = vsel %vm1159_vm8, 0, %v1301_v39  ;;  %v1327_v49 = vrot.slane %v1322_v41, 4  ;;  %v1330_v50 = vsel %vm1159_vm8, 0, %v1329_v42  ;;  %v1350_v7 = vsel %vm1159_vm8, %v1329_v42, %v1322_v41 }
 0x30b   : > { %v1355_v51 = vrot.slane %v1330_v50, 4  ;;  %v1158_v55 = vrot.slane %v1157_v46, 4  ;;  %v1162_v56 = vsel %vm1159_vm8, %v1157_v46, %v1161_v43  ;;  %v1184_v57 = vperm.slane %v1147_v45, %v4480_v1 }
 0x30c   : > { %v1170_v58 = vperm.slane %v1162_v56, %v4484_v14  ;;  %v1328_v59 = vsel %vm1159_vm8, 0, %v1327_v49  ;;  %v1337_v61 = vsel %vm1159_vm8, %v1336_v44, %v1302_v48  ;;  %v1335_v10 = vperm.slane %v1331_v60, %v4480_v1 }
 0x30d   : > { %v1160_v62 = vsel %vm1159_vm8, %v1158_v55, %v1152_v26  ;;  %v1185_v63 = vrot.slane %v1184_v57, 4  ;;  %v1188_v2 = vsel %vm1159_vm8, %v1184_v57, %v1187_v47  ;;  %v1341_v3 = vperm.slane %v1337_v61, %v4480_v1 }
 0x30e   : > { %v1166_v4 = vperm.slane %v1160_v62, %v4484_v14  ;;  %v1173_v5 = vrot.slane %v1170_v58, 4  ;;  %v1196_v6 = vperm.slane %v1188_v2, %v4484_v14  ;;  %v1356_v12 = vsel %vm1159_vm8, %v1355_v51, %v1328_v59 }
 0x30f   : > { %v1186_v9 = vsel %vm1159_vm8, %v1185_v63, %v1179_v30  ;;  %v1342_v11 = vrot.slane %v1341_v3, 4  ;;  %v1354_v20 = vperm.slane %v1350_v7, %v4480_v1  ;;  %v1360_v21 = vperm.slane %v1356_v12, %v4480_v1 }
 0x310   : > { %v1171_v13 = vrot.slane %v1166_v4, 4  ;;  %v1174_v15 = vsel %vm1159_vm8, 0, %v1173_v5  ;;  %v1192_v16 = vperm.slane %v1186_v9, %v4484_v14  ;;  %v1199_v17 = vrot.slane %v1196_v6, 4 }
 0x311   : > { %v1206_v18 = vrot.slane %v1174_v15, 4  ;;  %v1343_v19 = vsel %vm1159_vm8, %v1342_v11, %v1335_v10  ;;  %v1201_v26 = vsel %vm1159_vm8, %v1173_v5, %v1166_v4  ;;  %v1361_v28 = vrot.slane %v1360_v21, 4 }
 0x312   : > { %v1172_v22 = vsel %vm1159_vm8, 0, %v1171_v13  ;;  %v1197_v23 = vrot.slane %v1192_v16, 4  ;;  %v1200_v24 = vsel %vm1159_vm8, 0, %v1199_v17  ;;  %v1347_v25 = vperm.slane %v1343_v19, %v4484_v14 }
 0x313   : > { %v1225_v27 = vrot.slane %v1200_v24, 4  ;;  %v1207_v29 = vsel %vm1159_vm8, %v1206_v18, %v1172_v22  ;;  %v1362_v33 = vsel %vm1159_vm8, %v1361_v28, %v1354_v20  ;;  %v1205_v36 = vperm.slane %v1201_v26, %v4480_v1 }
 0x314   : > { %v1198_v30 = vsel %vm1159_vm8, 0, %v1197_v23  ;;  %v1348_v31 = vrot.slane %v1347_v25, 4  ;;  %v1211_v32 = vperm.slane %v1207_v29, %v4480_v1  ;;  %v1366_v35 = vperm.slane %v1362_v33, %v4484_v14  ;;  %v1382_v33 = vpop.permute.xlu0 %1381 }
 0x315   : > { %v1226_v34 = vsel %vm1159_vm8, %v1225_v27, %v1198_v30  ;;  %v1220_v38 = vsel %vm1159_vm8, %v1199_v17, %v1192_v16  ;;  %v1372_v39 = vshrl.u32 %v1347_v25, 16  ;;  %v1121_v16 = vld [vmem:[%s5055_s0] sm:$0xff]  ;;  %s3180_s0 = sshll.u32 %s4438_s28, 2 }
 0x316   : > { %v1212_v37 = vrot.slane %v1211_v32, 4  ;;  %v1349_v40 = vsel %vm1159_vm8, 0, %v1348_v31  ;;  %v1230_v41 = vperm.slane %v1226_v34, %v4480_v1  ;;  %v1371_v42 = vpack.i.b16 %v1366_v35, %v1347_v25 }
 0x317   : > { %v1373_v43 = vshrl.u32 %v1366_v35, 16  ;;  %v1367_v44 = vrot.slane %v1366_v35, 4  ;;  %v1224_v47 = vperm.slane %v1220_v38, %v4480_v1  ;;  %v1378_v56 = vshrl.u32 %v1349_v40, 16 }
 0x318   : > { %v1213_v45 = vsel %vm1159_vm8, %v1212_v37, %v1205_v36  ;;  %v1231_v48 = vrot.slane %v1230_v41, 4  ;;  %v1508_v49 = vsel %vm1503_vm9, %v1371_v42, 0 }
 0x319   : > { %v1217_v46 = vperm.slane %v1213_v45, %v4484_v14  ;;  %v1374_v50 = vpack.i.b16 %v1373_v43, %v1372_v39  ;;  %v1368_v51 = vsel %vm1159_vm8, 0, %v1367_v44  ;;  %1517 = vmatpush.bf16.xpose.msra.mxu1 %v1508_v49 }
 0x31a   : > { %v1377_v55 = vpack.i.b16 %v1368_v51, %v1349_v40  ;;  %v1379_v57 = vshrl.u32 %v1368_v51, 16  ;;  %v1232_v58 = vsel %vm1159_vm8, %v1231_v48, %v1224_v47  ;;  %v1392_v48 = vshrl.u32 %v1382_v33, 16 }
 0x31b   : > { %v1527_v59 = vsel %vm1503_vm9, %v1374_v50, 0  ;;  %v1236_v60 = vperm.slane %v1232_v58, %v4484_v14  ;;  %v1218_v61 = vrot.slane %v1217_v46, 4  ;;  %v1242_v2 = vshrl.u32 %v1217_v46, 16 }
 0x31c   : > { %1536 = vmatpush.bf16.xpose.msra.mxu2 %v1527_v59  ;;  %v1546_v62 = vsel %vm1503_vm9, %v1377_v55, 0  ;;  %v1380_v63 = vpack.i.b16 %v1379_v57, %v1378_v56 }
 0x31d   : > { %1555 = vmatpush.bf16.xpose.msra.mxu3 %v1546_v62  ;;  %v1241_v3 = vpack.i.b16 %v1236_v60, %v1217_v46  ;;  %v1243_v4 = vshrl.u32 %v1236_v60, 16  ;;  %v1219_v5 = vsel %vm1159_vm8, 0, %v1218_v61  ;;  %v1237_v6 = vrot.slane %v1236_v60, 4 }
 0x31e   : > { %v1565_v7 = vsel %vm1503_vm9, %v1380_v63, 0  ;;  %v1248_v12 = vshrl.u32 %v1219_v5, 16 }
 0x31f   : > { %1574 = vmatpush.bf16.xpose.msrb.mxu0 %v1565_v7  ;;  %v1244_v9 = vpack.i.b16 %v1243_v4, %v1242_v2  ;;  %v1238_v10 = vsel %vm1159_vm8, 0, %v1237_v6 }
 0x320   : > { %v1247_v11 = vpack.i.b16 %v1238_v10, %v1219_v5  ;;  %v1249_v13 = vshrl.u32 %v1238_v10, 16  ;;  %3190 = vmatmul.msk.bf16.vlgmr.msra.gmra.mxu1 %vm1503_vm9, %v1241_v3 }
 0x322   : > { %v1250_v15 = vpack.i.b16 %v1249_v13, %v1248_v12 }
 0x323   : > { %3191 = vmatmul.msk.bf16.vlgmr.msra.gmra.mxu2 %vm1503_vm9, %v1244_v9 }
 0x324   : > { %3192 = vmatmul.msk.bf16.vlgmr.msra.gmra.mxu3 %vm1503_vm9, %v1247_v11 }
 0x326   : > { %3193 = vmatmul.msk.bf16.vlgmr.msrb.gmra.mxu0 %vm1503_vm9, %v1250_v15 }
 0x39d   : > { %v1519_v17 = vpop.f32.mrf.mxu1 }
 0x39e   : > { %v1520_v18 = vadd.f32 %v1519_v17, %v1121_v16 }
 0x3a0   : > { %v1580_v19 = vsel %vm1503_vm9, %v1520_v18, -inf }
 0x3a1   : > { %1581 = vmax.xlane.f32.xlu1 %v1580_v19 }
 0x3a3   : > { %v1576_v20 = vpop.f32.mrf.mxu0 }
 0x3a4   : > { %v1577_v21 = vadd.f32 %v1576_v20, %v1121_v16 }
 0x3a5   : > { %v1521_v22 = vpop.f32.mrf.mxu1 }
 0x3a6   : > { %v1538_v23 = vpop.f32.mrf.mxu2  ;;  %v1589_v24 = vsel %vm1503_vm9, %v1577_v21, -inf }
 0x3a7   : > { %v1539_v25 = vadd.f32 %v1538_v23, %v1121_v16  ;;  %1590 = vmax.xlane.f32.xlu2 %v1589_v24  ;;  %v1557_v26 = vpop.f32.mrf.mxu3 }
 0x3a8   : > { %v1558_v28 = vadd.f32 %v1557_v26, %v1121_v16 }
 0x3a9   : > { %v1583_v27 = vsel %vm1503_vm9, %v1539_v25, -inf }
 0x3aa   : > { %1584 = vmax.xlane.f32.xlu0 %v1583_v27  ;;  %v1586_v31 = vsel %vm1503_vm9, %v1558_v28, -inf }
 0x3ab   : > { %v1578_v29 = vpop.f32.mrf.mxu0 }
 0x3ae   : > { %v1540_v30 = vpop.f32.mrf.mxu2 }
 0x3af   : > { %v1559_v32 = vpop.f32.mrf.mxu3  ;;  %1587 = vmax.xlane.f32.xlu2 %v1586_v31 }
 0x3ba   : > { %1385 = vrot.lane.b32.xlu1 %v4474_v54, %s4125_s6 }
 0x3be   : > { %1387 = vrot.lane.b32.xlu0 %v4465_v52, %s4125_s6 }
 0x3c7   : > { %1383 = vrot.lane.b32.xlu2 %v4470_v53, %s4125_s6 }
 0x414   : > { %v1582_v34 = vpop.xlane.xlu1 %1581 }
 0x415   : > { %v1592_v35 = vsub.f32 %v1520_v18, %v1582_v34 }
 0x417   : > { %v1596_v36 = vmul.f32 1.442695, %v1592_v35 }
 0x419   : > { %3513 = vpow2.f32 %v1596_v36 }
 0x41a   : > { %v1591_v37 = vpop.xlane.xlu2 %1590 }
 0x41b   : > { %v1595_v43 = vsub.f32 %v1577_v21, %v1591_v37 }
 0x41d   : > { %v1585_v38 = vpop.xlane.xlu0 %1584  ;;  %v1602_v45 = vmul.f32 1.442695, %v1595_v43 }
 0x41e   : > { %v1593_v39 = vsub.f32 %v1539_v25, %v1585_v38 }
 0x41f   : > { %v4565_v40 = vpop.eup %3513 }
 0x420   : > { %v1598_v41 = vmul.f32 1.442695, %v1593_v39  ;;  %v1604_v54 = vsel %vm1503_vm9, %v4565_v40, 0.0 }
 0x421   : > { %1605 = vadd.xlane.f32.xlu1 %v1604_v54 }
 0x422   : > { %3515 = vpow2.f32 %v1598_v41  ;;  %v1588_v52 = vpop.xlane.xlu2 %1587 }
 0x423   : > { %v1594_v42 = vsub.f32 %v1558_v28, %v1588_v52 }
 0x425   : > { %v1600_v53 = vmul.f32 1.442695, %v1594_v42 }
 0x427   : > { %3517 = vpow2.f32 %v1600_v53 }
 0x428   : > { %v4569_v44 = vpop.eup %3515  ;;  %3519 = vpow2.f32 %v1602_v45 }
 0x429   : > { %v1607_v46 = vsel %vm1503_vm9, %v4569_v44, 0.0 }
 0x42a   : > { %1608 = vadd.xlane.f32.xlu0 %v1607_v46  ;;  %v1384_v47 = vpop.permute.xlu2 %1383 }
 0x42b   : > { %v1391_v49 = vpack.i.b16 %v1384_v47, %v1382_v33  ;;  %v1393_v50 = vshrl.u32 %v1384_v47, 16 }
 0x42c   : > { %v1386_v56 = vpop.permute.xlu1 %1385 }
 0x42d   : > { %v4573_v51 = vpop.eup %3517  ;;  %v1394_v55 = vpack.i.b16 %v1393_v50, %v1392_v48  ;;  %v1405_v58 = vperm.slane %v1391_v49, %v4480_v1  ;;  %v1398_v61 = vshrl.u32 %v1386_v56, 16 }
 0x42e   : > { %v1610_v57 = vsel %vm1503_vm9, %v4573_v51, 0.0  ;;  %v4579_v2 = vpop.eup %3519 }
 0x42f   : > { %1611 = vadd.xlane.f32.xlu2 %v1610_v57  ;;  %v1431_v60 = vperm.slane %v1394_v55, %v4480_v1  ;;  %v1413_v3 = vrot.slane %v1405_v58, 4  ;;  %v1613_v12 = vsel %vm1503_vm9, %v4579_v2, 0.0 }
 0x430   : > { %v1388_v59 = vpop.permute.xlu0 %1387 }
 0x431   : > { %v1397_v62 = vpack.i.b16 %v1388_v59, %v1386_v56  ;;  %v1399_v63 = vshrl.u32 %v1388_v59, 16  ;;  %v1439_v6 = vrot.slane %v1431_v60, 4 }
 0x433   : > { %v1400_v4 = vpack.i.b16 %v1399_v63, %v1398_v61  ;;  %v1410_v5 = vperm.slane %v1397_v62, %v4480_v1 }
 0x435   : > { %v1411_v7 = vrot.slane %v1410_v5, 4  ;;  %v1414_v9 = vsel %vm1159_vm8, %v1410_v5, %v1413_v3  ;;  %v1436_v10 = vperm.slane %v1400_v4, %v4480_v1 }
 0x436   : > { %v1422_v11 = vperm.slane %v1414_v9, %v4484_v14 }
 0x437   : > { %v1412_v13 = vsel %vm1159_vm8, %v1411_v7, %v1405_v58  ;;  %v1437_v15 = vrot.slane %v1436_v10, 4  ;;  %v1440_v16 = vsel %vm1159_vm8, %v1436_v10, %v1439_v6  ;;  %1614 = vadd.xlane.f32.xlu2 %v1613_v12 }
 0x438   : > { %v1418_v17 = vperm.slane %v1412_v13, %v4484_v14  ;;  %v1425_v18 = vrot.slane %v1422_v11, 4  ;;  %v1448_v19 = vperm.slane %v1440_v16, %v4484_v14 }
 0x439   : > { %v1438_v20 = vsel %vm1159_vm8, %v1437_v15, %v1431_v60 }
 0x43a   : > { %v1423_v21 = vrot.slane %v1418_v17, 4  ;;  %v1426_v22 = vsel %vm1159_vm8, 0, %v1425_v18  ;;  %v1444_v23 = vperm.slane %v1438_v20, %v4484_v14  ;;  %v1451_v24 = vrot.slane %v1448_v19, 4 }
 0x43b   : > { %v1458_v25 = vrot.slane %v1426_v22, 4  ;;  %v1453_v30 = vsel %vm1159_vm8, %v1425_v18, %v1418_v17 }
 0x43c   : > { %v1424_v26 = vsel %vm1159_vm8, 0, %v1423_v21  ;;  %v1449_v27 = vrot.slane %v1444_v23, 4  ;;  %v1452_v28 = vsel %vm1159_vm8, 0, %v1451_v24  ;;  %v1472_v34 = vsel %vm1159_vm8, %v1451_v24, %v1444_v23 }
 0x43d   : > { %v1477_v29 = vrot.slane %v1452_v28, 4  ;;  %v1459_v31 = vsel %vm1159_vm8, %v1458_v25, %v1424_v26  ;;  %v1457_v36 = vperm.slane %v1453_v30, %v4480_v1  ;;  %v1476_v41 = vperm.slane %v1472_v34, %v4480_v1 }
 0x43e   : > { %v1450_v32 = vsel %vm1159_vm8, 0, %v1449_v27  ;;  %v1463_v33 = vperm.slane %v1459_v31, %v4480_v1 }
 0x43f   : > { %v1478_v35 = vsel %vm1159_vm8, %v1477_v29, %v1450_v32 }
 0x440   : > { %v1464_v37 = vrot.slane %v1463_v33, 4  ;;  %v1482_v38 = vperm.slane %v1478_v35, %v4480_v1 }
 0x442   : > { %v1465_v39 = vsel %vm1159_vm8, %v1464_v37, %v1457_v36  ;;  %v1483_v54 = vrot.slane %v1482_v38, 4 }
 0x443   : > { %v1469_v52 = vperm.slane %v1465_v39, %v4484_v14 }
 0x444   : > { %v1484_v42 = vsel %vm1159_vm8, %v1483_v54, %v1476_v41 }
 0x445   : > { %v1488_v43 = vperm.slane %v1484_v42, %v4484_v14  ;;  %v1470_v53 = vrot.slane %v1469_v52, 4  ;;  %v1494_v45 = vshrl.u32 %v1469_v52, 16 }
 0x447   : > { %v1493_v46 = vpack.i.b16 %v1488_v43, %v1469_v52  ;;  %v1495_v47 = vshrl.u32 %v1488_v43, 16  ;;  %v1471_v48 = vsel %vm1159_vm8, 0, %v1470_v53  ;;  %v1489_v49 = vrot.slane %v1488_v43, 4 }
 0x448   : > { %v1500_v58 = vshrl.u32 %v1471_v48, 16 }
 0x449   : > { %v1633_v50 = vsel %vm1631_vm10, %v1493_v46, 0  ;;  %v1496_v55 = vpack.i.b16 %v1495_v47, %v1494_v45  ;;  %v1490_v56 = vsel %vm1159_vm8, 0, %v1489_v49 }
 0x44a   : > { %1642 = vmatpush.bf16.msrb.mxu1 %v1633_v50  ;;  %v1499_v57 = vpack.i.b16 %v1490_v56, %v1471_v48  ;;  %v1501_v59 = vshrl.u32 %v1490_v56, 16 }
 0x44b   : > { %v1652_v60 = vsel %vm1631_vm10, %v1496_v55, 0 }
 0x44c   : > { %1661 = vmatpush.bf16.msrb.mxu2 %v1652_v60  ;;  %v1671_v61 = vsel %vm1631_vm10, %v1499_v57, 0  ;;  %v1502_v62 = vpack.i.b16 %v1501_v59, %v1500_v58 }
 0x44d   : > { %1680 = vmatpush.bf16.msrb.mxu3 %v1671_v61 }
 0x44e   : > { %v1690_v63 = vsel %vm1631_vm10, %v1502_v62, 0 }
 0x44f   : > { %1699 = vmatpush.bf16.msra.mxu0 %v1690_v63 }
 0x494   : > { %v1606_v3 = vpop.xlane.xlu1 %1605 }
 0x495   : > { %3521 = vrcp.f32 %v1606_v3 }
 0x49b   : > { %v3522_v4 = vpop.eup %3521 }
 0x49c   : > { %v1620_v5 = vmul.f32 %v3522_v4, %v4565_v40 }
 0x49d   : > { %v1609_v6 = vpop.xlane.xlu0 %1608 }
 0x49e   : > { %3523 = vrcp.f32 %v1609_v6  ;;  %v1624_v7 = vpack.c.bf16 %v1620_v5, %v1620_v5 }
 0x4a0   : > { %3194 = vmatmul.msk.bf16.vlgmr.msrb.gmra.mxu1 %vm1503_vm9, %v1624_v7 }
 0x4a2   : > { %v1612_v9 = vpop.xlane.xlu2 %1611 }
 0x4a3   : > { %3525 = vrcp.f32 %v1612_v9 }
 0x4a4   : > { %v3524_v10 = vpop.eup %3523 }
 0x4a5   : > { %v1621_v11 = vmul.f32 %v3524_v10, %v4569_v44 }
 0x4a7   : > { %v1625_v12 = vpack.c.bf16 %v1621_v11, %v1621_v11 }
 0x4a9   : > { %v3526_v13 = vpop.eup %3525  ;;  %3195 = vmatmul.msk.bf16.vlgmr.msrb.gmra.mxu2 %vm1503_vm9, %v1625_v12 }
 0x4aa   : > { %v1622_v15 = vmul.f32 %v3526_v13, %v4573_v51  ;;  %v1615_v16 = vpop.xlane.xlu2 %1614 }
 0x4ab   : > { %3527 = vrcp.f32 %v1615_v16 }
 0x4ac   : > { %v1626_v17 = vpack.c.bf16 %v1622_v15, %v1622_v15 }
 0x4ae   : > { %3196 = vmatmul.msk.bf16.vlgmr.msrb.gmra.mxu3 %vm1503_vm9, %v1626_v17 }
 0x4b1   : > { %v3528_v40 = vpop.eup %3527 }
 0x4b2   : > { %v1623_v18 = vmul.f32 %v3528_v40, %v4579_v2 }
 0x4b4   : > { %v1627_v19 = vpack.c.bf16 %v1623_v18, %v1623_v18 }
 0x4b6   : > { %3197 = vmatmul.msk.bf16.vlgmr.msra.gmra.mxu0 %vm1503_vm9, %v1627_v19 }
 0x51d   : > { %v1644_v20 = vpop.f32.mrf.mxu1 }
 0x51e   : > { %v1708_v22 = vrot.slane %v1644_v20, 4 }
 0x525   : > { %v1646_v21 = vpop.f32.mrf.mxu1 }
 0x52c   : > { %v1663_v44 = vpop.f32.mrf.mxu2 }
 0x52d   : > { %v1720_v24 = vrot.slane %v1663_v44, 4 }
 0x531   : > { %v1682_v23 = vpop.f32.mrf.mxu3 }
 0x532   : > { %v1705_v25 = vrot.slane %v1682_v23, 4  ;;  %v1709_v51 = vsel %vm1159_vm8, %v1682_v23, %v1708_v22 }
 0x533   : > { %v1717_v26 = vperm.slane %v1709_v51, %v4480_v1  ;;  %v1701_v27 = vpop.f32.mrf.mxu0 }
 0x534   : > { %v1707_v28 = vsel %vm1159_vm8, %v1705_v25, %v1644_v20  ;;  %v1718_v29 = vrot.slane %v1701_v27, 4  ;;  %v1721_v2 = vsel %vm1159_vm8, %v1701_v27, %v1720_v24  ;;  %v1665_v30 = vpop.f32.mrf.mxu2 }
 0x535   : > { %v1713_v31 = vperm.slane %v1707_v28, %v4480_v1  ;;  %v1744_v32 = vrot.slane %v1717_v26, 4  ;;  %v1729_v33 = vperm.slane %v1721_v2, %v4480_v1  ;;  %v3275_v28 = vld [vmem:[%s5056_s9 + $0x8] sm:$0xff] }
 0x536   : > { %v1719_v34 = vsel %vm1159_vm8, %v1718_v29, %v1663_v44  ;;  %1858 = vmatpush.bf16.msra.mxu1 %v3275_v28  ;;  %v3274_v29 = vld [vmem:[%s5056_s9] sm:$0xff] }
 0x537   : > { %v1732_v35 = vrot.slane %v1713_v31, 4  ;;  %v1725_v36 = vperm.slane %v1719_v34, %v4480_v1  ;;  %v1742_v37 = vrot.slane %v1729_v33, 4  ;;  %v1745_v38 = vsel %vm1159_vm8, %v1729_v33, %v1744_v32 }
 0x538   : > { %v1753_v39 = vperm.slane %v1745_v38, %v4484_v14 }
 0x539   : > { %v1730_v41 = vrot.slane %v1725_v36, 4  ;;  %v1733_v54 = vsel %vm1159_vm8, %v1725_v36, %v1732_v35  ;;  %v1743_v52 = vsel %vm1159_vm8, %v1742_v37, %v1717_v26  ;;  %v1684_v42 = vpop.f32.mrf.mxu3  ;;  %v3494_v36 = vld [vmem:[#allocation8] ss:$0 sm:$0xff] }
 0x53a   : > { %v1741_v43 = vperm.slane %v1733_v54, %v4484_v14  ;;  %v1749_v53 = vperm.slane %v1743_v52, %v4484_v14  ;;  %v1760_v45 = vrot.slane %v1753_v39, 4  ;;  %1859 = vmatpush.bf16.msra.mxu1 %v3274_v29  ;;  %v3279_v52 = vld [vmem:[%s4993_s14 + $0x8] sm:$0xff]  ;;  %v3278_v42 = vld [vmem:[%s4993_s14] sm:$0xff] }
 0x53b   : > { %v1731_v46 = vsel %vm1159_vm8, %v1730_v41, %v1713_v31  ;;  %v1703_v47 = vpop.f32.mrf.mxu0  ;;  %1981 = vmatpush.bf16.msra.mxu3 %v3279_v52 }
 0x53c   : > { %v1737_v48 = vperm.slane %v1731_v46, %v4484_v14  ;;  %v1756_v49 = vrot.slane %v1741_v43, 4  ;;  %v1758_v50 = vrot.slane %v1749_v53, 4  ;;  %v1761_v55 = vsel %vm1159_vm8, 0.0, %v1760_v45 }
 0x53d   : > { %v1773_v56 = vsel %vm1159_vm8, %v1760_v45, %v1749_v53  ;;  %v1778_v57 = vrot.slane %v1761_v55, 4 }
 0x53e   : > { %v1754_v58 = vrot.slane %v1737_v48, 4  ;;  %v1757_v59 = vsel %vm1159_vm8, 0.0, %v1756_v49  ;;  %v1759_v60 = vsel %vm1159_vm8, 0.0, %v1758_v50  ;;  %v1777_v61 = vperm.slane %v1773_v56, %v4480_v1 }
 0x53f   : > { %v1767_v62 = vrot.slane %v1757_v59, 4  ;;  %v1762_v63 = vsel %vm1159_vm8, %v1756_v49, %v1737_v48  ;;  %v1779_v3 = vsel %vm1159_vm8, %v1778_v57, %v1759_v60  ;;  %1982 = vmatpush.bf16.msra.mxu3 %v3278_v42  ;;  %v3277_v48 = vld [vmem:[%s4991_s12 + $0x8] sm:$0xff]  ;;  %v3276_v49 = vld [vmem:[%s4991_s12] sm:$0xff] }
 0x540   : > { %v1755_v4 = vsel %vm1159_vm8, 0.0, %v1754_v58  ;;  %v1766_v5 = vperm.slane %v1762_v63, %v4480_v1  ;;  %v1783_v6 = vperm.slane %v1779_v3, %v4480_v1  ;;  %v1798_v7 = vrot.slane %v1777_v61, 4  ;;  %1945 = vmatpush.bf16.msra.mxu2 %v3277_v48 }
 0x541   : > { %v1768_v9 = vsel %vm1159_vm8, %v1767_v62, %v1755_v4 }
 0x542   : > { %v1772_v10 = vperm.slane %v1768_v9, %v4480_v1  ;;  %v1786_v11 = vrot.slane %v1766_v5, 4  ;;  %v1799_v12 = vsel %vm1159_vm8, %v1783_v6, %v1798_v7  ;;  %v1796_v13 = vrot.slane %v1783_v6, 4 }
 0x543   : > { %v1807_v15 = vperm.slane %v1799_v12, %v4484_v14 }
 0x544   : > { %v1787_v16 = vsel %vm1159_vm8, %v1772_v10, %v1786_v11  ;;  %v1784_v17 = vrot.slane %v1772_v10, 4  ;;  %v1797_v40 = vsel %vm1159_vm8, %v1796_v13, %v1777_v61  ;;  %1946 = vmatpush.bf16.msra.mxu2 %v3276_v49  ;;  %v3497_v61 = vld [vmem:[#allocation14] ss:$0 sm:$0xff] }
 0x545   : > { %v1795_v18 = vperm.slane %v1787_v16, %v4484_v14  ;;  %v1812_v19 = vrot.slane %v1807_v15, 4  ;;  %v1803_v20 = vperm.slane %v1797_v40, %v4484_v14 }
 0x546   : > { %v1785_v21 = vsel %vm1159_vm8, %v1784_v17, %v1766_v5  ;;  %v3495_v17 = vld [vmem:[#allocation10] ss:$0 sm:$0xff] }
 0x547   : > { %v1813_v44 = vsel %vm1159_vm8, %v1812_v19, %v1795_v18  ;;  %v1814_v22 = vrot.slane %v1795_v18, 4  ;;  %v1791_v23 = vperm.slane %v1785_v21, %v4484_v14  ;;  %v1808_v24 = vrot.slane %v1803_v20, 4 }
 0x548   : > { %1821 = vrot.lane.b32.xlu1 %v1813_v44, %s5017_s25  ;;  %s5057_s25 = sld [smem:[#allocation44_spill]] }
 0x549   : > { %v1815_v25 = vsel %vm1159_vm8, %v1807_v15, %v1814_v22  ;;  %v1810_v51 = vrot.slane %v1791_v23, 4  ;;  %v1809_v26 = vsel %vm1159_vm8, %v1808_v24, %v1791_v23  ;;  %v3496_v22 = vld [vmem:[#allocation11] ss:$0 sm:$0xff] }
 0x54a   : > { %1825 = vrot.lane.b32.xlu2 %v1815_v25, %s4129_s30 }
 0x54b   : > { %v1811_v27 = vsel %vm1159_vm8, %v1803_v20, %v1810_v51 }
 0x54c   : > { %1817 = vrot.lane.b32.xlu0 %v1811_v27, %s5018_s26 }
 0x54e   : > { %s1025_s26 = scalar_lea.vmem %s5057_s25, %s3180_s0  ;;  %s3178_s25 = sshll.u32 %s1015_s1, 3 }
 0x54f   : > { %s1017_s6 = scalar_lea.vmem [#allocation26], %s3178_s25 }
 0x550   : > { %s2925_s28 = sshll.u32 %s1017_s6, 4  ;;  %s2926_s28 = int_to_ptr.vmem [resolvable:$true] %s2925_s28 }
 0x5a4   : > { %v1826_v32 = vpop.permute.xlu2 %1825 }
 0x5ba   : > { %v1822_v30 = vpop.permute.xlu1 %1821 }
 0x5be   : > { %v1818_v2 = vpop.permute.xlu0 %1817 }
 0x5bf   : > { %v1828_v31 = vsel %vm1503_vm9, %v1809_v26, %v1818_v2 }
 0x5c0   : > { %v1830_v33 = vsel %vm1829_vm11, %v1828_v31, %v1822_v30 }
 0x5c1   : > { %v1832_v34 = vsel %vm1831_vm12, %v1830_v33, %v1826_v32 }
 0x5c2   : > { %v1833_v35 = vpack.c.bf16 %v1832_v34, %v1832_v34 }
 0x5c4   : > { %3206 = vmatmul.msk.bf16.vlgmr.msra.gmra.mxu1 %vm1030_vm0, %v1833_v35 }
 0x641   : > { %v1861_v37 = vpop.f32.mrf.mxu1 }
 0x642   : > { %v1862_v38 = vadd.f32 %v3494_v36, %v1861_v37 }
 0x644   : > { %v4677_v39 = vadd.f32 %v1862_v38, %v4444_v0  ;;  %v1915_v0 = vld [vmem:[%s1025_s26] sm:$0xf]  ;;  %s5060_s26 = smov 16  }
 0x645   : > { %3224 = vmatmul.msk.bf16.vlgmr.msra.gmra.mxu3 %vm1030_vm0, %v1915_v0 }
 0x646   : > { %v1868_v41 = vsel %vm1030_vm0, %v4677_v39, 0.0 }
 0x647   : > { %1869 = vadd.xlane.f32.xlu0 %v1868_v41 }
 0x649   : > { %v1863_v54 = vpop.f32.mrf.mxu1 }
 0x6ba   : > { %v1870_v43 = vpop.xlane.xlu0 %1869 }
 0x6bb   : > { %v1871_v53 = vmul.f32 %v1870_v43, %v4448_v8 }
 0x6bd   : > { %v1872_v45 = vsub.f32 %v4677_v39, %v1871_v53 }
 0x6bf   : > { %v1873_v46 = vmul.f32 %v1872_v45, %v1872_v45  ;;  %v1881_v21 = vmul.f32 %v3495_v17, %v1872_v45 }
 0x6c1   : > { %v1874_v47 = vsel %vm1030_vm0, %v1873_v46, 0.0 }
 0x6c2   : > { %1875 = vadd.xlane.f32.xlu1 %v1874_v47 }
 0x6c8   : > { %v1984_v62 = vpop.f32.mrf.mxu3 }
 0x6c9   : > { %v1985_v3 = vadd.f32 %v3497_v61, %v1984_v62 }
 0x6cb   : > { %v4701_v6 = vpack.c.bf16 %v1985_v3, %v1985_v3 }
 0x6cd   : > { %2119 = vrot.lane.b32.xlu2 %v4701_v6, %s4122_s29  ;;  %v2128_v27 = vshrl.u32 %v4701_v6, 16 }
 0x6d0   : > { %v1986_v11 = vpop.f32.mrf.mxu3 }
 0x6d5   : > { %2121 = vrot.lane.b32.xlu2 %v4701_v6, %s4124_s2 }
 0x6dd   : > { %2123 = vrot.lane.b32.xlu2 %v4701_v6, %s4121_s15 }
 0x727   : > { %v4710_v26 = vpop.permute.xlu2 %2119 }
 0x728   : > { %v2129_v28 = vshrl.u32 %v4710_v26, 16  ;;  %v2127_v2 = vpack.i.b16 %v4710_v26, %v4701_v6 }
 0x72a   : > { %v2130_v30 = vpack.i.b16 %v2129_v28, %v2128_v27  ;;  %v2141_v31 = vperm.slane %v2127_v2, %v4480_v1 }
 0x72c   : > { %v2167_v32 = vperm.slane %v2130_v30, %v4480_v1  ;;  %v2149_v37 = vrot.slane %v2141_v31, 4 }
 0x72e   : > { %v2175_v38 = vrot.slane %v2167_v32, 4 }
 0x72f   : > { %v4714_v29 = vpop.permute.xlu2 %2121 }
 0x730   : > { %v2134_v33 = vshrl.u32 %v4714_v29, 16 }
 0x735   : > { %v1876_v50 = vpop.xlane.xlu1 %1875 }
 0x736   : > { %v1877_v55 = vmul.f32 0.032258064, %v1876_v50 }
 0x737   : > { %v4721_v34 = vpop.permute.xlu2 %2123 }
 0x738   : > { %3529 = vrsqrt.f32 %v1877_v55  ;;  %vm1889_vm13 = vcmp.eq.f32.partialorder %v1877_v55, inf  ;;  %v1892_v5 = vand.u32 2147483648, %v1877_v55  ;;  %vm1891_vm14 = vcmp.eq.f32.partialorder %v1877_v55, 0.0 }
 0x739   : > { %v2133_v35 = vpack.i.b16 %v4721_v34, %v4714_v29  ;;  %v2135_v36 = vshrl.u32 %v4721_v34, 16 }
 0x73b   : > { %v2136_v41 = vpack.i.b16 %v2135_v36, %v2134_v33  ;;  %v2146_v54 = vperm.slane %v2133_v35, %v4480_v1  ;;  %v3498_v36 = vld [vmem:[#allocation13] ss:$0 sm:$0xff] }
 0x73d   : > { %v2172_v52 = vperm.slane %v2136_v41, %v4480_v1  ;;  %v2147_v42 = vrot.slane %v2146_v54, 4  ;;  %v2150_v0 = vsel %vm1159_vm8, %v2146_v54, %v2149_v37 }
 0x73e   : > { %v3530_v56 = vpop.eup %3529  ;;  %v2158_v45 = vperm.slane %v2150_v0, %v4484_v14 }
 0x73f   : > { %v1883_v57 = vmul.f32 %v3530_v56, %v1877_v55  ;;  %v2173_v43 = vrot.slane %v2172_v52, 4  ;;  %v2176_v53 = vsel %vm1159_vm8, %v2172_v52, %v2175_v38  ;;  %v2148_v47 = vsel %vm1159_vm8, %v2147_v42, %v2141_v31 }
 0x740   : > { %v2184_v46 = vperm.slane %v2176_v53, %v4484_v14  ;;  %v2154_v49 = vperm.slane %v2148_v47, %v4484_v14  ;;  %v2161_v50 = vrot.slane %v2158_v45, 4 }
 0x741   : > { %v1884_v58 = vmul.f32 %v3530_v56, %v1883_v57  ;;  %v2174_v48 = vsel %vm1159_vm8, %v2173_v43, %v2167_v32 }
 0x742   : > { %v2159_v57 = vrot.slane %v2154_v49, 4 }
 0x743   : > { %v1885_v59 = vmul.f32 0.5, %v1884_v58  ;;  %v2162_v58 = vsel %vm1159_vm8, 0, %v2161_v50 }
 0x744   : > { %v2194_v61 = vrot.slane %v2162_v58, 4 }
 0x745   : > { %v1886_v60 = vsub.f32 1.5, %v1885_v59 }
 0x747   : > { %v1887_v63 = vmul.f32 %v3530_v56, %v1886_v60  ;;  %v2187_v56 = vrot.slane %v2184_v46, 4 }
 0x749   : > { %v1888_v4 = vmul.f32 %v1887_v63, %v1877_v55  ;;  %v2188_v60 = vsel %vm1159_vm8, 0, %v2187_v56  ;;  %v2160_v63 = vsel %vm1159_vm8, 0, %v2159_v57 }
 0x74a   : > { %v2213_v62 = vrot.slane %v2188_v60, 4 }
 0x74b   : > { %v1890_v7 = vsel %vm1889_vm13, %v1877_v55, %v1888_v4  ;;  %v2180_v55 = vperm.slane %v2174_v48, %v4484_v14  ;;  %v2189_v4 = vsel %vm1159_vm8, %v2161_v50, %v2154_v49 }
 0x74c   : > { %v1893_v9 = vsel %vm1891_vm14, %v1892_v5, %v1890_v7  ;;  %v2195_v5 = vsel %vm1159_vm8, %v2194_v61, %v2160_v63 }
 0x74d   : > { %v1894_v10 = vadd.f32 1e-06, %v1893_v9  ;;  %v2185_v59 = vrot.slane %v2180_v55, 4  ;;  %v2199_v9 = vperm.slane %v2195_v5, %v4480_v1  ;;  %v2208_v11 = vsel %vm1159_vm8, %v2187_v56, %v2180_v55 }
 0x74f   : > { %3531 = vrcp.f32 %v1894_v10  ;;  %v1906_v16 = vand.u32 2147483648, %v1894_v10  ;;  %v1904_v18 = vand.u32 2147483647, %v1894_v10  ;;  %vm1900_vm1 = vweird.f32 %v1894_v10 }
 0x750   : > { %v2186_v3 = vsel %vm1159_vm8, 0, %v2185_v59 }
 0x751   : > { %v1907_v20 = vor.u32 1.1754944e-38, %v1906_v16  ;;  %vm1905_vm3 = vcmp.eq.f32.partialorder %v1904_v18, 8.507059e+37  ;;  %v2214_v7 = vsel %vm1159_vm8, %v2213_v62, %v2186_v3 }
 0x755   : > { %v3532_v12 = vpop.eup %3531 }
 0x756   : > { %v1896_v13 = vmul.f32 %v3532_v12, %v1894_v10  ;;  %vm1901_vm15 = vweird.f32 %v3532_v12  ;;  %v2218_v10 = vperm.slane %v2214_v7, %v4480_v1 }
 0x757   : > { %vm1902_vm2 = vmor %vm1900_vm1, %vm1901_vm15 }
 0x758   : > { %v1897_v15 = vsub.f32 1.0, %v1896_v13  ;;  %v2200_v13 = vrot.slane %v2199_v9, 4  ;;  %v2219_v16 = vrot.slane %v2218_v10, 4 }
 0x75a   : > { %v1898_v40 = vmul.f32 %v3532_v12, %v1897_v15  ;;  %v2212_v15 = vperm.slane %v2208_v11, %v4480_v1 }
 0x75c   : > { %v1899_v19 = vadd.f32 %v3532_v12, %v1898_v40  ;;  %v2220_v40 = vsel %vm1159_vm8, %v2219_v16, %v2212_v15 }
 0x75e   : > { %v1903_v44 = vsel %vm1902_vm2, %v3532_v12, %v1899_v19  ;;  %v2193_v12 = vperm.slane %v2189_v4, %v4480_v1  ;;  %v2224_v19 = vperm.slane %v2220_v40, %v4484_v14 }
 0x75f   : > { %v1908_v23 = vsel %vm1905_vm3, %v1907_v20, %v1903_v44 }
 0x760   : > { %v1909_v24 = vmul.f32 %v1908_v23, %v1881_v21  ;;  %v2201_v17 = vsel %vm1159_vm8, %v2200_v13, %v2193_v12  ;;  %v2231_v44 = vshrl.u32 %v2224_v19, 16  ;;  %v2225_v23 = vrot.slane %v2224_v19, 4 }
 0x761   : > { %v2205_v18 = vperm.slane %v2201_v17, %v4484_v14 }
 0x762   : > { %v1913_v25 = vadd.f32 %v3496_v22, %v1909_v24  ;;  %v2226_v27 = vsel %vm1159_vm8, 0, %v2225_v23 }
 0x763   : > { %v2229_v20 = vpack.i.b16 %v2224_v19, %v2205_v18  ;;  %v2230_v21 = vshrl.u32 %v2205_v18, 16  ;;  %v2206_v22 = vrot.slane %v2205_v18, 4  ;;  %v2237_v31 = vshrl.u32 %v2226_v27, 16 }
 0x764   : > { %v1914_v51 = vpack.c.bf16 %v1913_v25, %v1913_v25 }
 0x765   : > { %v2368_v24 = vsel %vm1503_vm9, %v2229_v20, 0  ;;  %v2232_v25 = vpack.i.b16 %v2231_v44, %v2230_v21 }
 0x766   : > { %3215 = vmatmul.msk.bf16.vlgmr.msra.gmra.mxu2 %vm1030_vm0, %v1914_v51  ;;  %v2207_v51 = vsel %vm1159_vm8, 0, %v2206_v22  ;;  %2377 = vmatpush.bf16.xpose.msrb.mxu0 %v2368_v24 }
 0x767   : > { %v2236_v28 = vshrl.u32 %v2207_v51, 16  ;;  %v2387_v2 = vsel %vm1503_vm9, %v2232_v25, 0  ;;  %v2235_v30 = vpack.i.b16 %v2226_v27, %v2207_v51 }
 0x768   : > { %2396 = vmatpush.bf16.xpose.msrb.mxu1 %v2387_v2 }
 0x769   : > { %v2406_v32 = vsel %vm1503_vm9, %v2235_v30, 0  ;;  %v2238_v33 = vpack.i.b16 %v2237_v31, %v2236_v28 }
 0x76a   : > { %2415 = vmatpush.bf16.xpose.msrb.mxu2 %v2406_v32 }
 0x76b   : > { %v2425_v35 = vsel %vm1503_vm9, %v2238_v33, 0 }
 0x76c   : > { %2434 = vmatpush.bf16.xpose.msrb.mxu3 %v2425_v35 }
 0x7e9   : > { %v1948_v37 = vpop.f32.mrf.mxu2 }
 0x7ea   : > { %v1949_v38 = vadd.f32 %v3498_v36, %v1948_v37 }
 0x7ec   : > { %v1994_v41 = vmul.f32 0.35355338, %v1949_v38 }
 0x7ee   : > { %v1995_v54 = vpack.c.bf16 %v1994_v41, %v1994_v41 }
 0x7f0   : > { %1999 = vrot.lane.b32.xlu0 %v1995_v54, %s4124_s2  ;;  %1997 = vrot.lane.b32.xlu2 %v1995_v54, %s4122_s29  ;;  %v2006_v53 = vshrl.u32 %v1995_v54, 16  ;;  %s5058_s2 = sld [smem:[#allocation46_spill]] }
 0x7f1   : > { %v1950_v52 = vpop.f32.mrf.mxu2 }
 0x7f8   : > { %2001 = vrot.lane.b32.xlu2 %v1995_v54, %s4121_s15  ;;  %s3269_s15 = sshll.u32 %s4287_s8, 3 }
 0x84a   : > { %v1998_v42 = vpop.permute.xlu2 %1997 }
 0x84b   : > { %v2007_v0 = vshrl.u32 %v1998_v42, 16  ;;  %v2005_v43 = vpack.i.b16 %v1998_v42, %v1995_v54 }
 0x84d   : > { %v2008_v45 = vpack.i.b16 %v2007_v0, %v2006_v53  ;;  %v2019_v47 = vperm.slane %v2005_v43, %v4480_v1 }
 0x84f   : > { %v2045_v49 = vperm.slane %v2008_v45, %v4480_v1  ;;  %v2027_v57 = vrot.slane %v2019_v47, 4 }
 0x851   : > { %v2053_v60 = vrot.slane %v2045_v49, 4 }
 0x852   : > { %v2002_v46 = vpop.permute.xlu2 %2001 }
 0x853   : > { %v2013_v50 = vshrl.u32 %v2002_v46, 16 }
 0x862   : > { %v2000_v48 = vpop.permute.xlu0 %1999 }
 0x863   : > { %v2011_v55 = vpack.i.b16 %v2002_v46, %v2000_v48  ;;  %v2012_v56 = vshrl.u32 %v2000_v48, 16  ;;  %v3499_v48 = vld [vmem:[%s5058_s2] ss:$0 sm:$0xff] }
 0x865   : > { %v2014_v58 = vpack.i.b16 %v2013_v50, %v2012_v56  ;;  %v2024_v59 = vperm.slane %v2011_v55, %v4480_v1 }
 0x867   : > { %v2025_v61 = vrot.slane %v2024_v59, 4  ;;  %v2028_v62 = vsel %vm1159_vm8, %v2024_v59, %v2027_v57  ;;  %v2050_v63 = vperm.slane %v2014_v58, %v4480_v1 }
 0x868   : > { %v2036_v3 = vperm.slane %v2028_v62, %v4484_v14 }
 0x869   : > { %v2026_v4 = vsel %vm1159_vm8, %v2025_v61, %v2019_v47  ;;  %v2051_v5 = vrot.slane %v2050_v63, 4  ;;  %v2054_v7 = vsel %vm1159_vm8, %v2050_v63, %v2053_v60 }
 0x86a   : > { %v2032_v9 = vperm.slane %v2026_v4, %v4484_v14  ;;  %v2039_v10 = vrot.slane %v2036_v3, 4  ;;  %v2062_v11 = vperm.slane %v2054_v7, %v4484_v14 }
 0x86b   : > { %v2052_v12 = vsel %vm1159_vm8, %v2051_v5, %v2045_v49 }
 0x86c   : > { %v2037_v13 = vrot.slane %v2032_v9, 4  ;;  %v2040_v15 = vsel %vm1159_vm8, 0, %v2039_v10  ;;  %v2058_v16 = vperm.slane %v2052_v12, %v4484_v14  ;;  %v2065_v17 = vrot.slane %v2062_v11, 4 }
 0x86d   : > { %v2072_v40 = vrot.slane %v2040_v15, 4  ;;  %v2067_v21 = vsel %vm1159_vm8, %v2039_v10, %v2032_v9 }
 0x86e   : > { %v2038_v18 = vsel %vm1159_vm8, 0, %v2037_v13  ;;  %v2063_v19 = vrot.slane %v2058_v16, 4  ;;  %v2066_v20 = vsel %vm1159_vm8, 0, %v2065_v17  ;;  %v2086_v25 = vsel %vm1159_vm8, %v2065_v17, %v2058_v16 }
 0x86f   : > { %v2073_v44 = vsel %vm1159_vm8, %v2072_v40, %v2038_v18  ;;  %v2091_v22 = vrot.slane %v2066_v20, 4  ;;  %v2071_v27 = vperm.slane %v2067_v21, %v4480_v1  ;;  %v2090_v30 = vperm.slane %v2086_v25, %v4480_v1 }
 0x870   : > { %v2064_v23 = vsel %vm1159_vm8, 0, %v2063_v19  ;;  %v2077_v24 = vperm.slane %v2073_v44, %v4480_v1 }
 0x871   : > { %v2092_v51 = vsel %vm1159_vm8, %v2091_v22, %v2064_v23 }
 0x872   : > { %v2078_v28 = vrot.slane %v2077_v24, 4  ;;  %v2096_v2 = vperm.slane %v2092_v51, %v4480_v1 }
 0x874   : > { %v2097_v31 = vrot.slane %v2096_v2, 4  ;;  %v2079_v32 = vsel %vm1159_vm8, %v2078_v28, %v2071_v27 }
 0x875   : > { %v2083_v33 = vperm.slane %v2079_v32, %v4484_v14 }
 0x876   : > { %v2098_v35 = vsel %vm1159_vm8, %v2097_v31, %v2090_v30 }
 0x877   : > { %v2102_v36 = vperm.slane %v2098_v35, %v4484_v14  ;;  %v2084_v37 = vrot.slane %v2083_v33, 4  ;;  %v2108_v38 = vshrl.u32 %v2083_v33, 16 }
 0x879   : > { %v2107_v41 = vpack.i.b16 %v2102_v36, %v2083_v33  ;;  %v2109_v54 = vshrl.u32 %v2102_v36, 16  ;;  %v2085_v52 = vsel %vm1159_vm8, 0, %v2084_v37  ;;  %v2103_v42 = vrot.slane %v2102_v36, 4 }
 0x87a   : > { %v2114_v45 = vshrl.u32 %v2085_v52, 16 }
 0x87b   : > { %3225 = vmatmul.msk.bf16.vlgmr.msrb.gmra.mxu0 %vm1503_vm9, %v2107_v41  ;;  %v2110_v0 = vpack.i.b16 %v2109_v54, %v2108_v38  ;;  %v2104_v43 = vsel %vm1159_vm8, 0, %v2103_v42 }
 0x87c   : > { %v2113_v53 = vpack.i.b16 %v2104_v43, %v2085_v52  ;;  %v2115_v46 = vshrl.u32 %v2104_v43, 16 }
 0x87d   : > { %3226 = vmatmul.msk.bf16.vlgmr.msrb.gmra.mxu1 %vm1503_vm9, %v2110_v0 }
 0x87e   : > { %3227 = vmatmul.msk.bf16.vlgmr.msrb.gmra.mxu2 %vm1503_vm9, %v2113_v53  ;;  %v2116_v47 = vpack.i.b16 %v2115_v46, %v2114_v45 }
 0x880   : > { %3228 = vmatmul.msk.bf16.vlgmr.msrb.gmra.mxu3 %vm1503_vm9, %v2116_v47 }
 0x8f8   : > { %v2379_v49 = vpop.f32.mrf.mxu0 }
 0x8f9   : > { %v2380_v50 = vadd.f32 %v3499_v48, %v2379_v49 }
 0x8fa   : > { %v2398_v55 = vpop.f32.mrf.mxu1 }
 0x8fb   : > { %v2399_v56 = vadd.f32 %v3499_v48, %v2398_v55  ;;  %v2440_v57 = vsel %vm1503_vm9, %v2380_v50, -inf }
 0x8fc   : > { %2441 = vmax.xlane.f32.xlu1 %v2440_v57 }
 0x8fd   : > { %v2443_v58 = vsel %vm1503_vm9, %v2399_v56, -inf }
 0x8fe   : > { %2444 = vmax.xlane.f32.xlu0 %v2443_v58 }
 0x900   : > { %v2381_v59 = vpop.f32.mrf.mxu0 }
 0x901   : > { %v2417_v60 = vpop.f32.mrf.mxu2 }
 0x902   : > { %v2418_v61 = vadd.f32 %v3499_v48, %v2417_v60  ;;  %v2400_v62 = vpop.f32.mrf.mxu1 }
 0x903   : > { %v2436_v63 = vpop.f32.mrf.mxu3 }
 0x904   : > { %v2437_v3 = vadd.f32 %v3499_v48, %v2436_v63  ;;  %v2446_v9 = vsel %vm1503_vm9, %v2418_v61, -inf }
 0x906   : > { %v2449_v4 = vsel %vm1503_vm9, %v2437_v3, -inf }
 0x907   : > { %2450 = vmax.xlane.f32.xlu2 %v2449_v4 }
 0x909   : > { %v2419_v5 = vpop.f32.mrf.mxu2 }
 0x90b   : > { %v2438_v7 = vpop.f32.mrf.mxu3 }
 0x915   : > { %2239 = vrot.lane.b32.xlu1 %v4701_v6, %s4123_s5 }
 0x91d   : > { %2241 = vrot.lane.b32.xlu1 %v4710_v26, %s4123_s5 }
 0x91f   : > { %2243 = vrot.lane.b32.xlu2 %v4714_v29, %s4123_s5 }
 0x947   : > { %2447 = vmax.xlane.f32.xlu1 %v2446_v9 }
 0x960   : > { %2245 = vrot.lane.b32.xlu1 %v4721_v34, %s4123_s5  ;;  %s5059_s5 = smov 8  }
 0x96f   : > { %v2442_v34 = vpop.xlane.xlu1 %2441 }
 0x970   : > { %v2452_v21 = vsub.f32 %v2380_v50, %v2442_v34 }
 0x971   : > { %v2445_v10 = vpop.xlane.xlu0 %2444 }
 0x972   : > { %v2453_v11 = vsub.f32 %v2399_v56, %v2445_v10  ;;  %v2456_v22 = vmul.f32 1.442695, %v2452_v21 }
 0x974   : > { %v2458_v12 = vmul.f32 1.442695, %v2453_v11 }
 0x976   : > { %3533 = vpow2.f32 %v2458_v12 }
 0x97a   : > { %v2451_v13 = vpop.xlane.xlu2 %2450 }
 0x97b   : > { %v2455_v15 = vsub.f32 %v2437_v3, %v2451_v13 }
 0x97c   : > { %v4810_v16 = vpop.eup %3533 }
 0x97d   : > { %v2462_v6 = vmul.f32 1.442695, %v2455_v15  ;;  %v2467_v26 = vsel %vm1503_vm9, %v4810_v16, 0.0 }
 0x97e   : > { %2468 = vadd.xlane.f32.xlu2 %v2467_v26 }
 0x97f   : > { %3535 = vpow2.f32 %v2462_v6 }
 0x982   : > { %v2244_v31 = vpop.permute.xlu2 %2243 }
 0x983   : > { %v2256_v35 = vshrl.u32 %v2244_v31, 16 }
 0x985   : > { %v4814_v29 = vpop.eup %3535 }
 0x986   : > { %v2473_v17 = vsel %vm1503_vm9, %v4814_v29, 0.0 }
 0x987   : > { %v2240_v40 = vpop.permute.xlu1 %2239 }
 0x988   : > { %v2250_v27 = vshrl.u32 %v2240_v40, 16 }
 0x98a   : > { %2474 = vadd.xlane.f32.xlu1 %v2473_v17 }
 0x98f   : > { %v2242_v18 = vpop.permute.xlu1 %2241 }
 0x990   : > { %v2251_v51 = vshrl.u32 %v2242_v18, 16  ;;  %v2249_v28 = vpack.i.b16 %v2242_v18, %v2240_v40 }
 0x992   : > { %v2252_v30 = vpack.i.b16 %v2251_v51, %v2250_v27  ;;  %v2263_v32 = vperm.slane %v2249_v28, %v4480_v1 }
 0x994   : > { %v2289_v36 = vperm.slane %v2252_v30, %v4480_v1  ;;  %v2271_v41 = vrot.slane %v2263_v32, 4 }
 0x996   : > { %v2297_v42 = vrot.slane %v2289_v36, 4 }
 0x9ba   : > { %v2448_v19 = vpop.xlane.xlu1 %2447 }
 0x9bb   : > { %v2454_v20 = vsub.f32 %v2418_v61, %v2448_v19 }
 0x9bd   : > { %v2460_v44 = vmul.f32 1.442695, %v2454_v20 }
 0x9bf   : > { %3537 = vpow2.f32 %v2460_v44 }
 0x9c0   : > { %3539 = vpow2.f32 %v2456_v22 }
 0x9c5   : > { %v4818_v23 = vpop.eup %3537 }
 0x9c6   : > { %v2470_v24 = vsel %vm1503_vm9, %v4818_v23, 0.0  ;;  %v4822_v25 = vpop.eup %3539 }
 0x9c7   : > { %2471 = vadd.xlane.f32.xlu0 %v2470_v24  ;;  %v2464_v2 = vsel %vm1503_vm9, %v4822_v25, 0.0 }
 0x9cf   : > { %2465 = vadd.xlane.f32.xlu0 %v2464_v2 }
 0x9d2   : > { %v2246_v33 = vpop.permute.xlu1 %2245 }
 0x9d3   : > { %v2255_v37 = vpack.i.b16 %v2246_v33, %v2244_v31  ;;  %v2257_v38 = vshrl.u32 %v2246_v33, 16 }
 0x9d5   : > { %v2258_v54 = vpack.i.b16 %v2257_v38, %v2256_v35  ;;  %v2268_v52 = vperm.slane %v2255_v37, %v4480_v1 }
 0x9d7   : > { %v2269_v0 = vrot.slane %v2268_v52, 4  ;;  %v2272_v43 = vsel %vm1159_vm8, %v2268_v52, %v2271_v41  ;;  %v2294_v53 = vperm.slane %v2258_v54, %v4480_v1 }
 0x9d8   : > { %v2280_v45 = vperm.slane %v2272_v43, %v4484_v14 }
 0x9d9   : > { %v2270_v46 = vsel %vm1159_vm8, %v2269_v0, %v2263_v32  ;;  %v2295_v47 = vrot.slane %v2294_v53, 4  ;;  %v2298_v48 = vsel %vm1159_vm8, %v2294_v53, %v2297_v42 }
 0x9da   : > { %v2276_v49 = vperm.slane %v2270_v46, %v4484_v14  ;;  %v2283_v50 = vrot.slane %v2280_v45, 4  ;;  %v2306_v55 = vperm.slane %v2298_v48, %v4484_v14 }
 0x9db   : > { %v2296_v56 = vsel %vm1159_vm8, %v2295_v47, %v2289_v36 }
 0x9dc   : > { %v2281_v57 = vrot.slane %v2276_v49, 4  ;;  %v2284_v58 = vsel %vm1159_vm8, 0, %v2283_v50  ;;  %v2302_v59 = vperm.slane %v2296_v56, %v4484_v14  ;;  %v2309_v60 = vrot.slane %v2306_v55, 4 }
 0x9dd   : > { %v2316_v61 = vrot.slane %v2284_v58, 4  ;;  %v2311_v4 = vsel %vm1159_vm8, %v2283_v50, %v2276_v49 }
 0x9de   : > { %v2282_v62 = vsel %vm1159_vm8, 0, %v2281_v57  ;;  %v2307_v63 = vrot.slane %v2302_v59, 4  ;;  %v2310_v3 = vsel %vm1159_vm8, 0, %v2309_v60  ;;  %v2330_v11 = vsel %vm1159_vm8, %v2309_v60, %v2302_v59 }
 0x9df   : > { %v2317_v5 = vsel %vm1159_vm8, %v2316_v61, %v2282_v62  ;;  %v2335_v7 = vrot.slane %v2310_v3, 4  ;;  %v2315_v13 = vperm.slane %v2311_v4, %v4480_v1  ;;  %v2334_v17 = vperm.slane %v2330_v11, %v4480_v1 }
 0x9e0   : > { %v2308_v9 = vsel %vm1159_vm8, 0, %v2307_v63  ;;  %v2321_v10 = vperm.slane %v2317_v5, %v4480_v1 }
 0x9e1   : > { %v2336_v12 = vsel %vm1159_vm8, %v2335_v7, %v2308_v9 }
 0x9e2   : > { %v2322_v15 = vrot.slane %v2321_v10, 4  ;;  %v2340_v6 = vperm.slane %v2336_v12, %v4480_v1 }
 0x9e4   : > { %v2323_v26 = vsel %vm1159_vm8, %v2322_v15, %v2315_v13  ;;  %v2341_v34 = vrot.slane %v2340_v6, 4 }
 0x9e5   : > { %v2327_v40 = vperm.slane %v2323_v26, %v4484_v14 }
 0x9e6   : > { %v2342_v18 = vsel %vm1159_vm8, %v2341_v34, %v2334_v17 }
 0x9e7   : > { %v2346_v19 = vperm.slane %v2342_v18, %v4484_v14  ;;  %v2328_v20 = vrot.slane %v2327_v40, 4  ;;  %v2352_v21 = vshrl.u32 %v2327_v40, 16 }
 0x9e9   : > { %v2351_v44 = vpack.i.b16 %v2346_v19, %v2327_v40  ;;  %v2353_v22 = vshrl.u32 %v2346_v19, 16  ;;  %v2329_v24 = vsel %vm1159_vm8, 0, %v2328_v20  ;;  %v2347_v51 = vrot.slane %v2346_v19, 4 }
 0x9ea   : > { %v2358_v31 = vshrl.u32 %v2329_v24, 16 }
 0x9eb   : > { %v2492_v27 = vsel %vm1631_vm10, %v2351_v44, 0  ;;  %v2354_v28 = vpack.i.b16 %v2353_v22, %v2352_v21  ;;  %v2348_v2 = vsel %vm1159_vm8, 0, %v2347_v51 }
 0x9ec   : > { %2501 = vmatpush.bf16.msra.mxu0 %v2492_v27  ;;  %v2357_v30 = vpack.i.b16 %v2348_v2, %v2329_v24  ;;  %v2359_v32 = vshrl.u32 %v2348_v2, 16 }
 0x9ed   : > { %v2511_v33 = vsel %vm1631_vm10, %v2354_v28, 0 }
 0x9ee   : > { %2520 = vmatpush.bf16.msra.mxu1 %v2511_v33  ;;  %v2530_v35 = vsel %vm1631_vm10, %v2357_v30, 0  ;;  %v2360_v36 = vpack.i.b16 %v2359_v32, %v2358_v31 }
 0x9ef   : > { %2539 = vmatpush.bf16.msra.mxu2 %v2530_v35 }
 0x9f0   : > { %v2549_v37 = vsel %vm1631_vm10, %v2360_v36, 0  ;;  %vm2845_vm10 = vcmask 523264  }
 0x9f1   : > { %v2469_v38 = vpop.xlane.xlu2 %2468  ;;  %2558 = vmatpush.bf16.msra.mxu3 %v2549_v37 }
 0x9f2   : > { %3541 = vrcp.f32 %v2469_v38 }
 0x9f8   : > { %v3542_v41 = vpop.eup %3541 }
 0x9f9   : > { %v2481_v54 = vmul.f32 %v3542_v41, %v4810_v16 }
 0x9fb   : > { %v2485_v52 = vpack.c.bf16 %v2481_v54, %v2481_v54 }
 0x9fd   : > { %3230 = vmatmul.msk.bf16.vlgmr.msra.gmra.mxu1 %vm1503_vm9, %v2485_v52  ;;  %v2475_v42 = vpop.xlane.xlu1 %2474 }
 0x9fe   : > { %3543 = vrcp.f32 %v2475_v42 }
 0xa04   : > { %v3544_v0 = vpop.eup %3543 }
 0xa05   : > { %v2483_v43 = vmul.f32 %v3544_v0, %v4814_v29 }
 0xa07   : > { %v2487_v53 = vpack.c.bf16 %v2483_v43, %v2483_v43 }
 0xa09   : > { %3232 = vmatmul.msk.bf16.vlgmr.msra.gmra.mxu3 %vm1503_vm9, %v2487_v53 }
 0xa3a   : > { %v2472_v45 = vpop.xlane.xlu0 %2471 }
 0xa3b   : > { %3545 = vrcp.f32 %v2472_v45 }
 0xa41   : > { %v3546_v46 = vpop.eup %3545 }
 0xa42   : > { %v2482_v47 = vmul.f32 %v3546_v46, %v4818_v23  ;;  %v2466_v48 = vpop.xlane.xlu0 %2465 }
 0xa43   : > { %3547 = vrcp.f32 %v2466_v48 }
 0xa44   : > { %v2486_v49 = vpack.c.bf16 %v2482_v47, %v2482_v47 }
 0xa46   : > { %3231 = vmatmul.msk.bf16.vlgmr.msra.gmra.mxu2 %vm1503_vm9, %v2486_v49 }
 0xa49   : > { %v3548_v16 = vpop.eup %3547 }
 0xa4a   : > { %v2480_v50 = vmul.f32 %v3548_v16, %v4822_v25 }
 0xa4c   : > { %v2484_v55 = vpack.c.bf16 %v2480_v50, %v2480_v50 }
 0xa4e   : > { %3229 = vmatmul.msk.bf16.vlgmr.msra.gmra.mxu0 %vm1503_vm9, %v2484_v55 }
 0xa7a   : > { %v2522_v29 = vpop.f32.mrf.mxu1 }
 0xa7b   : > { %v2578_v57 = vrot.slane %v2522_v29, 4 }
 0xa82   : > { %v2524_v56 = vpop.f32.mrf.mxu1 }
 0xa8c   : > { %v2560_v58 = vpop.f32.mrf.mxu3 }
 0xa8d   : > { %v2579_v59 = vsel %vm1159_vm8, %v2560_v58, %v2578_v57  ;;  %v2576_v61 = vrot.slane %v2560_v58, 4 }
 0xa8e   : > { %v2587_v4 = vperm.slane %v2579_v59, %v4480_v1 }
 0xa8f   : > { %v2577_v23 = vsel %vm1159_vm8, %v2576_v61, %v2522_v29 }
 0xa90   : > { %v2583_v62 = vperm.slane %v2577_v23, %v4480_v1  ;;  %v2600_v12 = vrot.slane %v2587_v4, 4 }
 0xa92   : > { %v2588_v9 = vrot.slane %v2583_v62, 4 }
 0xa94   : > { %v2562_v60 = vpop.f32.mrf.mxu3 }
 0xac9   : > { %v2541_v63 = vpop.f32.mrf.mxu2 }
 0xaca   : > { %v2564_v3 = vrot.slane %v2541_v63, 4 }
 0xacb   : > { %v2503_v25 = vpop.f32.mrf.mxu0 }
 0xacc   : > { %v2565_v5 = vsel %vm1159_vm8, %v2564_v3, %v2503_v25  ;;  %v2566_v7 = vrot.slane %v2503_v25, 4  ;;  %v3280_v3 = vld [vmem:[#allocation16] sm:$0xff] }
 0xacd   : > { %v2571_v10 = vperm.slane %v2565_v5, %v4480_v1 }
 0xace   : > { %v2567_v11 = vsel %vm1159_vm8, %v2541_v63, %v2566_v7  ;;  %v3281_v63 = vld [vmem:[#allocation16 + $0x8] sm:$0xff] }
 0xacf   : > { %v2575_v13 = vperm.slane %v2567_v11, %v4480_v1  ;;  %v2589_v15 = vsel %vm1159_vm8, %v2588_v9, %v2571_v10  ;;  %v2590_v6 = vrot.slane %v2571_v10, 4  ;;  %2714 = vmatpush.bf16.msrb.mxu0 %v3281_v63  ;;  %v3500_v11 = vld [vmem:[#allocation17] ss:$0 sm:$0xff] }
 0xad0   : > { %v2595_v26 = vperm.slane %v2589_v15, %v4484_v14 }
 0xad1   : > { %v2591_v17 = vsel %vm1159_vm8, %v2583_v62, %v2590_v6  ;;  %v2601_v34 = vsel %vm1159_vm8, %v2600_v12, %v2575_v13  ;;  %v2602_v40 = vrot.slane %v2575_v13, 4  ;;  %v2543_v18 = vpop.f32.mrf.mxu2 }
 0xad2   : > { %v2599_v19 = vperm.slane %v2591_v17, %v4484_v14  ;;  %v2607_v20 = vperm.slane %v2601_v34, %v4484_v14  ;;  %v2612_v24 = vrot.slane %v2595_v26, 4 }
 0xad3   : > { %v2603_v21 = vsel %vm1159_vm8, %v2587_v4, %v2602_v40  ;;  %v2505_v44 = vpop.f32.mrf.mxu0  ;;  %2715 = vmatpush.bf16.msrb.mxu0 %v3280_v3 }
 0xad4   : > { %v2611_v22 = vperm.slane %v2603_v21, %v4484_v14  ;;  %v2614_v51 = vrot.slane %v2599_v19, 4  ;;  %v2616_v28 = vrot.slane %v2607_v20, 4  ;;  %v2613_v33 = vsel %vm1159_vm8, 0.0, %v2612_v24  ;;  %v3282_v21 = vld [vmem:[#allocation22] sm:$0xff] }
 0xad6   : > { %v2615_v27 = vsel %vm1159_vm8, 0.0, %v2614_v51  ;;  %v2618_v2 = vrot.slane %v2611_v22, 4  ;;  %v2620_v30 = vsel %vm1159_vm8, %v2614_v51, %v2595_v26  ;;  %v2617_v52 = vsel %vm1159_vm8, 0.0, %v2616_v28 }
 0xad7   : > { %v2624_v31 = vperm.slane %v2620_v30, %v4480_v1  ;;  %v2625_v32 = vrot.slane %v2615_v27, 4 }
 0xad8   : > { %v2619_v35 = vsel %vm1159_vm8, 0.0, %v2618_v2  ;;  %v2631_v36 = vsel %vm1159_vm8, %v2618_v2, %v2607_v20  ;;  %v3283_v20 = vld [vmem:[#allocation22 + $0x8] sm:$0xff]  ;;  %v3287_v2 = vld [vmem:[%s5001_s22 + $0x18] sm:$0xff] }
 0xad9   : > { %v2626_v37 = vsel %vm1159_vm8, %v2625_v32, %v2613_v33  ;;  %v2635_v38 = vperm.slane %v2631_v36, %v4480_v1  ;;  %v2636_v41 = vrot.slane %v2619_v35, 4  ;;  %v2644_v54 = vrot.slane %v2624_v31, 4  ;;  %2800 = vmatpush.bf16.msrb.mxu1 %v3283_v20  ;;  %2853 = vmatpush.bf16.msrb.mxu2 %v3287_v2 }
 0xada   : > { %v2630_v42 = vperm.slane %v2626_v37, %v4480_v1 }
 0xadb   : > { %v2637_v0 = vsel %vm1159_vm8, %v2636_v41, %v2617_v52  ;;  %v2656_v43 = vrot.slane %v2635_v38, 4 }
 0xadc   : > { %v2641_v53 = vperm.slane %v2637_v0, %v4480_v1  ;;  %v2645_v45 = vsel %vm1159_vm8, %v2630_v42, %v2644_v54  ;;  %v2642_v46 = vrot.slane %v2630_v42, 4  ;;  %v3501_v42 = vld [vmem:[#allocation19] ss:$0 sm:$0xff] }
 0xadd   : > { %v2653_v47 = vperm.slane %v2645_v45, %v4484_v14  ;;  %2801 = vmatpush.bf16.msrb.mxu1 %v3282_v21 }
 0xade   : > { %v2657_v48 = vsel %vm1159_vm8, %v2641_v53, %v2656_v43  ;;  %v2643_v49 = vsel %vm1159_vm8, %v2642_v46, %v2624_v31  ;;  %v2654_v16 = vrot.slane %v2641_v53, 4  ;;  %v3286_v31 = vld [vmem:[%s5001_s22 + $0x10] sm:$0xff] }
 0xadf   : > { %v2665_v50 = vperm.slane %v2657_v48, %v4484_v14  ;;  %v2672_v55 = vrot.slane %v2653_v47, 4  ;;  %v2649_v29 = vperm.slane %v2643_v49, %v4484_v14  ;;  %2854 = vmatpush.bf16.msrb.mxu2 %v3286_v31  ;;  %v3502_v48 = vld [vmem:[#allocation20] ss:$0 sm:$0xff] }
 0xae0   : > { %v2655_v56 = vsel %vm1159_vm8, %v2654_v16, %v2635_v38 }
 0xae1   : > { %v2673_v57 = vsel %vm1159_vm8, %v2665_v50, %v2672_v55  ;;  %v2661_v1 = vperm.slane %v2655_v56, %v4484_v14  ;;  %v2668_v58 = vrot.slane %v2649_v29, 4  ;;  %v2670_v59 = vrot.slane %v2665_v50, 4  ;;  %v3284_v56 = vld [vmem:[%s5001_s22] sm:$0xff] }
 0xae2   : > { %2683 = vrot.lane.b32.xlu1 %v2673_v57, %s4129_s30  ;;  %v3503_v57 = vld [vmem:[#allocation23] ss:$0 sm:$0xff]  ;;  %s5061_s30 = sld [smem:[#allocation57_spill]] }
 0xae3   : > { %v2666_v60 = vrot.slane %v2661_v1, 4  ;;  %v2669_v61 = vsel %vm1159_vm8, %v2661_v1, %v2668_v58  ;;  %v2671_v23 = vsel %vm1159_vm8, %v2670_v59, %v2653_v47 }
 0xae4   : > { %2675 = vrot.lane.b32.xlu0 %v2669_v61, %s5059_s5 }
 0xae5   : > { %v2667_v62 = vsel %vm1159_vm8, %v2666_v60, %v2649_v29  ;;  %v3285_v29 = vld [vmem:[%s5001_s22 + $0x8] sm:$0xff] }
 0xae6   : > { %2855 = vmatpush.bf16.msrb.mxu2 %v3285_v29 }
 0xae8   : > { %s2923_s0 = scalar_lea.hbm %s5061_s30, %s3269_s15  ;;  %s2913_s15 = scalar_lea.sflag [#allocation4], %s1015_s1 }
 0xae9   : > { %s2927_s10 = sshll.u32 %s2923_s0, 4  ;;  %s4027_s25 = scalar_lea.hbm %s5061_s30, 16  ;;  %s2928_s10 = int_to_ptr.hbm [resolvable:$true] %s2927_s10 }
 0xaea   : > { %2856 = vmatpush.bf16.msrb.mxu2 %v3284_v56  ;;  %s4021_s29 = sshra.s32 %s2928_s10, 4  ;;  %s4022_s29 = int_to_ptr.hbm [resolvable:$true] %s4021_s29 }
 0xaeb   : > { %s4023_s2 = scalar_lea.hbm %s4022_s29, 8  ;;  %p4028_p3 = scmp.lt.s32.totalorder %s4022_s29, %s5061_s30 }
 0xaec   : > { %2679 = vrot.lane.b32.xlu0 %v2671_v23, %s5060_s26  ;;  %v3504_v23 = vld [vmem:[#allocation25] ss:$0 sm:$0xff]  ;;  %p4024_p0 = scmp.ne.s32.totalorder %s4022_s29, %s4023_s2  ;;  %p4029_p4 = scmp.lt.s32.totalorder %s4027_s25, %s4023_s2 }
 0xaee   : > { %p4025_p1 = pnand %p4024_p0, %p4304_p5  ;;  %p4030_p7 = por %p4029_p4, %p4028_p3 }
 0xaf0   : > { %p4026_p2 = pneg %p4025_p1 }
 0xaf2   : > { %p4031_p8 = pnand %p4030_p7, %p4026_p2 }
 0xb54   : > { %v2684_v5 = vpop.permute.xlu1 %2683 }
 0xb56   : > { %v2676_v14 = vpop.permute.xlu0 %2675 }
 0xb57   : > { %v2686_v4 = vsel %vm1503_vm9, %v2667_v62, %v2676_v14 }
 0xb5e   : > { %v2680_v25 = vpop.permute.xlu0 %2679 }
 0xb5f   : > { %v2687_v7 = vsel %vm1829_vm11, %v2686_v4, %v2680_v25 }
 0xb60   : > { %v2688_v9 = vsel %vm1831_vm12, %v2687_v7, %v2684_v5 }
 0xb61   : > { %v2689_v10 = vpack.c.bf16 %v2688_v9, %v2688_v9 }
 0xb63   : > { %3241 = vmatmul.msk.bf16.vlgmr.msrb.gmra.mxu0 %vm1030_vm0, %v2689_v10 }
 0xbe0   : > { %v2717_v12 = vpop.f32.mrf.mxu0 }
 0xbe1   : > { %v2718_v13 = vadd.f32 %v3500_v11, %v2717_v12 }
 0xbe3   : > { %v4916_v15 = vadd.f32 %v2718_v13, %v4677_v39 }
 0xbe5   : > { %v2724_v6 = vsel %vm1030_vm0, %v4916_v15, 0.0 }
 0xbe6   : > { %2725 = vadd.xlane.f32.xlu0 %v2724_v6 }
 0xbe8   : > { %v2719_v26 = vpop.f32.mrf.mxu0 }
 0xc59   : > { %v2726_v17 = vpop.xlane.xlu0 %2725 }
 0xc5a   : > { %v2727_v34 = vmul.f32 %v2726_v17, %v4448_v8 }
 0xc5c   : > { %v2728_v40 = vsub.f32 %v4916_v15, %v2727_v34 }
 0xc5e   : > { %v2729_v18 = vmul.f32 %v2728_v40, %v2728_v40  ;;  %v2737_v46 = vmul.f32 %v3501_v42, %v2728_v40 }
 0xc60   : > { %v2730_v19 = vsel %vm1030_vm0, %v2729_v18, 0.0 }
 0xc61   : > { %2731 = vadd.xlane.f32.xlu2 %v2730_v19 }
 0xcd4   : > { %v2732_v44 = vpop.xlane.xlu2 %2731 }
 0xcd5   : > { %v2733_v39 = vmul.f32 0.032258064, %v2732_v44 }
 0xcd7   : > { %3549 = vrsqrt.f32 %v2733_v39  ;;  %vm2745_vm4 = vcmp.eq.f32.partialorder %v2733_v39, inf  ;;  %v2748_v33 = vand.u32 2147483648, %v2733_v39  ;;  %vm2747_vm5 = vcmp.eq.f32.partialorder %v2733_v39, 0.0 }
 0xcdd   : > { %v3550_v22 = vpop.eup %3549 }
 0xcde   : > { %v2739_v24 = vmul.f32 %v3550_v22, %v2733_v39 }
 0xce0   : > { %v2740_v51 = vmul.f32 %v3550_v22, %v2739_v24  ;;  %v3505_v24 = vld [vmem:[%s5003_s24] ss:$0 sm:$0xff] }
 0xce2   : > { %v2741_v27 = vmul.f32 0.5, %v2740_v51 }
 0xce4   : > { %v2742_v28 = vsub.f32 1.5, %v2741_v27 }
 0xce6   : > { %v2743_v30 = vmul.f32 %v3550_v22, %v2742_v28 }
 0xce8   : > { %v2744_v32 = vmul.f32 %v2743_v30, %v2733_v39 }
 0xcea   : > { %v2746_v35 = vsel %vm2745_vm4, %v2733_v39, %v2744_v32  ;;  %v3506_v32 = vld [vmem:[%s5062_s7] ss:$0 sm:$0xff] }
 0xceb   : > { %v2749_v36 = vsel %vm2747_vm5, %v2748_v33, %v2746_v35 }
 0xcec   : > { %v2750_v37 = vadd.f32 1e-06, %v2749_v36 }
 0xcee   : > { %3551 = vrcp.f32 %v2750_v37  ;;  %v2762_v52 = vand.u32 2147483648, %v2750_v37  ;;  %v2760_v43 = vand.u32 2147483647, %v2750_v37  ;;  %vm2756_vm7 = vweird.f32 %v2750_v37 }
 0xcf0   : > { %v2763_v45 = vor.u32 1.1754944e-38, %v2762_v52  ;;  %vm2761_vm9 = vcmp.eq.f32.partialorder %v2760_v43, 8.507059e+37 }
 0xcf4   : > { %v3552_v38 = vpop.eup %3551 }
 0xcf5   : > { %v2752_v41 = vmul.f32 %v3552_v38, %v2750_v37  ;;  %vm2757_vm6 = vweird.f32 %v3552_v38 }
 0xcf6   : > { %vm2758_vm8 = vmor %vm2756_vm7, %vm2757_vm6 }
 0xcf7   : > { %v2753_v54 = vsub.f32 1.0, %v2752_v41 }
 0xcf9   : > { %v2754_v0 = vmul.f32 %v3552_v38, %v2753_v54 }
 0xcfb   : > { %v2755_v53 = vadd.f32 %v3552_v38, %v2754_v0 }
 0xcfd   : > { %v2759_v47 = vsel %vm2758_vm8, %v3552_v38, %v2755_v53 }
 0xcfe   : > { %v2764_v49 = vsel %vm2761_vm9, %v2763_v45, %v2759_v47 }
 0xcff   : > { %v2765_v16 = vmul.f32 %v2764_v49, %v2737_v46 }
 0xd01   : > { %v2769_v50 = vadd.f32 %v3502_v48, %v2765_v16 }
 0xd03   : > { %v2770_v55 = vpack.c.bf16 %v2769_v50, %v2769_v50 }
 0xd05   : > { %3250 = vmatmul.msk.bf16.vlgmr.msrb.gmra.mxu1 %vm1030_vm0, %v2770_v55 }
 0xd82   : > { %v2803_v1 = vpop.f32.mrf.mxu1 }
 0xd83   : > { %v2804_v58 = vadd.f32 %v3503_v57, %v2803_v1 }
 0xd85   : > { %v2807_v59 = vmax.f32 %v2804_v58, 0.0 }
 0xd87   : > { %v2808_v60 = vpack.c.bf16 %v2807_v59, %v2807_v59 }
 0xd89   : > { %3267 = vmatmul.msk.bf16.vlgmr.msrb.gmra.mxu2 %vm2845_vm10, %v2808_v60 }
 0xd8a   : > { %v2805_v61 = vpop.f32.mrf.mxu1 }
 0xe0c   : > { %v2858_v62 = vpop.f32.mrf.mxu2 }
 0xe0d   : > { %v2859_v63 = vadd.f32 %v3504_v23, %v2858_v62 }
 0xe0f   : > { %v2862_v3 = vadd.f32 %v2859_v63, %v4916_v15 }
 0xe11   : > { %v2865_v14 = vsel %vm1030_vm0, %v2862_v3, 0.0 }
 0xe12   : > { %2866 = vadd.xlane.f32.xlu2 %v2865_v14 }
 0xe14   : > { %v2860_v4 = vpop.f32.mrf.mxu2 }
 0xe85   : > { %v2867_v25 = vpop.xlane.xlu2 %2866 }
 0xe86   : > { %v2868_v5 = vmul.f32 %v2867_v25, %v4448_v8 }
 0xe88   : > { %v2869_v7 = vsub.f32 %v2862_v3, %v2868_v5 }
 0xe8a   : > { %v2870_v9 = vmul.f32 %v2869_v7, %v2869_v7  ;;  %v2878_v30 = vmul.f32 %v3505_v24, %v2869_v7 }
 0xe8c   : > { %v2871_v10 = vsel %vm1030_vm0, %v2870_v9, 0.0 }
 0xe8d   : > { %2872 = vadd.xlane.f32.xlu1 %v2871_v10 }
 0xf00   : > { %v2873_v11 = vpop.xlane.xlu1 %2872 }
 0xf01   : > { %v2874_v12 = vmul.f32 0.032258064, %v2873_v11 }
 0xf03   : > { %3553 = vrsqrt.f32 %v2874_v12  ;;  %vm2886_vm11 = vcmp.eq.f32.partialorder %v2874_v12, inf  ;;  %v2889_v18 = vand.u32 2147483648, %v2874_v12  ;;  %vm2888_vm12 = vcmp.eq.f32.partialorder %v2874_v12, 0.0 }
 0xf09   : > { %v3554_v13 = vpop.eup %3553 }
 0xf0a   : > { %v2880_v6 = vmul.f32 %v3554_v13, %v2874_v12 }
 0xf0c   : > { %v2881_v26 = vmul.f32 %v3554_v13, %v2880_v6 }
 0xf0e   : > { %v2882_v15 = vmul.f32 0.5, %v2881_v26 }
 0xf10   : > { %v2883_v17 = vsub.f32 1.5, %v2882_v15 }
 0xf12   : > { %v2884_v34 = vmul.f32 %v3554_v13, %v2883_v17 }
 0xf14   : > { %v2885_v40 = vmul.f32 %v2884_v34, %v2874_v12 }
 0xf16   : > { %v2887_v8 = vsel %vm2886_vm11, %v2874_v12, %v2885_v40 }
 0xf17   : > { %v2890_v19 = vsel %vm2888_vm12, %v2889_v18, %v2887_v8 }
 0xf18   : > { %v2891_v20 = vadd.f32 1e-06, %v2890_v19 }
 0xf1a   : > { %3555 = vrcp.f32 %v2891_v20  ;;  %v2903_v22 = vand.u32 2147483648, %v2891_v20  ;;  %v2901_v27 = vand.u32 2147483647, %v2891_v20  ;;  %vm2897_vm14 = vweird.f32 %v2891_v20 }
 0xf1c   : > { %v2904_v2 = vor.u32 1.1754944e-38, %v2903_v22  ;;  %vm2902_vm1 = vcmp.eq.f32.partialorder %v2901_v27, 8.507059e+37 }
 0xf20   : > { %v3556_v21 = vpop.eup %3555 }
 0xf21   : > { %v2893_v44 = vmul.f32 %v3556_v21, %v2891_v20  ;;  %vm2898_vm13 = vweird.f32 %v3556_v21 }
 0xf22   : > { %vm2899_vm15 = vmor %vm2897_vm14, %vm2898_vm13 }
 0xf23   : > { %v2894_v39 = vsub.f32 1.0, %v2893_v44 }
 0xf25   : > { %v2895_v51 = vmul.f32 %v3556_v21, %v2894_v39 }
 0xf27   : > { %v2896_v28 = vadd.f32 %v3556_v21, %v2895_v51 }
 0xf29   : > { %v2900_v31 = vsel %vm2899_vm15, %v3556_v21, %v2896_v28 }
 0xf2a   : > { %v2905_v33 = vsel %vm2902_vm1, %v2904_v2, %v2900_v31 }
 0xf2b   : > { %v2906_v35 = vmul.f32 %v2905_v33, %v2878_v30 }
 0xf2d   : > { %v2910_v36 = vadd.f32 %v3506_v32, %v2906_v35 }
 0xf2f   : > { %2911 = vst.msk [vmem:[%s1017_s6] sm:$0xff] %vm1030_vm0, %v2910_v36 }
 0xf30   : > { %4034 = shalt.err (!%p4031_p8)
}
 0xf31   : > { %3348 = dma.vmem_to_hbm [thread:$0]  (%p4304_p5), %s2926_s28, 128, %s2928_s10, %s2913_s15  }
 0xf32 PF: > { %s5064_s1 = sld [smem:[#allocation38_spill]] }
 0xf33   : > { %s5065_s8 = sld [smem:[#allocation36_spill]] }
 0xf38   : > { %p3430_p9 = scmp.ge.s32.totalorder %s5064_s1, 2 }
 0xf39   : > { %s2939_s6 = sand.u32 1, %s5065_s8  }
 0xf3a   : > { %p3397_p10 = pnand %p3430_p9, %p4308_p6  ;;  %s2940_s5 = scalar_lea.sflag [#allocation4], %s2939_s6 }
 0xf3c   : > { %p3398_p11 = pneg %p3397_p10 }
 0xf3e   : > { %4084 = dma.done.wait (%p3398_p11), %s2940_s5, 128  }
 0xf3f   : > { %4086 = vsyncadd (%p3398_p11), %s2940_s5, 4294967168  ;;  %s5067_s28 = sld [smem:[#allocation39_spill]]  ;;  %s5070_s27 = smov %s4093_s3 }
 0xf40   : > { %s5068_s29 = sld [smem:[#allocation37_spill]] }
 0xf41   : > { %s5069_s7 = sld [smem:[#allocation40_spill]] }
 0xf45   : > { %p44_p12 = scmp.ge.s32.totalorder %s5067_s28, 4  }
 0xf46   : > { %s5071_s3 = smov %s5068_s29 }
 0xf47   :  { %46 = sbr.rel (!%p44_p12) target bundleno = 27 (0x1b), region = 223 }
 0xf4c   :  { %2946 = vsyncpa [#allocation3], 1 }
 0xf4d   :  { %2948 = vsyncpa [#allocation3 + $0x1], 1 }
 0xf4e   :  { %2949 = vsyncpa [#allocation6], 1 }
 0xf4f   :  { %2950 = vsyncpa [#allocation9], 1 }
 0xf50   :  { %2951 = vsyncpa [#allocation12], 1 }
 0xf51   :  { %2952 = vsyncpa [#allocation15], 1 }
 0xf52   :  { %2953 = vsyncpa [#allocation18], 1 }
 0xf53   :  { %2954 = vsyncpa [#allocation21], 1 }
 0xf54   :  { %2955 = vsyncpa [#allocation24], 1 }
 0xf55   :  { %2956 = vsyncpa [#allocation4], 1 }
 0xf56   :  { %2958 = vsyncpa [#allocation4 + $0x1], 1 }

// kernel: decoder_forward.2
= control target key start
LH: loop header
LB: loop body
LE: loop exit
PB: predicated region body
PF: predicated region fallthrough
CT: control target
= control target key end

     0   :  { %s4688_s0 = inlined_call_operand.vmem [shape: f32[2,8,32], index: 0, kind: input, shape index: {}]   ;;  %s4689_s1 = inlined_call_operand.vmem [shape: bf16[2,8,32], index: 1, kind: input, shape index: {}]   ;;  %s4690_s2 = inlined_call_operand.vmem [shape: f32[1,8,8], index: 2, kind: input, shape index: {}]   ;;  %s4691_s3 = inlined_call_operand.vmem [shape: f32[1,1,8], index: 3, kind: input, shape index: {}]   ;;  %s4692_s4 = inlined_call_operand.vmem [shape: f32[1,32], index: 4, kind: input, shape index: {}]   ;;  %s4693_s5 = inlined_call_operand.vmem [shape: f32[1,32], index: 5, kind: input, shape index: {}]   ;;  %s4694_s6 = inlined_call_operand.vmem [shape: bf16[32,96], index: 6, kind: input, shape index: {}]   ;;  %s4695_s7 = inlined_call_operand.vmem [shape: f32[1,96], index: 7, kind: input, shape index: {}]   ;;  %s4696_s8 = inlined_call_operand.vmem [shape: bf16[32,32], index: 8, kind: input, shape index: {}]   ;;  %s4697_s9 = inlined_call_operand.hbm [shape: f32[1,32], index: 9, kind: input, shape index: {}]   ;;  %s4698_s10 = inlined_call_operand.hbm [shape: f32[1,32], index: 10, kind: input, shape index: {}]   ;;  %s4699_s11 = inlined_call_operand.hbm [shape: f32[1,32], index: 11, kind: input, shape index: {}]   ;;  %s4700_s12 = inlined_call_operand.hbm [shape: bf16[32,32], index: 12, kind: input, shape index: {}]   ;;  %s4701_s13 = inlined_call_operand.hbm [shape: f32[1,32], index: 13, kind: input, shape index: {}]   ;;  %s4702_s14 = inlined_call_operand.hbm [shape: bf16[32,64], index: 14, kind: input, shape index: {}]   ;;  %s4703_s15 = inlined_call_operand.hbm [shape: f32[1,64], index: 15, kind: input, shape index: {}]   ;;  %s4704_s16 = inlined_call_operand.hbm [shape: bf16[32,32], index: 16, kind: input, shape index: {}]   ;;  %s4705_s17 = inlined_call_operand.hbm [shape: f32[1,32], index: 17, kind: input, shape index: {}]   ;;  %s4706_s18 = inlined_call_operand.hbm [shape: f32[1,32], index: 18, kind: input, shape index: {}]   ;;  %s4707_s19 = inlined_call_operand.hbm [shape: f32[1,32], index: 19, kind: input, shape index: {}]   ;;  %s4708_s20 = inlined_call_operand.hbm [shape: bf16[32,64], index: 20, kind: input, shape index: {}]   ;;  %s4709_s21 = inlined_call_operand.hbm [shape: f32[1,64], index: 21, kind: input, shape index: {}]   ;;  %s4710_s22 = inlined_call_operand.vmem [shape: bf16[64,32], index: 22, kind: input, shape index: {}]   ;;  %s4711_s23 = inlined_call_operand.hbm [shape: f32[1,32], index: 23, kind: input, shape index: {}]   ;;  %s4712_s24 = inlined_call_operand.vmem [shape: f32[1,32], index: 24, kind: input, shape index: {}]   ;;  %s4713_s25 = inlined_call_operand.vmem [shape: f32[1,32], index: 25, kind: input, shape index: {}]   ;;  %s4714_s26 = inlined_call_operand.vmem [shape: f32[2,8,32], index: 26, kind: output, shape index: {}]  }
   0x1   :  { %4717 = sst [smem:[#allocation32_spill]] %s4688_s0 }
   0x2   :  { %4718 = sst [smem:[#allocation33_spill]] %s4689_s1 }
   0x3   :  { %4719 = sst [smem:[#allocation34_spill]] %s4690_s2 }
   0x4   :  { %4720 = sst [smem:[#allocation35_spill]] %s4691_s3 }
   0x5   :  { %4721 = sst [smem:[#allocation36_spill]] %s4692_s4 }
   0x6   :  { %4722 = sst [smem:[#allocation37_spill]] %s4693_s5 }
   0x7   :  { %4723 = sst [smem:[#allocation38_spill]] %s4694_s6 }
   0x8   :  { %4724 = sst [smem:[#allocation39_spill]] %s4695_s7 }
   0x9   :  { %4725 = sst [smem:[#allocation40_spill]] %s4696_s8 }
   0xa   :  { %4726 = sst [smem:[#allocation41_spill]] %s4697_s9 }
   0xb   :  { %4727 = sst [smem:[#allocation42_spill]] %s4698_s10 }
   0xc   :  { %4728 = sst [smem:[#allocation43_spill]] %s4700_s12 }
   0xd   :  { %4729 = sst [smem:[#allocation44_spill]] %s4702_s14 }
   0xe   :  { %4730 = sst [smem:[#allocation45_spill]] %s4704_s16 }
   0xf   :  { %31 = vsyncpa [#allocation3], 0 }
  0x10   :  { %32 = vsyncpa [#allocation5], 0 }
  0x11   :  { %33 = vsyncpa [#allocation8], 0 }
  0x12   :  { %34 = vsyncpa [#allocation11], 0 }
  0x13   :  { %35 = vsyncpa [#allocation14], 0 }
  0x14   :  { %36 = vsyncpa [#allocation17], 0 }
  0x15   :  { %37 = vsyncpa [#allocation20], 0 }
  0x16   :  { %38 = vsyncpa [#allocation23], 0  ;;  %s4040_s27 = smov 0  }
  0x17 LB: > { %s4731_s3 = sld [smem:[#allocation42_spill]]  ;;  %s4049_s28 = sadd.s32 4294967295, %s3876_s27   ;;  %s3876_s27 = sphi %s4040_s27, %s44_s27  }
  0x18   : > { %p3057_p0 = scmp.ge.s32.totalorder %s3876_s27, 1  ;;  %p631_p1 = scmp.lt.s32.totalorder %s3876_s27, 3 }
  0x19   : > { %p3295_p2 = scmp.eq.s32.totalorder %s4049_s28, 0  ;;  %s3878_s4 = smov [#allocation4]  }
  0x1a   : > { %p4054_p3 = pnand %p3057_p0, %p631_p1  ;;  %s678_s29 = sshll.u32 %s3878_s4, 4  ;;  %s679_s29 = int_to_ptr.vmem [resolvable:$true] %s678_s29 }
  0x1b   : > { %s4733_s12 = sld [smem:[#allocation43_spill]]  ;;  %s3879_s5 = smov [#allocation7]  }
  0x1c   : > { %p3252_p4 = pneg %p4054_p3  ;;  %s701_s10 = sshll.u32 %s3879_s5, 4  ;;  %s702_s10 = int_to_ptr.vmem [resolvable:$true] %s701_s10 }
  0x1d   : > { %s676_s7 = sshll.u32 %s4731_s3, 4  ;;  %s4735_s14 = sld [smem:[#allocation44_spill]]  ;;  %s677_s7 = int_to_ptr.hbm [resolvable:$true] %s676_s7 }
  0x1e   : > { %p4065_p5 = pnand %p3295_p2, %p3252_p4  ;;  %s3880_s25 = smov 64  }
  0x1f   : > { %s3881_s3 = smov 4   ;;  %s3882_s4 = smov [#allocation10]  }
  0x20   : > { %3258 = dma.hbm_to_vmem [thread:$0]  (!%p4065_p5), %s677_s7, 16, %s679_s29, [#allocation5]  }
  0x21   : > { %s699_s30 = sshll.u32 %s4733_s12, 4  ;;  %s727_s0 = sshll.u32 %s3882_s4, 4  ;;  %s700_s30 = int_to_ptr.hbm [resolvable:$true] %s699_s30  ;;  %s728_s0 = int_to_ptr.vmem [resolvable:$true] %s727_s0 }
  0x22   : > { %3264 = dma.hbm_to_vmem [thread:$0]  (!%p4065_p5), %s700_s30, 256, %s702_s10, [#allocation8], %s3880_s25, %s3880_s25, %s3881_s3  }
  0x23   : > { %s725_s24 = sshll.u32 %s4735_s14, 4  ;;  %s4736_s16 = sld [smem:[#allocation45_spill]]  ;;  %s726_s24 = int_to_ptr.hbm [resolvable:$true] %s725_s24 }
  0x24   : > { %3270 = dma.hbm_to_vmem [thread:$0]  (!%p4065_p5), %s726_s24, 256, %s728_s0, [#allocation11], %s3880_s25, %s3880_s25, %s3881_s3  }
  0x25   : > { %s778_s6 = sshll.u32 %s4706_s18, 4  ;;  %s3883_s30 = smov [#allocation13]   ;;  %s779_s6 = int_to_ptr.hbm [resolvable:$true] %s778_s6 }
  0x26   : > { %s753_s10 = sshll.u32 %s3883_s30, 4  ;;  %s3884_s1 = smov [#allocation16]   ;;  %s754_s10 = int_to_ptr.vmem [resolvable:$true] %s753_s10 }
  0x27   : > { %s780_s4 = sshll.u32 %s3884_s1, 4  ;;  %s801_s24 = sshll.u32 %s4708_s20, 4  ;;  %s781_s4 = int_to_ptr.vmem [resolvable:$true] %s780_s4  ;;  %s802_s24 = int_to_ptr.hbm [resolvable:$true] %s801_s24 }
  0x28   : > { %3282 = dma.hbm_to_vmem [thread:$0]  (!%p4065_p5), %s779_s6, 16, %s781_s4, [#allocation17]  }
  0x29   : > { %s751_s12 = sshll.u32 %s4736_s16, 4  ;;  %s4737_s29 = sld [smem:[#allocation41_spill]]  ;;  %s752_s12 = int_to_ptr.hbm [resolvable:$true] %s751_s12 }
  0x2a   : > { %3276 = dma.hbm_to_vmem [thread:$0]  (!%p4065_p5), %s752_s12, 256, %s754_s10, [#allocation14], %s3880_s25, %s3880_s25, %s3881_s3  }
  0x2b   : > { %s3885_s14 = smov [#allocation19]   ;;  %s3886_s12 = smov [#allocation2]  }
  0x2c   : > { %s803_s16 = sshll.u32 %s3885_s14, 4  ;;  %s666_s10 = sshll.u32 %s3886_s12, 4  ;;  %s804_s16 = int_to_ptr.vmem [resolvable:$true] %s803_s16  ;;  %s667_s10 = int_to_ptr.vmem [resolvable:$true] %s666_s10 }
  0x2d   : > { %3288 = dma.hbm_to_vmem [thread:$0]  (!%p4065_p5), %s802_s24, 256, %s804_s16, [#allocation20], %s3880_s25, %s3880_s25, %s3881_s3  }
  0x2e   : > { %s688_s6 = sshll.u32 %s4699_s11, 4  ;;  %s714_s5 = sshll.u32 %s4701_s13, 4  ;;  %s689_s6 = int_to_ptr.hbm [resolvable:$true] %s688_s6  ;;  %s715_s5 = int_to_ptr.hbm [resolvable:$true] %s714_s5 }
  0x2f   : > { %s664_s30 = sshll.u32 %s4737_s29, 4  ;;  %s3887_s0 = smov [#allocation6]   ;;  %s665_s30 = int_to_ptr.hbm [resolvable:$true] %s664_s30 }
  0x30   : > { %3255 = dma.hbm_to_vmem [thread:$0]  (!%p4065_p5), %s665_s30, 16, %s667_s10, [#allocation3]  }
  0x31   : > { %s690_s7 = sshll.u32 %s3887_s0, 4  ;;  %s3888_s16 = smov [#allocation9]   ;;  %s691_s7 = int_to_ptr.vmem [resolvable:$true] %s690_s7 }
  0x32   : > { %3261 = dma.hbm_to_vmem [thread:$0]  (!%p4065_p5), %s689_s6, 16, %s691_s7, [#allocation5]  }
  0x33   : > { %s716_s25 = sshll.u32 %s3888_s16, 4  ;;  %s740_s29 = sshll.u32 %s4703_s15, 4  ;;  %s717_s25 = int_to_ptr.vmem [resolvable:$true] %s716_s25  ;;  %s741_s29 = int_to_ptr.hbm [resolvable:$true] %s740_s29 }
  0x34   : > { %3267 = dma.hbm_to_vmem [thread:$0]  (!%p4065_p5), %s715_s5, 16, %s717_s25, [#allocation8]  }
  0x35   : > { %s766_s10 = sshll.u32 %s4705_s17, 4  ;;  %s3889_s1 = smov [#allocation12]   ;;  %s767_s10 = int_to_ptr.hbm [resolvable:$true] %s766_s10 }
  0x36   : > { %s742_s9 = sshll.u32 %s3889_s1, 4  ;;  %s3890_s6 = smov [#allocation15]   ;;  %s743_s9 = int_to_ptr.vmem [resolvable:$true] %s742_s9 }
  0x37   : > { %3273 = dma.hbm_to_vmem [thread:$0]  (!%p4065_p5), %s741_s29, 16, %s743_s9, [#allocation11]  }
  0x38   : > { %s768_s4 = sshll.u32 %s3890_s6, 4  ;;  %s790_s7 = sshll.u32 %s4707_s19, 4  ;;  %s769_s4 = int_to_ptr.vmem [resolvable:$true] %s768_s4  ;;  %s791_s7 = int_to_ptr.hbm [resolvable:$true] %s790_s7 }
  0x39   : > { %3279 = dma.hbm_to_vmem [thread:$0]  (!%p4065_p5), %s767_s10, 16, %s769_s4, [#allocation14]  }
  0x3a   : > { %s816_s25 = sshll.u32 %s4709_s21, 4  ;;  %s3891_s3 = smov [#allocation18]   ;;  %s817_s25 = int_to_ptr.hbm [resolvable:$true] %s816_s25 }
  0x3b   : > { %s792_s24 = sshll.u32 %s3891_s3, 4  ;;  %s3892_s29 = smov [#allocation21]   ;;  %s793_s24 = int_to_ptr.vmem [resolvable:$true] %s792_s24 }
  0x3c   : > { %3285 = dma.hbm_to_vmem [thread:$0]  (!%p4065_p5), %s791_s7, 16, %s793_s24, [#allocation17]  }
  0x3d   : > { %s818_s30 = sshll.u32 %s3892_s29, 4  ;;  %s831_s9 = sshll.u32 %s4711_s23, 4  ;;  %s819_s30 = int_to_ptr.vmem [resolvable:$true] %s818_s30  ;;  %s832_s9 = int_to_ptr.hbm [resolvable:$true] %s831_s9 }
  0x3e   : > { %3291 = dma.hbm_to_vmem [thread:$0]  (!%p4065_p5), %s817_s25, 16, %s819_s30, [#allocation20]  }
  0x3f   : > { %s3893_s10 = smov [#allocation22]   ;;  %866 = sbr.rel (%p4054_p3) target bundleno = 3585 (0xe01), region = 124 }
  0x40   : > { %s833_s6 = sshll.u32 %s3893_s10, 4  ;;  %s834_s6 = int_to_ptr.vmem [resolvable:$true] %s833_s6 }
  0x41   : > { %3294 = dma.hbm_to_vmem [thread:$0]  (!%p4065_p5), %s832_s9, 16, %s834_s6, [#allocation23]  }
  0x44   : > { %3843 = dma.done.wait (%p3295_p2), [#allocation3], 16  }
  0x45   : > { %3845 = vsyncadd (%p3295_p2), [#allocation3], 4294967280 }
  0x46   : > { %3847 = dma.done.wait (%p3295_p2), [#allocation5], 32  }
  0x47   : > { %3849 = vsyncadd (%p3295_p2), [#allocation5], 4294967264 }
  0x48   : > { %3851 = dma.done.wait (%p3295_p2), [#allocation8], 272  }
  0x49   : > { %3853 = vsyncadd (%p3295_p2), [#allocation8], 4294967024 }
  0x4a   : > { %3855 = dma.done.wait (%p3295_p2), [#allocation11], 272  }
  0x4b   : > { %3857 = vsyncadd (%p3295_p2), [#allocation11], 4294967024 }
  0x4c   : > { %3859 = dma.done.wait (%p3295_p2), [#allocation14], 272  }
  0x4d   : > { %3861 = vsyncadd (%p3295_p2), [#allocation14], 4294967024 }
  0x4e   : > { %3863 = dma.done.wait (%p3295_p2), [#allocation17], 32  }
  0x4f   : > { %3865 = vsyncadd (%p3295_p2), [#allocation17], 4294967264 }
  0x50   : > { %3867 = dma.done.wait (%p3295_p2), [#allocation20], 272  }
  0x51   : > { %3869 = vsyncadd (%p3295_p2), [#allocation20], 4294967024 }
  0x52   : > { %3871 = dma.done.wait (%p3295_p2), [#allocation23], 16  }
  0x53   : > { %3873 = vsyncadd (%p3295_p2), [#allocation23], 4294967280  ;;  %p1004_p6 = scmp.lt.s32.totalorder %s4049_s28, 1  ;;  %s4738_s14 = sld [smem:[#allocation32_spill]]  ;;  %vm1020_vm0 = vcmask 261120   ;;  %v3894_v2 = vmov 32.0  }
  0x54   : > { %3372 = vrcp.f32 %v3894_v2  ;;  %s4739_s16 = sld [smem:[#allocation38_spill]]  ;;  %s3895_s4 = smov 104   ;;  %v3900_v58 = vmov 1983009808   ;;  %vm1149_vm8 = vcmask 1047556   ;;  %vm1493_vm9 = vcmask 64512  }
  0x55   : > { %s4748_s28 = smov (!%p1004_p6, %s4049_s28), 1  ;;  %s4740_s30 = sld [smem:[#allocation36_spill]]  ;;  %v1140_v59 = vunpack.c.l.s4 %v3900_v58  ;;  %vm1621_vm10 = vcmask 1043456   ;;  %vm1819_vm11 = vcmask 130048   ;;  %vm1821_vm12 = vcmask 195584  }
  0x56   : > { %s3088_s8 = sshll.u32 %s4748_s28, 3  ;;  %s4741_s9 = sld [smem:[#allocation37_spill]] }
  0x57   : > { %s4742_s2 = sld [smem:[#allocation39_spill]]  ;;  %s3898_s7 = smov 112  }
  0x58   : > { %s3899_s5 = smov 64   ;;  %s4743_s24 = sld [smem:[#allocation34_spill]] }
  0x59   : > { %s1007_s0 = scalar_lea.vmem %s4738_s14, %s3088_s8  ;;  %s3896_s14 = smov 120  }
  0x5a   : > { %v4189_v0 = vld [vmem:[%s1007_s0] sm:$0xff]  ;;  %v3373_v3 = vpop.eup %3372  ;;  %v3181_v14 = vld [vmem:[%s4739_s16 + $0x8] sm:$0xff]  ;;  %s3897_s0 = smov 96   ;;  %s3902_s29 = smov 16  }
  0x5b   : > { %v1021_v1 = vsel %vm1020_vm0, %v4189_v0, 0.0  ;;  %v1025_v4 = vmul.f32 32.0, %v3373_v3  ;;  %vm1029_vm1 = vweird.f32 %v3373_v3  ;;  %1104 = vmatpush.bf16.msra.mxu0 %v3181_v14  ;;  %v3180_v15 = vld [vmem:[%s4739_s16] sm:$0xff]  ;;  %s3904_s12 = smov 8   ;;  %s4744_s10 = sld [smem:[#allocation40_spill]] }
  0x5c   : > { %1022 = vadd.xlane.f32.xlu0 %v1021_v1  ;;  %v3358_v33 = vld [vmem:[%s4740_s30] ss:$0 sm:$0xff]  ;;  %v4234_v1 = vunpack.c.0.s8 %v1140_v59  ;;  %s3903_s30 = smov 24  }
  0x5d   : > { %v1026_v5 = vsub.f32 1.0, %v1025_v4  ;;  %v3359_v40 = vld [vmem:[%s4741_s9] ss:$0 sm:$0xff] }
  0x5e   : > { %v3360_v45 = vld [vmem:[%s4742_s2] ss:$0 sm:$0xff] }
  0x5f   : > { %v1027_v6 = vmul.f32 %v3373_v3, %v1026_v5  ;;  %1105 = vmatpush.bf16.msra.mxu0 %v3180_v15 }
  0x61   : > { %v1028_v7 = vadd.f32 %v3373_v3, %v1027_v6 }
  0x63   : > { %v4193_v8 = vsel %vm1029_vm1, %v3373_v3, %v1028_v7  ;;  %v3901_v3 = vmov 1934713408  }
  0x64   : > { %v1154_v4 = vunpack.c.l.s4 %v3901_v3 }
  0x66   : > { %v4238_v14 = vunpack.c.0.s8 %v1154_v4 }
  0xcf   : > { %v1023_v9 = vpop.xlane.xlu0 %1022 }
  0xd0   : > { %v1031_v10 = vmul.f32 %v4193_v8, %v1023_v9 }
  0xd2   : > { %v1032_v11 = vsub.f32 %v4189_v0, %v1031_v10 }
  0xd4   : > { %v1033_v12 = vmul.f32 %v1032_v11, %v1032_v11  ;;  %v1041_v38 = vmul.f32 %v3358_v33, %v1032_v11 }
  0xd6   : > { %v1034_v13 = vsel %vm1020_vm0, %v1033_v12, 0.0 }
  0xd7   : > { %1035 = vadd.xlane.f32.xlu0 %v1034_v13 }
 0x14a   : > { %v1036_v16 = vpop.xlane.xlu0 %1035 }
 0x14b   : > { %v1037_v17 = vmul.f32 0.032258064, %v1036_v16 }
 0x14d   : > { %3374 = vrsqrt.f32 %v1037_v17  ;;  %vm1049_vm2 = vcmp.eq.f32.partialorder %v1037_v17, inf  ;;  %v1052_v25 = vand.u32 2147483648, %v1037_v17  ;;  %vm1051_vm3 = vcmp.eq.f32.partialorder %v1037_v17, 0.0 }
 0x153   : > { %v3375_v18 = vpop.eup %3374 }
 0x154   : > { %v1043_v19 = vmul.f32 %v3375_v18, %v1037_v17 }
 0x156   : > { %v1044_v20 = vmul.f32 %v3375_v18, %v1043_v19 }
 0x158   : > { %v1045_v21 = vmul.f32 0.5, %v1044_v20 }
 0x15a   : > { %v1046_v22 = vsub.f32 1.5, %v1045_v21 }
 0x15c   : > { %v1047_v23 = vmul.f32 %v3375_v18, %v1046_v22 }
 0x15e   : > { %v1048_v24 = vmul.f32 %v1047_v23, %v1037_v17 }
 0x160   : > { %v1050_v26 = vsel %vm1049_vm2, %v1037_v17, %v1048_v24 }
 0x161   : > { %v1053_v27 = vsel %vm1051_vm3, %v1052_v25, %v1050_v26 }
 0x162   : > { %v1054_v28 = vadd.f32 1e-06, %v1053_v27 }
 0x164   : > { %3376 = vrcp.f32 %v1054_v28  ;;  %v1066_v32 = vand.u32 2147483648, %v1054_v28  ;;  %v1064_v35 = vand.u32 2147483647, %v1054_v28  ;;  %vm1060_vm5 = vweird.f32 %v1054_v28 }
 0x166   : > { %v1067_v37 = vor.u32 1.1754944e-38, %v1066_v32  ;;  %vm1065_vm7 = vcmp.eq.f32.partialorder %v1064_v35, 8.507059e+37 }
 0x16a   : > { %v3377_v29 = vpop.eup %3376 }
 0x16b   : > { %v1056_v30 = vmul.f32 %v3377_v29, %v1054_v28  ;;  %vm1061_vm4 = vweird.f32 %v3377_v29 }
 0x16c   : > { %vm1062_vm6 = vmor %vm1060_vm5, %vm1061_vm4 }
 0x16d   : > { %v1057_v31 = vsub.f32 1.0, %v1056_v30 }
 0x16f   : > { %v1058_v34 = vmul.f32 %v3377_v29, %v1057_v31 }
 0x171   : > { %v1059_v36 = vadd.f32 %v3377_v29, %v1058_v34 }
 0x173   : > { %v1063_v39 = vsel %vm1062_vm6, %v3377_v29, %v1059_v36 }
 0x174   : > { %v1068_v41 = vsel %vm1065_vm7, %v1067_v37, %v1063_v39 }
 0x175   : > { %v1069_v42 = vmul.f32 %v1068_v41, %v1041_v38 }
 0x177   : > { %v1073_v43 = vadd.f32 %v3359_v40, %v1069_v42 }
 0x179   : > { %v1074_v44 = vpack.c.bf16 %v1073_v43, %v1073_v43 }
 0x17b   : > { %3099 = vmatmul.msk.bf16.vlgmr.msra.gmra.mxu0 %vm1020_vm0, %v1074_v44 }
 0x1f8   : > { %v1107_v46 = vpop.f32.mrf.mxu0 }
 0x1f9   : > { %v1108_v47 = vadd.f32 %v3360_v45, %v1107_v46 }
 0x1fb   : > { %v1241_v48 = vpack.c.bf16 %v1108_v47, %v1108_v47  ;;  %v1117_v50 = vmul.f32 0.35355338, %v1108_v47 }
 0x1fd   : > { %1247 = vrot.lane.b32.xlu2 %v1241_v48, %s3895_s4  ;;  %1243 = vrot.lane.b32.xlu1 %v1241_v48, %s3896_s14  ;;  %v1118_v51 = vpack.c.bf16 %v1117_v50, %v1117_v50 }
 0x1ff   : > { %v1129_v13 = vshrl.u32 %v1118_v51, 16 }
 0x200   : > { %v1109_v49 = vpop.f32.mrf.mxu0 }
 0x205   : > { %1249 = vrot.lane.b32.xlu2 %v1241_v48, %s3897_s0  ;;  %1245 = vrot.lane.b32.xlu1 %v1241_v48, %s3898_s7 }
 0x20d   : > { %1120 = vrot.lane.b32.xlu1 %v1118_v51, %s3896_s14 }
 0x257   : > { %v4219_v52 = vpop.permute.xlu2 %1247 }
 0x258   : > { %1255 = vrot.lane.b32.xlu2 %v4219_v52, %s3897_s0 }
 0x25f   : > { %v1250_v55 = vpop.permute.xlu2 %1249 }
 0x260   : > { %1122 = vrot.lane.b32.xlu2 %v1118_v51, %s3898_s7  ;;  %v1260_v61 = vshrl.u32 %v1250_v55, 16 }
 0x26f   : > { %v4224_v53 = vpop.permute.xlu1 %1243 }
 0x270   : > { %1251 = vrot.lane.b32.xlu0 %v4224_v53, %s3897_s0 }
 0x277   : > { %v4228_v54 = vpop.permute.xlu1 %1245 }
 0x278   : > { %1371 = vrot.lane.b32.xlu0 %v1241_v48, %s3899_s5  ;;  %1253 = vrot.lane.b32.xlu1 %v4228_v54, %s3897_s0 }
 0x27f   : > { %v1121_v56 = vpop.permute.xlu1 %1120 }
 0x280   : > { %1124 = vrot.lane.b32.xlu1 %v1118_v51, %s3895_s4  ;;  %v1130_v6 = vshrl.u32 %v1121_v56, 16  ;;  %v1128_v15 = vpack.i.b16 %v1121_v56, %v1118_v51 }
 0x282   : > { %v1131_v19 = vpack.i.b16 %v1130_v6, %v1129_v13  ;;  %v1142_v26 = vperm.slane %v1128_v15, %v4234_v1 }
 0x284   : > { %v1169_v30 = vperm.slane %v1131_v19, %v4234_v1  ;;  %v1151_v43 = vrot.slane %v1142_v26, 4 }
 0x286   : > { %v1177_v47 = vrot.slane %v1169_v30, 4 }
 0x2b2   : > { %v1256_v63 = vpop.permute.xlu2 %1255 }
 0x2b3   : > { %v1267_v9 = vshrl.u32 %v1256_v63, 16 }
 0x2ba   : > { %v1123_v24 = vpop.permute.xlu2 %1122 }
 0x2bb   : > { %v1135_v35 = vshrl.u32 %v1123_v24, 16 }
 0x2e2   : > { %v1252_v57 = vpop.permute.xlu0 %1251 }
 0x2e3   : > { %v1261_v60 = vshrl.u32 %v1252_v57, 16  ;;  %v1259_v62 = vpack.i.b16 %v1252_v57, %v1250_v55 }
 0x2e5   : > { %v1262_v2 = vpack.i.b16 %v1261_v60, %v1260_v61  ;;  %v1273_v5 = vperm.slane %v1259_v62, %v4234_v1 }
 0x2e7   : > { %v1299_v10 = vperm.slane %v1262_v2, %v4234_v1  ;;  %v1281_v16 = vrot.slane %v1273_v5, 4 }
 0x2e9   : > { %v1307_v20 = vrot.slane %v1299_v10, 4 }
 0x2ea   : > { %v1254_v7 = vpop.permute.xlu1 %1253 }
 0x2eb   : > { %v1265_v11 = vpack.i.b16 %v1256_v63, %v1254_v7  ;;  %v1266_v12 = vshrl.u32 %v1254_v7, 16 }
 0x2ed   : > { %v1268_v17 = vpack.i.b16 %v1267_v9, %v1266_v12  ;;  %v1278_v18 = vperm.slane %v1265_v11, %v4234_v1 }
 0x2ef   : > { %v1279_v21 = vrot.slane %v1278_v18, 4  ;;  %v1282_v22 = vsel %vm1149_vm8, %v1278_v18, %v1281_v16  ;;  %v1304_v23 = vperm.slane %v1268_v17, %v4234_v1 }
 0x2f0   : > { %v1290_v25 = vperm.slane %v1282_v22, %v4238_v14 }
 0x2f1   : > { %v1280_v27 = vsel %vm1149_vm8, %v1279_v21, %v1273_v5  ;;  %v1305_v28 = vrot.slane %v1304_v23, 4  ;;  %v1308_v29 = vsel %vm1149_vm8, %v1304_v23, %v1307_v20 }
 0x2f2   : > { %v1286_v31 = vperm.slane %v1280_v27, %v4238_v14  ;;  %v1293_v32 = vrot.slane %v1290_v25, 4  ;;  %v1316_v33 = vperm.slane %v1308_v29, %v4238_v14  ;;  %v1125_v34 = vpop.permute.xlu1 %1124 }
 0x2f3   : > { %v1306_v36 = vsel %vm1149_vm8, %v1305_v28, %v1299_v10  ;;  %v1134_v37 = vpack.i.b16 %v1125_v34, %v1123_v24  ;;  %v1136_v38 = vshrl.u32 %v1125_v34, 16 }
 0x2f4   : > { %v1291_v39 = vrot.slane %v1286_v31, 4  ;;  %v1294_v40 = vsel %vm1149_vm8, 0, %v1293_v32  ;;  %v1312_v41 = vperm.slane %v1306_v36, %v4238_v14  ;;  %v1319_v42 = vrot.slane %v1316_v33, 4 }
 0x2f5   : > { %v1326_v44 = vrot.slane %v1294_v40, 4  ;;  %v1137_v45 = vpack.i.b16 %v1136_v38, %v1135_v35  ;;  %v1147_v46 = vperm.slane %v1134_v37, %v4234_v1  ;;  %v1321_v60 = vsel %vm1149_vm8, %v1293_v32, %v1286_v31 }
 0x2f6   : > { %v1292_v48 = vsel %vm1149_vm8, 0, %v1291_v39  ;;  %v1317_v49 = vrot.slane %v1312_v41, 4  ;;  %v1320_v50 = vsel %vm1149_vm8, 0, %v1319_v42  ;;  %v1340_v7 = vsel %vm1149_vm8, %v1319_v42, %v1312_v41 }
 0x2f7   : > { %v1345_v51 = vrot.slane %v1320_v50, 4  ;;  %v1148_v55 = vrot.slane %v1147_v46, 4  ;;  %v1152_v56 = vsel %vm1149_vm8, %v1147_v46, %v1151_v43  ;;  %v1174_v57 = vperm.slane %v1137_v45, %v4234_v1 }
 0x2f8   : > { %v1160_v58 = vperm.slane %v1152_v56, %v4238_v14  ;;  %v1318_v59 = vsel %vm1149_vm8, 0, %v1317_v49  ;;  %v1327_v61 = vsel %vm1149_vm8, %v1326_v44, %v1292_v48  ;;  %v1325_v10 = vperm.slane %v1321_v60, %v4234_v1 }
 0x2f9   : > { %v1150_v62 = vsel %vm1149_vm8, %v1148_v55, %v1142_v26  ;;  %v1175_v63 = vrot.slane %v1174_v57, 4  ;;  %v1178_v2 = vsel %vm1149_vm8, %v1174_v57, %v1177_v47  ;;  %v1331_v3 = vperm.slane %v1327_v61, %v4234_v1 }
 0x2fa   : > { %v1156_v4 = vperm.slane %v1150_v62, %v4238_v14  ;;  %v1163_v5 = vrot.slane %v1160_v58, 4  ;;  %v1186_v6 = vperm.slane %v1178_v2, %v4238_v14  ;;  %v1346_v12 = vsel %vm1149_vm8, %v1345_v51, %v1318_v59 }
 0x2fb   : > { %v1176_v9 = vsel %vm1149_vm8, %v1175_v63, %v1169_v30  ;;  %v1332_v11 = vrot.slane %v1331_v3, 4  ;;  %v1344_v20 = vperm.slane %v1340_v7, %v4234_v1  ;;  %v1350_v21 = vperm.slane %v1346_v12, %v4234_v1 }
 0x2fc   : > { %v1161_v13 = vrot.slane %v1156_v4, 4  ;;  %v1164_v15 = vsel %vm1149_vm8, 0, %v1163_v5  ;;  %v1182_v16 = vperm.slane %v1176_v9, %v4238_v14  ;;  %v1189_v17 = vrot.slane %v1186_v6, 4 }
 0x2fd   : > { %v1196_v18 = vrot.slane %v1164_v15, 4  ;;  %v1333_v19 = vsel %vm1149_vm8, %v1332_v11, %v1325_v10  ;;  %v1191_v26 = vsel %vm1149_vm8, %v1163_v5, %v1156_v4  ;;  %v1351_v28 = vrot.slane %v1350_v21, 4 }
 0x2fe   : > { %v1162_v22 = vsel %vm1149_vm8, 0, %v1161_v13  ;;  %v1187_v23 = vrot.slane %v1182_v16, 4  ;;  %v1190_v24 = vsel %vm1149_vm8, 0, %v1189_v17  ;;  %v1337_v25 = vperm.slane %v1333_v19, %v4238_v14 }
 0x2ff   : > { %v1215_v27 = vrot.slane %v1190_v24, 4  ;;  %v1197_v29 = vsel %vm1149_vm8, %v1196_v18, %v1162_v22  ;;  %v1352_v33 = vsel %vm1149_vm8, %v1351_v28, %v1344_v20  ;;  %v1195_v36 = vperm.slane %v1191_v26, %v4234_v1 }
 0x300   : > { %v1188_v30 = vsel %vm1149_vm8, 0, %v1187_v23  ;;  %v1338_v31 = vrot.slane %v1337_v25, 4  ;;  %v1201_v32 = vperm.slane %v1197_v29, %v4234_v1  ;;  %v1356_v35 = vperm.slane %v1352_v33, %v4238_v14  ;;  %v1372_v33 = vpop.permute.xlu0 %1371 }
 0x301   : > { %v1216_v34 = vsel %vm1149_vm8, %v1215_v27, %v1188_v30  ;;  %v1210_v38 = vsel %vm1149_vm8, %v1189_v17, %v1182_v16  ;;  %v1362_v39 = vshrl.u32 %v1337_v25, 16  ;;  %v1111_v16 = vld [vmem:[%s4743_s24] sm:$0xff]  ;;  %s4745_s24 = sld [smem:[#allocation33_spill]] }
 0x302   : > { %v1202_v37 = vrot.slane %v1201_v32, 4  ;;  %v1339_v40 = vsel %vm1149_vm8, 0, %v1338_v31  ;;  %v1220_v41 = vperm.slane %v1216_v34, %v4234_v1  ;;  %v1361_v42 = vpack.i.b16 %v1356_v35, %v1337_v25 }
 0x303   : > { %v1363_v43 = vshrl.u32 %v1356_v35, 16  ;;  %v1357_v44 = vrot.slane %v1356_v35, 4  ;;  %v1214_v47 = vperm.slane %v1210_v38, %v4234_v1  ;;  %v1368_v56 = vshrl.u32 %v1339_v40, 16 }
 0x304   : > { %v1203_v45 = vsel %vm1149_vm8, %v1202_v37, %v1195_v36  ;;  %v1221_v48 = vrot.slane %v1220_v41, 4  ;;  %v1498_v49 = vsel %vm1493_vm9, %v1361_v42, 0 }
 0x305   : > { %v1207_v46 = vperm.slane %v1203_v45, %v4238_v14  ;;  %v1364_v50 = vpack.i.b16 %v1363_v43, %v1362_v39  ;;  %v1358_v51 = vsel %vm1149_vm8, 0, %v1357_v44  ;;  %1507 = vmatpush.bf16.xpose.msra.mxu1 %v1498_v49 }
 0x306   : > { %v1367_v55 = vpack.i.b16 %v1358_v51, %v1339_v40  ;;  %v1369_v57 = vshrl.u32 %v1358_v51, 16  ;;  %v1222_v58 = vsel %vm1149_vm8, %v1221_v48, %v1214_v47  ;;  %v1382_v48 = vshrl.u32 %v1372_v33, 16 }
 0x307   : > { %v1517_v59 = vsel %vm1493_vm9, %v1364_v50, 0  ;;  %v1226_v60 = vperm.slane %v1222_v58, %v4238_v14  ;;  %v1208_v61 = vrot.slane %v1207_v46, 4  ;;  %v1232_v2 = vshrl.u32 %v1207_v46, 16 }
 0x308   : > { %1526 = vmatpush.bf16.xpose.msra.mxu2 %v1517_v59  ;;  %v1536_v62 = vsel %vm1493_vm9, %v1367_v55, 0  ;;  %v1370_v63 = vpack.i.b16 %v1369_v57, %v1368_v56 }
 0x309   : > { %1545 = vmatpush.bf16.xpose.msra.mxu3 %v1536_v62  ;;  %v1231_v3 = vpack.i.b16 %v1226_v60, %v1207_v46  ;;  %v1233_v4 = vshrl.u32 %v1226_v60, 16  ;;  %v1209_v5 = vsel %vm1149_vm8, 0, %v1208_v61  ;;  %v1227_v6 = vrot.slane %v1226_v60, 4 }
 0x30a   : > { %v1555_v7 = vsel %vm1493_vm9, %v1370_v63, 0  ;;  %v1238_v12 = vshrl.u32 %v1209_v5, 16 }
 0x30b   : > { %1564 = vmatpush.bf16.xpose.msrb.mxu0 %v1555_v7  ;;  %v1234_v9 = vpack.i.b16 %v1233_v4, %v1232_v2  ;;  %v1228_v10 = vsel %vm1149_vm8, 0, %v1227_v6 }
 0x30c   : > { %v1237_v11 = vpack.i.b16 %v1228_v10, %v1209_v5  ;;  %v1239_v13 = vshrl.u32 %v1228_v10, 16  ;;  %3100 = vmatmul.msk.bf16.vlgmr.msra.gmra.mxu1 %vm1493_vm9, %v1231_v3 }
 0x30e   : > { %v1240_v15 = vpack.i.b16 %v1239_v13, %v1238_v12 }
 0x30f   : > { %3101 = vmatmul.msk.bf16.vlgmr.msra.gmra.mxu2 %vm1493_vm9, %v1234_v9 }
 0x310   : > { %3102 = vmatmul.msk.bf16.vlgmr.msra.gmra.mxu3 %vm1493_vm9, %v1237_v11 }
 0x312   : > { %3103 = vmatmul.msk.bf16.vlgmr.msrb.gmra.mxu0 %vm1493_vm9, %v1240_v15 }
 0x389   : > { %v1509_v17 = vpop.f32.mrf.mxu1 }
 0x38a   : > { %v1510_v18 = vadd.f32 %v1509_v17, %v1111_v16 }
 0x38c   : > { %v1570_v19 = vsel %vm1493_vm9, %v1510_v18, -inf }
 0x38d   : > { %1571 = vmax.xlane.f32.xlu1 %v1570_v19 }
 0x38f   : > { %v1566_v20 = vpop.f32.mrf.mxu0 }
 0x390   : > { %v1567_v21 = vadd.f32 %v1566_v20, %v1111_v16 }
 0x391   : > { %v1511_v22 = vpop.f32.mrf.mxu1 }
 0x392   : > { %v1528_v23 = vpop.f32.mrf.mxu2  ;;  %v1579_v24 = vsel %vm1493_vm9, %v1567_v21, -inf }
 0x393   : > { %v1529_v25 = vadd.f32 %v1528_v23, %v1111_v16  ;;  %1580 = vmax.xlane.f32.xlu2 %v1579_v24  ;;  %v1547_v26 = vpop.f32.mrf.mxu3 }
 0x394   : > { %v1548_v28 = vadd.f32 %v1547_v26, %v1111_v16 }
 0x395   : > { %v1573_v27 = vsel %vm1493_vm9, %v1529_v25, -inf }
 0x396   : > { %1574 = vmax.xlane.f32.xlu0 %v1573_v27  ;;  %v1576_v31 = vsel %vm1493_vm9, %v1548_v28, -inf }
 0x397   : > { %v1568_v29 = vpop.f32.mrf.mxu0 }
 0x39a   : > { %v1530_v30 = vpop.f32.mrf.mxu2 }
 0x39b   : > { %v1549_v32 = vpop.f32.mrf.mxu3  ;;  %1577 = vmax.xlane.f32.xlu2 %v1576_v31 }
 0x3a6   : > { %1375 = vrot.lane.b32.xlu1 %v4228_v54, %s3899_s5 }
 0x3aa   : > { %1377 = vrot.lane.b32.xlu0 %v4219_v52, %s3899_s5 }
 0x3b3   : > { %1373 = vrot.lane.b32.xlu2 %v4224_v53, %s3899_s5  ;;  %s3089_s5 = sshll.u32 %s4748_s28, 2 }
 0x3b4   : > { %s1011_s1 = scalar_lea.vmem %s4745_s24, %s3089_s5  ;;  %s1015_s24 = scalar_lea.vmem %s4714_s26, %s3088_s8 }
 0x400   : > { %v1572_v34 = vpop.xlane.xlu1 %1571 }
 0x401   : > { %v1582_v35 = vsub.f32 %v1510_v18, %v1572_v34 }
 0x403   : > { %v1586_v36 = vmul.f32 1.442695, %v1582_v35 }
 0x405   : > { %3378 = vpow2.f32 %v1586_v36 }
 0x406   : > { %v1581_v37 = vpop.xlane.xlu2 %1580 }
 0x407   : > { %v1585_v43 = vsub.f32 %v1567_v21, %v1581_v37 }
 0x409   : > { %v1575_v38 = vpop.xlane.xlu0 %1574  ;;  %v1592_v45 = vmul.f32 1.442695, %v1585_v43 }
 0x40a   : > { %v1583_v39 = vsub.f32 %v1529_v25, %v1575_v38 }
 0x40b   : > { %v4319_v40 = vpop.eup %3378 }
 0x40c   : > { %v1588_v41 = vmul.f32 1.442695, %v1583_v39  ;;  %v1594_v54 = vsel %vm1493_vm9, %v4319_v40, 0.0 }
 0x40d   : > { %1595 = vadd.xlane.f32.xlu1 %v1594_v54 }
 0x40e   : > { %3380 = vpow2.f32 %v1588_v41  ;;  %v1578_v52 = vpop.xlane.xlu2 %1577 }
 0x40f   : > { %v1584_v42 = vsub.f32 %v1548_v28, %v1578_v52 }
 0x411   : > { %v1590_v53 = vmul.f32 1.442695, %v1584_v42 }
 0x413   : > { %3382 = vpow2.f32 %v1590_v53 }
 0x414   : > { %v4323_v44 = vpop.eup %3380  ;;  %3384 = vpow2.f32 %v1592_v45 }
 0x415   : > { %v1597_v46 = vsel %vm1493_vm9, %v4323_v44, 0.0 }
 0x416   : > { %1598 = vadd.xlane.f32.xlu0 %v1597_v46  ;;  %v1374_v47 = vpop.permute.xlu2 %1373 }
 0x417   : > { %v1381_v49 = vpack.i.b16 %v1374_v47, %v1372_v33  ;;  %v1383_v50 = vshrl.u32 %v1374_v47, 16 }
 0x418   : > { %v1376_v56 = vpop.permute.xlu1 %1375 }
 0x419   : > { %v4327_v51 = vpop.eup %3382  ;;  %v1384_v55 = vpack.i.b16 %v1383_v50, %v1382_v48  ;;  %v1395_v58 = vperm.slane %v1381_v49, %v4234_v1  ;;  %v1388_v61 = vshrl.u32 %v1376_v56, 16 }
 0x41a   : > { %v1600_v57 = vsel %vm1493_vm9, %v4327_v51, 0.0  ;;  %v4333_v2 = vpop.eup %3384 }
 0x41b   : > { %1601 = vadd.xlane.f32.xlu2 %v1600_v57  ;;  %v1421_v60 = vperm.slane %v1384_v55, %v4234_v1  ;;  %v1403_v3 = vrot.slane %v1395_v58, 4  ;;  %v1603_v12 = vsel %vm1493_vm9, %v4333_v2, 0.0 }
 0x41c   : > { %v1378_v59 = vpop.permute.xlu0 %1377 }
 0x41d   : > { %v1387_v62 = vpack.i.b16 %v1378_v59, %v1376_v56  ;;  %v1389_v63 = vshrl.u32 %v1378_v59, 16  ;;  %v1429_v6 = vrot.slane %v1421_v60, 4 }
 0x41f   : > { %v1390_v4 = vpack.i.b16 %v1389_v63, %v1388_v61  ;;  %v1400_v5 = vperm.slane %v1387_v62, %v4234_v1 }
 0x421   : > { %v1401_v7 = vrot.slane %v1400_v5, 4  ;;  %v1404_v9 = vsel %vm1149_vm8, %v1400_v5, %v1403_v3  ;;  %v1426_v10 = vperm.slane %v1390_v4, %v4234_v1 }
 0x422   : > { %v1412_v11 = vperm.slane %v1404_v9, %v4238_v14 }
 0x423   : > { %v1402_v13 = vsel %vm1149_vm8, %v1401_v7, %v1395_v58  ;;  %v1427_v15 = vrot.slane %v1426_v10, 4  ;;  %v1430_v16 = vsel %vm1149_vm8, %v1426_v10, %v1429_v6  ;;  %1604 = vadd.xlane.f32.xlu2 %v1603_v12 }
 0x424   : > { %v1408_v17 = vperm.slane %v1402_v13, %v4238_v14  ;;  %v1415_v18 = vrot.slane %v1412_v11, 4  ;;  %v1438_v19 = vperm.slane %v1430_v16, %v4238_v14 }
 0x425   : > { %v1428_v20 = vsel %vm1149_vm8, %v1427_v15, %v1421_v60 }
 0x426   : > { %v1413_v21 = vrot.slane %v1408_v17, 4  ;;  %v1416_v22 = vsel %vm1149_vm8, 0, %v1415_v18  ;;  %v1434_v23 = vperm.slane %v1428_v20, %v4238_v14  ;;  %v1441_v24 = vrot.slane %v1438_v19, 4 }
 0x427   : > { %v1448_v25 = vrot.slane %v1416_v22, 4  ;;  %v1443_v30 = vsel %vm1149_vm8, %v1415_v18, %v1408_v17 }
 0x428   : > { %v1414_v26 = vsel %vm1149_vm8, 0, %v1413_v21  ;;  %v1439_v27 = vrot.slane %v1434_v23, 4  ;;  %v1442_v28 = vsel %vm1149_vm8, 0, %v1441_v24  ;;  %v1462_v34 = vsel %vm1149_vm8, %v1441_v24, %v1434_v23 }
 0x429   : > { %v1467_v29 = vrot.slane %v1442_v28, 4  ;;  %v1449_v31 = vsel %vm1149_vm8, %v1448_v25, %v1414_v26  ;;  %v1447_v36 = vperm.slane %v1443_v30, %v4234_v1  ;;  %v1466_v41 = vperm.slane %v1462_v34, %v4234_v1 }
 0x42a   : > { %v1440_v32 = vsel %vm1149_vm8, 0, %v1439_v27  ;;  %v1453_v33 = vperm.slane %v1449_v31, %v4234_v1 }
 0x42b   : > { %v1468_v35 = vsel %vm1149_vm8, %v1467_v29, %v1440_v32 }
 0x42c   : > { %v1454_v37 = vrot.slane %v1453_v33, 4  ;;  %v1472_v38 = vperm.slane %v1468_v35, %v4234_v1 }
 0x42e   : > { %v1455_v39 = vsel %vm1149_vm8, %v1454_v37, %v1447_v36  ;;  %v1473_v54 = vrot.slane %v1472_v38, 4 }
 0x42f   : > { %v1459_v52 = vperm.slane %v1455_v39, %v4238_v14 }
 0x430   : > { %v1474_v42 = vsel %vm1149_vm8, %v1473_v54, %v1466_v41 }
 0x431   : > { %v1478_v43 = vperm.slane %v1474_v42, %v4238_v14  ;;  %v1460_v53 = vrot.slane %v1459_v52, 4  ;;  %v1484_v45 = vshrl.u32 %v1459_v52, 16 }
 0x433   : > { %v1483_v46 = vpack.i.b16 %v1478_v43, %v1459_v52  ;;  %v1485_v47 = vshrl.u32 %v1478_v43, 16  ;;  %v1461_v48 = vsel %vm1149_vm8, 0, %v1460_v53  ;;  %v1479_v49 = vrot.slane %v1478_v43, 4 }
 0x434   : > { %v1490_v58 = vshrl.u32 %v1461_v48, 16 }
 0x435   : > { %v1623_v50 = vsel %vm1621_vm10, %v1483_v46, 0  ;;  %v1486_v55 = vpack.i.b16 %v1485_v47, %v1484_v45  ;;  %v1480_v56 = vsel %vm1149_vm8, 0, %v1479_v49 }
 0x436   : > { %1632 = vmatpush.bf16.msrb.mxu1 %v1623_v50  ;;  %v1489_v57 = vpack.i.b16 %v1480_v56, %v1461_v48  ;;  %v1491_v59 = vshrl.u32 %v1480_v56, 16 }
 0x437   : > { %v1642_v60 = vsel %vm1621_vm10, %v1486_v55, 0 }
 0x438   : > { %1651 = vmatpush.bf16.msrb.mxu2 %v1642_v60  ;;  %v1661_v61 = vsel %vm1621_vm10, %v1489_v57, 0  ;;  %v1492_v62 = vpack.i.b16 %v1491_v59, %v1490_v58 }
 0x439   : > { %1670 = vmatpush.bf16.msrb.mxu3 %v1661_v61 }
 0x43a   : > { %v1680_v63 = vsel %vm1621_vm10, %v1492_v62, 0 }
 0x43b   : > { %1689 = vmatpush.bf16.msra.mxu0 %v1680_v63 }
 0x480   : > { %v1596_v3 = vpop.xlane.xlu1 %1595 }
 0x481   : > { %3386 = vrcp.f32 %v1596_v3 }
 0x487   : > { %v3387_v4 = vpop.eup %3386 }
 0x488   : > { %v1610_v5 = vmul.f32 %v3387_v4, %v4319_v40 }
 0x489   : > { %v1599_v6 = vpop.xlane.xlu0 %1598 }
 0x48a   : > { %3388 = vrcp.f32 %v1599_v6  ;;  %v1614_v7 = vpack.c.bf16 %v1610_v5, %v1610_v5 }
 0x48c   : > { %3104 = vmatmul.msk.bf16.vlgmr.msrb.gmra.mxu1 %vm1493_vm9, %v1614_v7 }
 0x48e   : > { %v1602_v9 = vpop.xlane.xlu2 %1601 }
 0x48f   : > { %3390 = vrcp.f32 %v1602_v9 }
 0x490   : > { %v3389_v10 = vpop.eup %3388 }
 0x491   : > { %v1611_v11 = vmul.f32 %v3389_v10, %v4323_v44 }
 0x493   : > { %v1615_v12 = vpack.c.bf16 %v1611_v11, %v1611_v11 }
 0x495   : > { %v3391_v13 = vpop.eup %3390  ;;  %3105 = vmatmul.msk.bf16.vlgmr.msrb.gmra.mxu2 %vm1493_vm9, %v1615_v12 }
 0x496   : > { %v1612_v15 = vmul.f32 %v3391_v13, %v4327_v51  ;;  %v1605_v16 = vpop.xlane.xlu2 %1604 }
 0x497   : > { %3392 = vrcp.f32 %v1605_v16 }
 0x498   : > { %v1616_v17 = vpack.c.bf16 %v1612_v15, %v1612_v15 }
 0x49a   : > { %3106 = vmatmul.msk.bf16.vlgmr.msrb.gmra.mxu3 %vm1493_vm9, %v1616_v17 }
 0x49d   : > { %v3393_v40 = vpop.eup %3392 }
 0x49e   : > { %v1613_v18 = vmul.f32 %v3393_v40, %v4333_v2 }
 0x4a0   : > { %v1617_v19 = vpack.c.bf16 %v1613_v18, %v1613_v18 }
 0x4a2   : > { %3107 = vmatmul.msk.bf16.vlgmr.msra.gmra.mxu0 %vm1493_vm9, %v1617_v19 }
 0x509   : > { %v1634_v20 = vpop.f32.mrf.mxu1 }
 0x50a   : > { %v1698_v22 = vrot.slane %v1634_v20, 4 }
 0x511   : > { %v1636_v21 = vpop.f32.mrf.mxu1 }
 0x518   : > { %v1653_v44 = vpop.f32.mrf.mxu2 }
 0x519   : > { %v1710_v24 = vrot.slane %v1653_v44, 4 }
 0x51d   : > { %v1672_v23 = vpop.f32.mrf.mxu3 }
 0x51e   : > { %v1695_v25 = vrot.slane %v1672_v23, 4  ;;  %v1699_v51 = vsel %vm1149_vm8, %v1672_v23, %v1698_v22 }
 0x51f   : > { %v1707_v26 = vperm.slane %v1699_v51, %v4234_v1  ;;  %v1691_v27 = vpop.f32.mrf.mxu0 }
 0x520   : > { %v1697_v28 = vsel %vm1149_vm8, %v1695_v25, %v1634_v20  ;;  %v1708_v29 = vrot.slane %v1691_v27, 4  ;;  %v1711_v2 = vsel %vm1149_vm8, %v1691_v27, %v1710_v24  ;;  %v1655_v30 = vpop.f32.mrf.mxu2 }
 0x521   : > { %v1703_v31 = vperm.slane %v1697_v28, %v4234_v1  ;;  %v1734_v32 = vrot.slane %v1707_v26, 4  ;;  %v1719_v33 = vperm.slane %v1711_v2, %v4234_v1  ;;  %v3183_v28 = vld [vmem:[%s4744_s10 + $0x8] sm:$0xff] }
 0x522   : > { %v1709_v34 = vsel %vm1149_vm8, %v1708_v29, %v1653_v44  ;;  %1848 = vmatpush.bf16.msra.mxu1 %v3183_v28  ;;  %v3182_v29 = vld [vmem:[%s4744_s10] sm:$0xff] }
 0x523   : > { %v1722_v35 = vrot.slane %v1703_v31, 4  ;;  %v1715_v36 = vperm.slane %v1709_v34, %v4234_v1  ;;  %v1732_v37 = vrot.slane %v1719_v33, 4  ;;  %v1735_v38 = vsel %vm1149_vm8, %v1719_v33, %v1734_v32 }
 0x524   : > { %v1743_v39 = vperm.slane %v1735_v38, %v4238_v14 }
 0x525   : > { %v1720_v41 = vrot.slane %v1715_v36, 4  ;;  %v1723_v54 = vsel %vm1149_vm8, %v1715_v36, %v1722_v35  ;;  %v1733_v52 = vsel %vm1149_vm8, %v1732_v37, %v1707_v26  ;;  %v1674_v42 = vpop.f32.mrf.mxu3  ;;  %v3361_v36 = vld [vmem:[#allocation2] ss:$0 sm:$0xff] }
 0x526   : > { %v1731_v43 = vperm.slane %v1723_v54, %v4238_v14  ;;  %v1739_v53 = vperm.slane %v1733_v52, %v4238_v14  ;;  %v1750_v45 = vrot.slane %v1743_v39, 4  ;;  %1849 = vmatpush.bf16.msra.mxu1 %v3182_v29  ;;  %v3187_v52 = vld [vmem:[#allocation10 + $0x8] sm:$0xff]  ;;  %v3186_v42 = vld [vmem:[#allocation10] sm:$0xff] }
 0x527   : > { %v1721_v46 = vsel %vm1149_vm8, %v1720_v41, %v1703_v31  ;;  %v1693_v47 = vpop.f32.mrf.mxu0  ;;  %1971 = vmatpush.bf16.msra.mxu3 %v3187_v52 }
 0x528   : > { %v1727_v48 = vperm.slane %v1721_v46, %v4238_v14  ;;  %v1746_v49 = vrot.slane %v1731_v43, 4  ;;  %v1748_v50 = vrot.slane %v1739_v53, 4  ;;  %v1751_v55 = vsel %vm1149_vm8, 0.0, %v1750_v45  ;;  %v1905_v43 = vld [vmem:[%s1011_s1] sm:$0xf] }
 0x529   : > { %v1763_v56 = vsel %vm1149_vm8, %v1750_v45, %v1739_v53  ;;  %v1768_v57 = vrot.slane %v1751_v55, 4 }
 0x52a   : > { %v1744_v58 = vrot.slane %v1727_v48, 4  ;;  %v1747_v59 = vsel %vm1149_vm8, 0.0, %v1746_v49  ;;  %v1749_v60 = vsel %vm1149_vm8, 0.0, %v1748_v50  ;;  %v1767_v61 = vperm.slane %v1763_v56, %v4234_v1 }
 0x52b   : > { %v1757_v62 = vrot.slane %v1747_v59, 4  ;;  %v1752_v63 = vsel %vm1149_vm8, %v1746_v49, %v1727_v48  ;;  %v1769_v3 = vsel %vm1149_vm8, %v1768_v57, %v1749_v60  ;;  %1972 = vmatpush.bf16.msra.mxu3 %v3186_v42  ;;  %v3185_v48 = vld [vmem:[#allocation7 + $0x8] sm:$0xff]  ;;  %v3184_v49 = vld [vmem:[#allocation7] sm:$0xff] }
 0x52c   : > { %v1745_v4 = vsel %vm1149_vm8, 0.0, %v1744_v58  ;;  %v1756_v5 = vperm.slane %v1752_v63, %v4234_v1  ;;  %v1773_v6 = vperm.slane %v1769_v3, %v4234_v1  ;;  %v1788_v7 = vrot.slane %v1767_v61, 4  ;;  %1935 = vmatpush.bf16.msra.mxu2 %v3185_v48 }
 0x52d   : > { %v1758_v9 = vsel %vm1149_vm8, %v1757_v62, %v1745_v4 }
 0x52e   : > { %v1762_v10 = vperm.slane %v1758_v9, %v4234_v1  ;;  %v1776_v11 = vrot.slane %v1756_v5, 4  ;;  %v1789_v12 = vsel %vm1149_vm8, %v1773_v6, %v1788_v7  ;;  %v1786_v13 = vrot.slane %v1773_v6, 4  ;;  %3134 = vmatmul.msk.bf16.vlgmr.msra.gmra.mxu3 %vm1020_vm0, %v1905_v43 }
 0x52f   : > { %v1797_v15 = vperm.slane %v1789_v12, %v4238_v14 }
 0x530   : > { %v1777_v16 = vsel %vm1149_vm8, %v1762_v10, %v1776_v11  ;;  %v1774_v17 = vrot.slane %v1762_v10, 4  ;;  %v1787_v40 = vsel %vm1149_vm8, %v1786_v13, %v1767_v61  ;;  %1936 = vmatpush.bf16.msra.mxu2 %v3184_v49  ;;  %v3364_v61 = vld [vmem:[#allocation12] ss:$0 sm:$0xff] }
 0x531   : > { %v1785_v18 = vperm.slane %v1777_v16, %v4238_v14  ;;  %v1802_v19 = vrot.slane %v1797_v15, 4  ;;  %v1793_v20 = vperm.slane %v1787_v40, %v4238_v14 }
 0x532   : > { %v1775_v21 = vsel %vm1149_vm8, %v1774_v17, %v1756_v5  ;;  %v3362_v17 = vld [vmem:[#allocation4] ss:$0 sm:$0xff] }
 0x533   : > { %v1803_v44 = vsel %vm1149_vm8, %v1802_v19, %v1785_v18  ;;  %v1804_v22 = vrot.slane %v1785_v18, 4  ;;  %v1781_v23 = vperm.slane %v1775_v21, %v4238_v14  ;;  %v1798_v24 = vrot.slane %v1793_v20, 4 }
 0x534   : > { %1811 = vrot.lane.b32.xlu1 %v1803_v44, %s3902_s29 }
 0x535   : > { %v1805_v25 = vsel %vm1149_vm8, %v1797_v15, %v1804_v22  ;;  %v1800_v51 = vrot.slane %v1781_v23, 4  ;;  %v1799_v26 = vsel %vm1149_vm8, %v1798_v24, %v1781_v23  ;;  %v3363_v22 = vld [vmem:[#allocation6] ss:$0 sm:$0xff] }
 0x536   : > { %1815 = vrot.lane.b32.xlu2 %v1805_v25, %s3903_s30 }
 0x537   : > { %v1801_v27 = vsel %vm1149_vm8, %v1793_v20, %v1800_v51 }
 0x538   : > { %1807 = vrot.lane.b32.xlu0 %v1801_v27, %s3904_s12 }
 0x590   : > { %v1816_v32 = vpop.permute.xlu2 %1815 }
 0x5a6   : > { %v1812_v30 = vpop.permute.xlu1 %1811 }
 0x5aa   : > { %v1808_v2 = vpop.permute.xlu0 %1807 }
 0x5ab   : > { %v1818_v31 = vsel %vm1493_vm9, %v1799_v26, %v1808_v2 }
 0x5ac   : > { %v1820_v33 = vsel %vm1819_vm11, %v1818_v31, %v1812_v30 }
 0x5ad   : > { %v1822_v34 = vsel %vm1821_vm12, %v1820_v33, %v1816_v32 }
 0x5ae   : > { %v1823_v35 = vpack.c.bf16 %v1822_v34, %v1822_v34 }
 0x5b0   : > { %3116 = vmatmul.msk.bf16.vlgmr.msra.gmra.mxu1 %vm1020_vm0, %v1823_v35 }
 0x5b1   : > { %v1974_v62 = vpop.f32.mrf.mxu3 }
 0x5b2   : > { %v1975_v3 = vadd.f32 %v3364_v61, %v1974_v62 }
 0x5b4   : > { %v4443_v6 = vpack.c.bf16 %v1975_v3, %v1975_v3 }
 0x5b6   : > { %2109 = vrot.lane.b32.xlu2 %v4443_v6, %s3896_s14  ;;  %v2118_v27 = vshrl.u32 %v4443_v6, 16 }
 0x5b9   : > { %v1976_v11 = vpop.f32.mrf.mxu3 }
 0x5be   : > { %2111 = vrot.lane.b32.xlu2 %v4443_v6, %s3898_s7 }
 0x5c6   : > { %2113 = vrot.lane.b32.xlu2 %v4443_v6, %s3895_s4 }
 0x610   : > { %v4452_v26 = vpop.permute.xlu2 %2109 }
 0x611   : > { %v2119_v28 = vshrl.u32 %v4452_v26, 16  ;;  %v2117_v2 = vpack.i.b16 %v4452_v26, %v4443_v6 }
 0x613   : > { %v2120_v30 = vpack.i.b16 %v2119_v28, %v2118_v27  ;;  %v2131_v31 = vperm.slane %v2117_v2, %v4234_v1 }
 0x615   : > { %v2157_v32 = vperm.slane %v2120_v30, %v4234_v1 }
 0x618   : > { %v4456_v29 = vpop.permute.xlu2 %2111 }
 0x619   : > { %v2124_v33 = vshrl.u32 %v4456_v29, 16 }
 0x620   : > { %v4463_v34 = vpop.permute.xlu2 %2113 }
 0x621   : > { %v2123_v35 = vpack.i.b16 %v4463_v34, %v4456_v29 }
 0x62d   : > { %v1851_v37 = vpop.f32.mrf.mxu1 }
 0x62e   : > { %v1852_v38 = vadd.f32 %v3361_v36, %v1851_v37  ;;  %v2125_v36 = vshrl.u32 %v4463_v34, 16  ;;  %v2139_v37 = vrot.slane %v2131_v31, 4 }
 0x630   : > { %v4431_v39 = vadd.f32 %v1852_v38, %v4189_v0  ;;  %v2165_v38 = vrot.slane %v2157_v32, 4 }
 0x632   : > { %v1858_v41 = vsel %vm1020_vm0, %v4431_v39, 0.0 }
 0x633   : > { %1859 = vadd.xlane.f32.xlu0 %v1858_v41  ;;  %v2126_v41 = vpack.i.b16 %v2125_v36, %v2124_v33  ;;  %v3365_v36 = vld [vmem:[#allocation9] ss:$0 sm:$0xff] }
 0x635   : > { %v1853_v54 = vpop.f32.mrf.mxu1  ;;  %v2162_v52 = vperm.slane %v2126_v41, %v4234_v1 }
 0x636   : > { %v2136_v54 = vperm.slane %v2123_v35, %v4234_v1 }
 0x638   : > { %v2137_v42 = vrot.slane %v2136_v54, 4  ;;  %v2140_v43 = vsel %vm1149_vm8, %v2136_v54, %v2139_v37 }
 0x6a6   : > { %v1860_v53 = vpop.xlane.xlu0 %1859 }
 0x6a7   : > { %v1861_v0 = vmul.f32 %v1860_v53, %v4193_v8  ;;  %v2163_v53 = vrot.slane %v2162_v52, 4 }
 0x6a9   : > { %v1862_v45 = vsub.f32 %v4431_v39, %v1861_v0  ;;  %v2166_v0 = vsel %vm1149_vm8, %v2162_v52, %v2165_v38  ;;  %v2164_v48 = vsel %vm1149_vm8, %v2163_v53, %v2157_v32 }
 0x6ab   : > { %v1863_v46 = vmul.f32 %v1862_v45, %v1862_v45  ;;  %v1871_v21 = vmul.f32 %v3362_v17, %v1862_v45  ;;  %v2148_v45 = vperm.slane %v2140_v43, %v4238_v14 }
 0x6ad   : > { %v1864_v47 = vsel %vm1020_vm0, %v1863_v46, 0.0  ;;  %v2174_v46 = vperm.slane %v2166_v0, %v4238_v14 }
 0x6ae   : > { %1865 = vadd.xlane.f32.xlu1 %v1864_v47  ;;  %v2138_v47 = vsel %vm1149_vm8, %v2137_v42, %v2131_v31 }
 0x6af   : > { %v2144_v49 = vperm.slane %v2138_v47, %v4238_v14 }
 0x721   : > { %v1866_v50 = vpop.xlane.xlu1 %1865 }
 0x722   : > { %v1867_v55 = vmul.f32 0.032258064, %v1866_v50  ;;  %v2151_v50 = vrot.slane %v2148_v45, 4 }
 0x724   : > { %3394 = vrsqrt.f32 %v1867_v55  ;;  %vm1879_vm13 = vcmp.eq.f32.partialorder %v1867_v55, inf  ;;  %v1882_v5 = vand.u32 2147483648, %v1867_v55  ;;  %vm1881_vm14 = vcmp.eq.f32.partialorder %v1867_v55, 0.0 }
 0x72a   : > { %v3395_v56 = vpop.eup %3394 }
 0x72b   : > { %v1873_v57 = vmul.f32 %v3395_v56, %v1867_v55 }
 0x72d   : > { %v1874_v58 = vmul.f32 %v3395_v56, %v1873_v57  ;;  %v2149_v57 = vrot.slane %v2144_v49, 4 }
 0x72f   : > { %v1875_v59 = vmul.f32 0.5, %v1874_v58  ;;  %v2152_v58 = vsel %vm1149_vm8, 0, %v2151_v50 }
 0x730   : > { %v2184_v61 = vrot.slane %v2152_v58, 4 }
 0x731   : > { %v1876_v60 = vsub.f32 1.5, %v1875_v59 }
 0x733   : > { %v1877_v63 = vmul.f32 %v3395_v56, %v1876_v60  ;;  %v2177_v56 = vrot.slane %v2174_v46, 4 }
 0x735   : > { %v1878_v4 = vmul.f32 %v1877_v63, %v1867_v55  ;;  %v2178_v60 = vsel %vm1149_vm8, 0, %v2177_v56  ;;  %v2150_v63 = vsel %vm1149_vm8, 0, %v2149_v57 }
 0x736   : > { %v2203_v62 = vrot.slane %v2178_v60, 4 }
 0x737   : > { %v1880_v7 = vsel %vm1879_vm13, %v1867_v55, %v1878_v4  ;;  %v2170_v55 = vperm.slane %v2164_v48, %v4238_v14  ;;  %v2179_v4 = vsel %vm1149_vm8, %v2151_v50, %v2144_v49 }
 0x738   : > { %v1883_v9 = vsel %vm1881_vm14, %v1882_v5, %v1880_v7  ;;  %v2185_v5 = vsel %vm1149_vm8, %v2184_v61, %v2150_v63 }
 0x739   : > { %v1884_v10 = vadd.f32 1e-06, %v1883_v9  ;;  %v2175_v59 = vrot.slane %v2170_v55, 4  ;;  %v2189_v9 = vperm.slane %v2185_v5, %v4234_v1  ;;  %v2198_v11 = vsel %vm1149_vm8, %v2177_v56, %v2170_v55 }
 0x73b   : > { %3396 = vrcp.f32 %v1884_v10  ;;  %v1896_v16 = vand.u32 2147483648, %v1884_v10  ;;  %v1894_v18 = vand.u32 2147483647, %v1884_v10  ;;  %vm1890_vm1 = vweird.f32 %v1884_v10 }
 0x73c   : > { %v2176_v3 = vsel %vm1149_vm8, 0, %v2175_v59 }
 0x73d   : > { %v1897_v20 = vor.u32 1.1754944e-38, %v1896_v16  ;;  %vm1895_vm3 = vcmp.eq.f32.partialorder %v1894_v18, 8.507059e+37  ;;  %v2204_v7 = vsel %vm1149_vm8, %v2203_v62, %v2176_v3 }
 0x741   : > { %v3397_v12 = vpop.eup %3396 }
 0x742   : > { %v1886_v13 = vmul.f32 %v3397_v12, %v1884_v10  ;;  %vm1891_vm15 = vweird.f32 %v3397_v12  ;;  %v2208_v10 = vperm.slane %v2204_v7, %v4234_v1 }
 0x743   : > { %vm1892_vm2 = vmor %vm1890_vm1, %vm1891_vm15 }
 0x744   : > { %v1887_v15 = vsub.f32 1.0, %v1886_v13  ;;  %v2190_v13 = vrot.slane %v2189_v9, 4  ;;  %v2209_v16 = vrot.slane %v2208_v10, 4 }
 0x746   : > { %v1888_v40 = vmul.f32 %v3397_v12, %v1887_v15  ;;  %v2202_v15 = vperm.slane %v2198_v11, %v4234_v1 }
 0x748   : > { %v1889_v19 = vadd.f32 %v3397_v12, %v1888_v40  ;;  %v2210_v40 = vsel %vm1149_vm8, %v2209_v16, %v2202_v15 }
 0x74a   : > { %v1893_v44 = vsel %vm1892_vm2, %v3397_v12, %v1889_v19  ;;  %v2183_v12 = vperm.slane %v2179_v4, %v4234_v1  ;;  %v2214_v19 = vperm.slane %v2210_v40, %v4238_v14 }
 0x74b   : > { %v1898_v23 = vsel %vm1895_vm3, %v1897_v20, %v1893_v44 }
 0x74c   : > { %v1899_v24 = vmul.f32 %v1898_v23, %v1871_v21  ;;  %v2191_v17 = vsel %vm1149_vm8, %v2190_v13, %v2183_v12  ;;  %v2221_v44 = vshrl.u32 %v2214_v19, 16  ;;  %v2215_v23 = vrot.slane %v2214_v19, 4 }
 0x74d   : > { %v2195_v18 = vperm.slane %v2191_v17, %v4238_v14 }
 0x74e   : > { %v1903_v25 = vadd.f32 %v3363_v22, %v1899_v24  ;;  %v2216_v27 = vsel %vm1149_vm8, 0, %v2215_v23 }
 0x74f   : > { %v2219_v20 = vpack.i.b16 %v2214_v19, %v2195_v18  ;;  %v2220_v21 = vshrl.u32 %v2195_v18, 16  ;;  %v2196_v22 = vrot.slane %v2195_v18, 4  ;;  %v2227_v31 = vshrl.u32 %v2216_v27, 16 }
 0x750   : > { %v1904_v51 = vpack.c.bf16 %v1903_v25, %v1903_v25 }
 0x751   : > { %v2358_v24 = vsel %vm1493_vm9, %v2219_v20, 0  ;;  %v2222_v25 = vpack.i.b16 %v2221_v44, %v2220_v21 }
 0x752   : > { %3125 = vmatmul.msk.bf16.vlgmr.msra.gmra.mxu2 %vm1020_vm0, %v1904_v51  ;;  %v2197_v51 = vsel %vm1149_vm8, 0, %v2196_v22  ;;  %2367 = vmatpush.bf16.xpose.msrb.mxu0 %v2358_v24 }
 0x753   : > { %v2226_v28 = vshrl.u32 %v2197_v51, 16  ;;  %v2377_v2 = vsel %vm1493_vm9, %v2222_v25, 0  ;;  %v2225_v30 = vpack.i.b16 %v2216_v27, %v2197_v51 }
 0x754   : > { %2386 = vmatpush.bf16.xpose.msrb.mxu1 %v2377_v2 }
 0x755   : > { %v2396_v32 = vsel %vm1493_vm9, %v2225_v30, 0  ;;  %v2228_v33 = vpack.i.b16 %v2227_v31, %v2226_v28 }
 0x756   : > { %2405 = vmatpush.bf16.xpose.msrb.mxu2 %v2396_v32 }
 0x757   : > { %v2415_v35 = vsel %vm1493_vm9, %v2228_v33, 0 }
 0x758   : > { %2424 = vmatpush.bf16.xpose.msrb.mxu3 %v2415_v35 }
 0x7d5   : > { %v1938_v37 = vpop.f32.mrf.mxu2 }
 0x7d6   : > { %v1939_v38 = vadd.f32 %v3365_v36, %v1938_v37 }
 0x7d8   : > { %v1984_v41 = vmul.f32 0.35355338, %v1939_v38 }
 0x7da   : > { %v1985_v54 = vpack.c.bf16 %v1984_v41, %v1984_v41 }
 0x7dc   : > { %1989 = vrot.lane.b32.xlu0 %v1985_v54, %s3898_s7  ;;  %1987 = vrot.lane.b32.xlu2 %v1985_v54, %s3896_s14  ;;  %v1996_v0 = vshrl.u32 %v1985_v54, 16  ;;  %s4746_s7 = sld [smem:[#allocation35_spill]] }
 0x7dd   : > { %v1940_v52 = vpop.f32.mrf.mxu2 }
 0x7e4   : > { %1991 = vrot.lane.b32.xlu2 %v1985_v54, %s3895_s4 }
 0x836   : > { %v1988_v42 = vpop.permute.xlu2 %1987 }
 0x837   : > { %v1997_v43 = vshrl.u32 %v1988_v42, 16  ;;  %v1995_v53 = vpack.i.b16 %v1988_v42, %v1985_v54 }
 0x839   : > { %v1998_v45 = vpack.i.b16 %v1997_v43, %v1996_v0  ;;  %v2009_v47 = vperm.slane %v1995_v53, %v4234_v1 }
 0x83b   : > { %v2035_v49 = vperm.slane %v1998_v45, %v4234_v1  ;;  %v2017_v57 = vrot.slane %v2009_v47, 4 }
 0x83d   : > { %v2043_v60 = vrot.slane %v2035_v49, 4 }
 0x83e   : > { %v1992_v46 = vpop.permute.xlu2 %1991 }
 0x83f   : > { %v2003_v50 = vshrl.u32 %v1992_v46, 16 }
 0x84e   : > { %v1990_v48 = vpop.permute.xlu0 %1989 }
 0x84f   : > { %v2001_v55 = vpack.i.b16 %v1992_v46, %v1990_v48  ;;  %v2002_v56 = vshrl.u32 %v1990_v48, 16  ;;  %v3366_v48 = vld [vmem:[%s4746_s7] ss:$0 sm:$0xff] }
 0x851   : > { %v2004_v58 = vpack.i.b16 %v2003_v50, %v2002_v56  ;;  %v2014_v59 = vperm.slane %v2001_v55, %v4234_v1 }
 0x853   : > { %v2015_v61 = vrot.slane %v2014_v59, 4  ;;  %v2018_v62 = vsel %vm1149_vm8, %v2014_v59, %v2017_v57  ;;  %v2040_v63 = vperm.slane %v2004_v58, %v4234_v1 }
 0x854   : > { %v2026_v3 = vperm.slane %v2018_v62, %v4238_v14 }
 0x855   : > { %v2016_v4 = vsel %vm1149_vm8, %v2015_v61, %v2009_v47  ;;  %v2041_v5 = vrot.slane %v2040_v63, 4  ;;  %v2044_v7 = vsel %vm1149_vm8, %v2040_v63, %v2043_v60 }
 0x856   : > { %v2022_v9 = vperm.slane %v2016_v4, %v4238_v14  ;;  %v2029_v10 = vrot.slane %v2026_v3, 4  ;;  %v2052_v11 = vperm.slane %v2044_v7, %v4238_v14 }
 0x857   : > { %v2042_v12 = vsel %vm1149_vm8, %v2041_v5, %v2035_v49 }
 0x858   : > { %v2027_v13 = vrot.slane %v2022_v9, 4  ;;  %v2030_v15 = vsel %vm1149_vm8, 0, %v2029_v10  ;;  %v2048_v16 = vperm.slane %v2042_v12, %v4238_v14  ;;  %v2055_v17 = vrot.slane %v2052_v11, 4 }
 0x859   : > { %v2062_v40 = vrot.slane %v2030_v15, 4  ;;  %v2057_v21 = vsel %vm1149_vm8, %v2029_v10, %v2022_v9 }
 0x85a   : > { %v2028_v18 = vsel %vm1149_vm8, 0, %v2027_v13  ;;  %v2053_v19 = vrot.slane %v2048_v16, 4  ;;  %v2056_v20 = vsel %vm1149_vm8, 0, %v2055_v17  ;;  %v2076_v25 = vsel %vm1149_vm8, %v2055_v17, %v2048_v16 }
 0x85b   : > { %v2063_v44 = vsel %vm1149_vm8, %v2062_v40, %v2028_v18  ;;  %v2081_v22 = vrot.slane %v2056_v20, 4  ;;  %v2061_v27 = vperm.slane %v2057_v21, %v4234_v1  ;;  %v2080_v30 = vperm.slane %v2076_v25, %v4234_v1 }
 0x85c   : > { %v2054_v23 = vsel %vm1149_vm8, 0, %v2053_v19  ;;  %v2067_v24 = vperm.slane %v2063_v44, %v4234_v1 }
 0x85d   : > { %v2082_v51 = vsel %vm1149_vm8, %v2081_v22, %v2054_v23 }
 0x85e   : > { %v2068_v28 = vrot.slane %v2067_v24, 4  ;;  %v2086_v2 = vperm.slane %v2082_v51, %v4234_v1 }
 0x860   : > { %v2087_v31 = vrot.slane %v2086_v2, 4  ;;  %v2069_v32 = vsel %vm1149_vm8, %v2068_v28, %v2061_v27 }
 0x861   : > { %v2073_v33 = vperm.slane %v2069_v32, %v4238_v14 }
 0x862   : > { %v2088_v35 = vsel %vm1149_vm8, %v2087_v31, %v2080_v30 }
 0x863   : > { %v2092_v36 = vperm.slane %v2088_v35, %v4238_v14  ;;  %v2074_v37 = vrot.slane %v2073_v33, 4  ;;  %v2098_v38 = vshrl.u32 %v2073_v33, 16 }
 0x865   : > { %v2097_v41 = vpack.i.b16 %v2092_v36, %v2073_v33  ;;  %v2099_v54 = vshrl.u32 %v2092_v36, 16  ;;  %v2075_v52 = vsel %vm1149_vm8, 0, %v2074_v37  ;;  %v2093_v42 = vrot.slane %v2092_v36, 4 }
 0x866   : > { %v2104_v45 = vshrl.u32 %v2075_v52, 16 }
 0x867   : > { %3135 = vmatmul.msk.bf16.vlgmr.msrb.gmra.mxu0 %vm1493_vm9, %v2097_v41  ;;  %v2100_v43 = vpack.i.b16 %v2099_v54, %v2098_v38  ;;  %v2094_v53 = vsel %vm1149_vm8, 0, %v2093_v42 }
 0x868   : > { %v2103_v0 = vpack.i.b16 %v2094_v53, %v2075_v52  ;;  %v2105_v46 = vshrl.u32 %v2094_v53, 16 }
 0x869   : > { %3136 = vmatmul.msk.bf16.vlgmr.msrb.gmra.mxu1 %vm1493_vm9, %v2100_v43 }
 0x86a   : > { %3137 = vmatmul.msk.bf16.vlgmr.msrb.gmra.mxu2 %vm1493_vm9, %v2103_v0  ;;  %v2106_v47 = vpack.i.b16 %v2105_v46, %v2104_v45 }
 0x86c   : > { %3138 = vmatmul.msk.bf16.vlgmr.msrb.gmra.mxu3 %vm1493_vm9, %v2106_v47 }
 0x8e4   : > { %v2369_v49 = vpop.f32.mrf.mxu0 }
 0x8e5   : > { %v2370_v50 = vadd.f32 %v3366_v48, %v2369_v49 }
 0x8e6   : > { %v2388_v55 = vpop.f32.mrf.mxu1 }
 0x8e7   : > { %v2389_v56 = vadd.f32 %v3366_v48, %v2388_v55  ;;  %v2430_v57 = vsel %vm1493_vm9, %v2370_v50, -inf }
 0x8e8   : > { %2431 = vmax.xlane.f32.xlu1 %v2430_v57 }
 0x8e9   : > { %v2433_v58 = vsel %vm1493_vm9, %v2389_v56, -inf }
 0x8ea   : > { %2434 = vmax.xlane.f32.xlu0 %v2433_v58 }
 0x8ec   : > { %v2371_v59 = vpop.f32.mrf.mxu0 }
 0x8ed   : > { %v2407_v60 = vpop.f32.mrf.mxu2 }
 0x8ee   : > { %v2408_v61 = vadd.f32 %v3366_v48, %v2407_v60  ;;  %v2390_v62 = vpop.f32.mrf.mxu1 }
 0x8ef   : > { %v2426_v63 = vpop.f32.mrf.mxu3 }
 0x8f0   : > { %v2427_v3 = vadd.f32 %v3366_v48, %v2426_v63  ;;  %v2436_v9 = vsel %vm1493_vm9, %v2408_v61, -inf }
 0x8f2   : > { %v2439_v4 = vsel %vm1493_vm9, %v2427_v3, -inf }
 0x8f3   : > { %2440 = vmax.xlane.f32.xlu2 %v2439_v4 }
 0x8f5   : > { %v2409_v5 = vpop.f32.mrf.mxu2 }
 0x8f7   : > { %v2428_v7 = vpop.f32.mrf.mxu3 }
 0x901   : > { %2229 = vrot.lane.b32.xlu1 %v4443_v6, %s3897_s0 }
 0x909   : > { %2231 = vrot.lane.b32.xlu1 %v4452_v26, %s3897_s0 }
 0x90b   : > { %2233 = vrot.lane.b32.xlu2 %v4456_v29, %s3897_s0 }
 0x933   : > { %2437 = vmax.xlane.f32.xlu1 %v2436_v9 }
 0x94c   : > { %2235 = vrot.lane.b32.xlu1 %v4463_v34, %s3897_s0 }
 0x95b   : > { %v2432_v34 = vpop.xlane.xlu1 %2431 }
 0x95c   : > { %v2442_v21 = vsub.f32 %v2370_v50, %v2432_v34 }
 0x95d   : > { %v2435_v10 = vpop.xlane.xlu0 %2434 }
 0x95e   : > { %v2443_v11 = vsub.f32 %v2389_v56, %v2435_v10  ;;  %v2446_v22 = vmul.f32 1.442695, %v2442_v21 }
 0x960   : > { %v2448_v12 = vmul.f32 1.442695, %v2443_v11 }
 0x962   : > { %3398 = vpow2.f32 %v2448_v12 }
 0x966   : > { %v2441_v13 = vpop.xlane.xlu2 %2440 }
 0x967   : > { %v2445_v15 = vsub.f32 %v2427_v3, %v2441_v13 }
 0x968   : > { %v4552_v16 = vpop.eup %3398 }
 0x969   : > { %v2452_v6 = vmul.f32 1.442695, %v2445_v15  ;;  %v2457_v26 = vsel %vm1493_vm9, %v4552_v16, 0.0 }
 0x96a   : > { %2458 = vadd.xlane.f32.xlu2 %v2457_v26 }
 0x96b   : > { %3400 = vpow2.f32 %v2452_v6 }
 0x96e   : > { %v2234_v31 = vpop.permute.xlu2 %2233 }
 0x96f   : > { %v2246_v35 = vshrl.u32 %v2234_v31, 16 }
 0x971   : > { %v4556_v29 = vpop.eup %3400 }
 0x972   : > { %v2463_v17 = vsel %vm1493_vm9, %v4556_v29, 0.0 }
 0x973   : > { %v2230_v40 = vpop.permute.xlu1 %2229 }
 0x974   : > { %v2240_v27 = vshrl.u32 %v2230_v40, 16 }
 0x976   : > { %2464 = vadd.xlane.f32.xlu1 %v2463_v17 }
 0x97b   : > { %v2232_v18 = vpop.permute.xlu1 %2231 }
 0x97c   : > { %v2241_v51 = vshrl.u32 %v2232_v18, 16  ;;  %v2239_v28 = vpack.i.b16 %v2232_v18, %v2230_v40 }
 0x97e   : > { %v2242_v30 = vpack.i.b16 %v2241_v51, %v2240_v27  ;;  %v2253_v32 = vperm.slane %v2239_v28, %v4234_v1 }
 0x980   : > { %v2279_v36 = vperm.slane %v2242_v30, %v4234_v1  ;;  %v2261_v41 = vrot.slane %v2253_v32, 4 }
 0x982   : > { %v2287_v42 = vrot.slane %v2279_v36, 4 }
 0x9a6   : > { %v2438_v19 = vpop.xlane.xlu1 %2437 }
 0x9a7   : > { %v2444_v20 = vsub.f32 %v2408_v61, %v2438_v19 }
 0x9a9   : > { %v2450_v44 = vmul.f32 1.442695, %v2444_v20 }
 0x9ab   : > { %3402 = vpow2.f32 %v2450_v44 }
 0x9ac   : > { %3404 = vpow2.f32 %v2446_v22 }
 0x9b1   : > { %v4560_v23 = vpop.eup %3402 }
 0x9b2   : > { %v2460_v24 = vsel %vm1493_vm9, %v4560_v23, 0.0  ;;  %v4564_v25 = vpop.eup %3404 }
 0x9b3   : > { %2461 = vadd.xlane.f32.xlu0 %v2460_v24  ;;  %v2454_v2 = vsel %vm1493_vm9, %v4564_v25, 0.0 }
 0x9bb   : > { %2455 = vadd.xlane.f32.xlu0 %v2454_v2 }
 0x9be   : > { %v2236_v33 = vpop.permute.xlu1 %2235 }
 0x9bf   : > { %v2245_v37 = vpack.i.b16 %v2236_v33, %v2234_v31  ;;  %v2247_v38 = vshrl.u32 %v2236_v33, 16 }
 0x9c1   : > { %v2248_v54 = vpack.i.b16 %v2247_v38, %v2246_v35  ;;  %v2258_v52 = vperm.slane %v2245_v37, %v4234_v1 }
 0x9c3   : > { %v2259_v43 = vrot.slane %v2258_v52, 4  ;;  %v2262_v53 = vsel %vm1149_vm8, %v2258_v52, %v2261_v41  ;;  %v2284_v0 = vperm.slane %v2248_v54, %v4234_v1 }
 0x9c4   : > { %v2270_v45 = vperm.slane %v2262_v53, %v4238_v14 }
 0x9c5   : > { %v2260_v46 = vsel %vm1149_vm8, %v2259_v43, %v2253_v32  ;;  %v2285_v47 = vrot.slane %v2284_v0, 4  ;;  %v2288_v48 = vsel %vm1149_vm8, %v2284_v0, %v2287_v42 }
 0x9c6   : > { %v2266_v49 = vperm.slane %v2260_v46, %v4238_v14  ;;  %v2273_v50 = vrot.slane %v2270_v45, 4  ;;  %v2296_v55 = vperm.slane %v2288_v48, %v4238_v14 }
 0x9c7   : > { %v2286_v56 = vsel %vm1149_vm8, %v2285_v47, %v2279_v36 }
 0x9c8   : > { %v2271_v57 = vrot.slane %v2266_v49, 4  ;;  %v2274_v58 = vsel %vm1149_vm8, 0, %v2273_v50  ;;  %v2292_v59 = vperm.slane %v2286_v56, %v4238_v14  ;;  %v2299_v60 = vrot.slane %v2296_v55, 4 }
 0x9c9   : > { %v2306_v61 = vrot.slane %v2274_v58, 4  ;;  %v2301_v4 = vsel %vm1149_vm8, %v2273_v50, %v2266_v49 }
 0x9ca   : > { %v2272_v62 = vsel %vm1149_vm8, 0, %v2271_v57  ;;  %v2297_v63 = vrot.slane %v2292_v59, 4  ;;  %v2300_v3 = vsel %vm1149_vm8, 0, %v2299_v60  ;;  %v2320_v11 = vsel %vm1149_vm8, %v2299_v60, %v2292_v59 }
 0x9cb   : > { %v2307_v5 = vsel %vm1149_vm8, %v2306_v61, %v2272_v62  ;;  %v2325_v7 = vrot.slane %v2300_v3, 4  ;;  %v2305_v13 = vperm.slane %v2301_v4, %v4234_v1  ;;  %v2324_v17 = vperm.slane %v2320_v11, %v4234_v1 }
 0x9cc   : > { %v2298_v9 = vsel %vm1149_vm8, 0, %v2297_v63  ;;  %v2311_v10 = vperm.slane %v2307_v5, %v4234_v1 }
 0x9cd   : > { %v2326_v12 = vsel %vm1149_vm8, %v2325_v7, %v2298_v9 }
 0x9ce   : > { %v2312_v15 = vrot.slane %v2311_v10, 4  ;;  %v2330_v6 = vperm.slane %v2326_v12, %v4234_v1 }
 0x9d0   : > { %v2313_v26 = vsel %vm1149_vm8, %v2312_v15, %v2305_v13  ;;  %v2331_v34 = vrot.slane %v2330_v6, 4 }
 0x9d1   : > { %v2317_v40 = vperm.slane %v2313_v26, %v4238_v14 }
 0x9d2   : > { %v2332_v18 = vsel %vm1149_vm8, %v2331_v34, %v2324_v17 }
 0x9d3   : > { %v2336_v19 = vperm.slane %v2332_v18, %v4238_v14  ;;  %v2318_v20 = vrot.slane %v2317_v40, 4  ;;  %v2342_v21 = vshrl.u32 %v2317_v40, 16 }
 0x9d5   : > { %v2341_v44 = vpack.i.b16 %v2336_v19, %v2317_v40  ;;  %v2343_v22 = vshrl.u32 %v2336_v19, 16  ;;  %v2319_v24 = vsel %vm1149_vm8, 0, %v2318_v20  ;;  %v2337_v51 = vrot.slane %v2336_v19, 4 }
 0x9d6   : > { %v2348_v31 = vshrl.u32 %v2319_v24, 16 }
 0x9d7   : > { %v2482_v27 = vsel %vm1621_vm10, %v2341_v44, 0  ;;  %v2344_v28 = vpack.i.b16 %v2343_v22, %v2342_v21  ;;  %v2338_v2 = vsel %vm1149_vm8, 0, %v2337_v51 }
 0x9d8   : > { %2491 = vmatpush.bf16.msra.mxu0 %v2482_v27  ;;  %v2347_v30 = vpack.i.b16 %v2338_v2, %v2319_v24  ;;  %v2349_v32 = vshrl.u32 %v2338_v2, 16 }
 0x9d9   : > { %v2501_v33 = vsel %vm1621_vm10, %v2344_v28, 0 }
 0x9da   : > { %2510 = vmatpush.bf16.msra.mxu1 %v2501_v33  ;;  %v2520_v35 = vsel %vm1621_vm10, %v2347_v30, 0  ;;  %v2350_v36 = vpack.i.b16 %v2349_v32, %v2348_v31 }
 0x9db   : > { %2529 = vmatpush.bf16.msra.mxu2 %v2520_v35 }
 0x9dc   : > { %v2539_v37 = vsel %vm1621_vm10, %v2350_v36, 0  ;;  %vm2835_vm10 = vcmask 523264  }
 0x9dd   : > { %v2459_v38 = vpop.xlane.xlu2 %2458  ;;  %2548 = vmatpush.bf16.msra.mxu3 %v2539_v37 }
 0x9de   : > { %3406 = vrcp.f32 %v2459_v38 }
 0x9e4   : > { %v3407_v41 = vpop.eup %3406 }
 0x9e5   : > { %v2471_v54 = vmul.f32 %v3407_v41, %v4552_v16 }
 0x9e7   : > { %v2475_v52 = vpack.c.bf16 %v2471_v54, %v2471_v54 }
 0x9e9   : > { %3140 = vmatmul.msk.bf16.vlgmr.msra.gmra.mxu1 %vm1493_vm9, %v2475_v52  ;;  %v2465_v42 = vpop.xlane.xlu1 %2464 }
 0x9ea   : > { %3408 = vrcp.f32 %v2465_v42 }
 0x9f0   : > { %v3409_v43 = vpop.eup %3408 }
 0x9f1   : > { %v2473_v53 = vmul.f32 %v3409_v43, %v4556_v29 }
 0x9f3   : > { %v2477_v0 = vpack.c.bf16 %v2473_v53, %v2473_v53 }
 0x9f5   : > { %3142 = vmatmul.msk.bf16.vlgmr.msra.gmra.mxu3 %vm1493_vm9, %v2477_v0 }
 0xa26   : > { %v2462_v45 = vpop.xlane.xlu0 %2461 }
 0xa27   : > { %3410 = vrcp.f32 %v2462_v45 }
 0xa2d   : > { %v3411_v46 = vpop.eup %3410 }
 0xa2e   : > { %v2472_v47 = vmul.f32 %v3411_v46, %v4560_v23  ;;  %v2456_v48 = vpop.xlane.xlu0 %2455 }
 0xa2f   : > { %3412 = vrcp.f32 %v2456_v48 }
 0xa30   : > { %v2476_v49 = vpack.c.bf16 %v2472_v47, %v2472_v47 }
 0xa32   : > { %3141 = vmatmul.msk.bf16.vlgmr.msra.gmra.mxu2 %vm1493_vm9, %v2476_v49 }
 0xa35   : > { %v3413_v16 = vpop.eup %3412 }
 0xa36   : > { %v2470_v50 = vmul.f32 %v3413_v16, %v4564_v25 }
 0xa38   : > { %v2474_v55 = vpack.c.bf16 %v2470_v50, %v2470_v50 }
 0xa3a   : > { %3139 = vmatmul.msk.bf16.vlgmr.msra.gmra.mxu0 %vm1493_vm9, %v2474_v55 }
 0xa66   : > { %v2512_v29 = vpop.f32.mrf.mxu1 }
 0xa67   : > { %v2568_v57 = vrot.slane %v2512_v29, 4 }
 0xa6e   : > { %v2514_v56 = vpop.f32.mrf.mxu1 }
 0xa78   : > { %v2550_v58 = vpop.f32.mrf.mxu3 }
 0xa79   : > { %v2569_v59 = vsel %vm1149_vm8, %v2550_v58, %v2568_v57  ;;  %v2566_v61 = vrot.slane %v2550_v58, 4 }
 0xa7a   : > { %v2577_v4 = vperm.slane %v2569_v59, %v4234_v1 }
 0xa7b   : > { %v2567_v23 = vsel %vm1149_vm8, %v2566_v61, %v2512_v29 }
 0xa7c   : > { %v2573_v62 = vperm.slane %v2567_v23, %v4234_v1  ;;  %v2590_v12 = vrot.slane %v2577_v4, 4 }
 0xa7e   : > { %v2578_v9 = vrot.slane %v2573_v62, 4 }
 0xa80   : > { %v2552_v60 = vpop.f32.mrf.mxu3 }
 0xab5   : > { %v2531_v63 = vpop.f32.mrf.mxu2 }
 0xab6   : > { %v2554_v3 = vrot.slane %v2531_v63, 4 }
 0xab7   : > { %v2493_v25 = vpop.f32.mrf.mxu0 }
 0xab8   : > { %v2555_v5 = vsel %vm1149_vm8, %v2554_v3, %v2493_v25  ;;  %v2556_v7 = vrot.slane %v2493_v25, 4  ;;  %v3188_v3 = vld [vmem:[#allocation13] sm:$0xff] }
 0xab9   : > { %v2561_v10 = vperm.slane %v2555_v5, %v4234_v1 }
 0xaba   : > { %v2557_v11 = vsel %vm1149_vm8, %v2531_v63, %v2556_v7  ;;  %v3189_v63 = vld [vmem:[#allocation13 + $0x8] sm:$0xff] }
 0xabb   : > { %v2565_v13 = vperm.slane %v2557_v11, %v4234_v1  ;;  %v2579_v15 = vsel %vm1149_vm8, %v2578_v9, %v2561_v10  ;;  %v2580_v6 = vrot.slane %v2561_v10, 4  ;;  %2704 = vmatpush.bf16.msrb.mxu0 %v3189_v63  ;;  %v3367_v11 = vld [vmem:[#allocation15] ss:$0 sm:$0xff] }
 0xabc   : > { %v2585_v26 = vperm.slane %v2579_v15, %v4238_v14 }
 0xabd   : > { %v2581_v17 = vsel %vm1149_vm8, %v2573_v62, %v2580_v6  ;;  %v2591_v34 = vsel %vm1149_vm8, %v2590_v12, %v2565_v13  ;;  %v2592_v40 = vrot.slane %v2565_v13, 4  ;;  %v2533_v18 = vpop.f32.mrf.mxu2 }
 0xabe   : > { %v2589_v19 = vperm.slane %v2581_v17, %v4238_v14  ;;  %v2597_v20 = vperm.slane %v2591_v34, %v4238_v14  ;;  %v2602_v24 = vrot.slane %v2585_v26, 4 }
 0xabf   : > { %v2593_v21 = vsel %vm1149_vm8, %v2577_v4, %v2592_v40  ;;  %v2495_v44 = vpop.f32.mrf.mxu0  ;;  %2705 = vmatpush.bf16.msrb.mxu0 %v3188_v3 }
 0xac0   : > { %v2601_v22 = vperm.slane %v2593_v21, %v4238_v14  ;;  %v2604_v51 = vrot.slane %v2589_v19, 4  ;;  %v2606_v28 = vrot.slane %v2597_v20, 4  ;;  %v2603_v33 = vsel %vm1149_vm8, 0.0, %v2602_v24  ;;  %v3190_v21 = vld [vmem:[#allocation19] sm:$0xff] }
 0xac2   : > { %v2605_v27 = vsel %vm1149_vm8, 0.0, %v2604_v51  ;;  %v2608_v2 = vrot.slane %v2601_v22, 4  ;;  %v2610_v30 = vsel %vm1149_vm8, %v2604_v51, %v2585_v26  ;;  %v2607_v52 = vsel %vm1149_vm8, 0.0, %v2606_v28 }
 0xac3   : > { %v2614_v31 = vperm.slane %v2610_v30, %v4234_v1  ;;  %v2615_v32 = vrot.slane %v2605_v27, 4  ;;  %v3194_v30 = vld [vmem:[%s4710_s22 + $0x10] sm:$0xff] }
 0xac4   : > { %v2609_v35 = vsel %vm1149_vm8, 0.0, %v2608_v2  ;;  %v2621_v36 = vsel %vm1149_vm8, %v2608_v2, %v2597_v20  ;;  %v3191_v20 = vld [vmem:[#allocation19 + $0x8] sm:$0xff] }
 0xac5   : > { %v2616_v37 = vsel %vm1149_vm8, %v2615_v32, %v2603_v33  ;;  %v2625_v38 = vperm.slane %v2621_v36, %v4234_v1  ;;  %v2626_v41 = vrot.slane %v2609_v35, 4  ;;  %v2634_v54 = vrot.slane %v2614_v31, 4  ;;  %2790 = vmatpush.bf16.msrb.mxu1 %v3191_v20 }
 0xac6   : > { %v2620_v42 = vperm.slane %v2616_v37, %v4234_v1 }
 0xac7   : > { %v2627_v43 = vsel %vm1149_vm8, %v2626_v41, %v2607_v52  ;;  %v2646_v53 = vrot.slane %v2625_v38, 4  ;;  %v3368_v52 = vld [vmem:[#allocation16] ss:$0 sm:$0xff] }
 0xac8   : > { %v2631_v0 = vperm.slane %v2627_v43, %v4234_v1  ;;  %v2635_v45 = vsel %vm1149_vm8, %v2620_v42, %v2634_v54  ;;  %v2632_v46 = vrot.slane %v2620_v42, 4 }
 0xac9   : > { %v2643_v47 = vperm.slane %v2635_v45, %v4238_v14  ;;  %2791 = vmatpush.bf16.msrb.mxu1 %v3190_v21 }
 0xaca   : > { %v2647_v48 = vsel %vm1149_vm8, %v2631_v0, %v2646_v53  ;;  %v2633_v49 = vsel %vm1149_vm8, %v2632_v46, %v2614_v31  ;;  %v2644_v16 = vrot.slane %v2631_v0, 4 }
 0xacb   : > { %v2655_v50 = vperm.slane %v2647_v48, %v4238_v14  ;;  %v2662_v55 = vrot.slane %v2643_v47, 4  ;;  %v2639_v29 = vperm.slane %v2633_v49, %v4238_v14 }
 0xacc   : > { %v2645_v56 = vsel %vm1149_vm8, %v2644_v16, %v2625_v38 }
 0xacd   : > { %v2663_v57 = vsel %vm1149_vm8, %v2655_v50, %v2662_v55  ;;  %v2651_v1 = vperm.slane %v2645_v56, %v4238_v14  ;;  %v2658_v58 = vrot.slane %v2639_v29, 4  ;;  %v2660_v59 = vrot.slane %v2655_v50, 4  ;;  %v3193_v55 = vld [vmem:[%s4710_s22 + $0x8] sm:$0xff]  ;;  %v3370_v56 = vld [vmem:[#allocation21] ss:$0 sm:$0xff] }
 0xace   : > { %2673 = vrot.lane.b32.xlu1 %v2663_v57, %s3903_s30 }
 0xacf   : > { %v2656_v60 = vrot.slane %v2651_v1, 4  ;;  %v2659_v61 = vsel %vm1149_vm8, %v2651_v1, %v2658_v58  ;;  %v2661_v23 = vsel %vm1149_vm8, %v2660_v59, %v2643_v47  ;;  %v3369_v47 = vld [vmem:[#allocation18] ss:$0 sm:$0xff] }
 0xad0   : > { %2665 = vrot.lane.b32.xlu0 %v2659_v61, %s3904_s12  ;;  %v3371_v61 = vld [vmem:[#allocation22] ss:$0 sm:$0xff] }
 0xad1   : > { %v2657_v62 = vsel %vm1149_vm8, %v2656_v60, %v2639_v29  ;;  %v3192_v29 = vld [vmem:[%s4710_s22] sm:$0xff] }
 0xad8   : > { %2669 = vrot.lane.b32.xlu0 %v2661_v23, %s3902_s29 }
 0xb40   : > { %v2674_v5 = vpop.permute.xlu1 %2673 }
 0xb42   : > { %v2666_v14 = vpop.permute.xlu0 %2665 }
 0xb43   : > { %v2676_v4 = vsel %vm1493_vm9, %v2657_v62, %v2666_v14 }
 0xb4a   : > { %v2670_v25 = vpop.permute.xlu0 %2669 }
 0xb4b   : > { %v2677_v7 = vsel %vm1819_vm11, %v2676_v4, %v2670_v25 }
 0xb4c   : > { %v2678_v9 = vsel %vm1821_vm12, %v2677_v7, %v2674_v5 }
 0xb4d   : > { %v2679_v10 = vpack.c.bf16 %v2678_v9, %v2678_v9 }
 0xb4f   : > { %3151 = vmatmul.msk.bf16.vlgmr.msrb.gmra.mxu0 %vm1020_vm0, %v2679_v10 }
 0xbcc   : > { %v2707_v12 = vpop.f32.mrf.mxu0 }
 0xbcd   : > { %v2708_v13 = vadd.f32 %v3367_v11, %v2707_v12 }
 0xbcf   : > { %v4658_v15 = vadd.f32 %v2708_v13, %v4431_v39 }
 0xbd1   : > { %v2714_v6 = vsel %vm1020_vm0, %v4658_v15, 0.0 }
 0xbd2   : > { %2715 = vadd.xlane.f32.xlu0 %v2714_v6 }
 0xbd4   : > { %v2709_v26 = vpop.f32.mrf.mxu0 }
 0xc45   : > { %v2716_v17 = vpop.xlane.xlu0 %2715 }
 0xc46   : > { %v2717_v34 = vmul.f32 %v2716_v17, %v4193_v8  ;;  %v3195_v8 = vld [vmem:[%s4710_s22 + $0x18] sm:$0xff] }
 0xc47   : > { %2843 = vmatpush.bf16.msrb.mxu2 %v3195_v8 }
 0xc48   : > { %v2718_v40 = vsub.f32 %v4658_v15, %v2717_v34 }
 0xc4a   : > { %v2719_v18 = vmul.f32 %v2718_v40, %v2718_v40  ;;  %v2727_v45 = vmul.f32 %v3368_v52, %v2718_v40 }
 0xc4b   : > { %2844 = vmatpush.bf16.msrb.mxu2 %v3194_v30 }
 0xc4c   : > { %v2720_v19 = vsel %vm1020_vm0, %v2719_v18, 0.0 }
 0xc4d   : > { %2721 = vadd.xlane.f32.xlu2 %v2720_v19 }
 0xc4f   : > { %2845 = vmatpush.bf16.msrb.mxu2 %v3193_v55 }
 0xc53   : > { %2846 = vmatpush.bf16.msrb.mxu2 %v3192_v29 }
 0xcc0   : > { %v2722_v44 = vpop.xlane.xlu2 %2721 }
 0xcc1   : > { %v2723_v39 = vmul.f32 0.032258064, %v2722_v44 }
 0xcc3   : > { %3414 = vrsqrt.f32 %v2723_v39  ;;  %vm2735_vm4 = vcmp.eq.f32.partialorder %v2723_v39, inf  ;;  %v2738_v32 = vand.u32 2147483648, %v2723_v39  ;;  %vm2737_vm5 = vcmp.eq.f32.partialorder %v2723_v39, 0.0 }
 0xcc9   : > { %v3415_v22 = vpop.eup %3414 }
 0xcca   : > { %v2729_v24 = vmul.f32 %v3415_v22, %v2723_v39 }
 0xccc   : > { %v2730_v51 = vmul.f32 %v3415_v22, %v2729_v24 }
 0xcce   : > { %v2731_v27 = vmul.f32 0.5, %v2730_v51 }
 0xcd0   : > { %v2732_v28 = vsub.f32 1.5, %v2731_v27 }
 0xcd2   : > { %v2733_v2 = vmul.f32 %v3415_v22, %v2732_v28 }
 0xcd4   : > { %v2734_v31 = vmul.f32 %v2733_v2, %v2723_v39 }
 0xcd6   : > { %v2736_v33 = vsel %vm2735_vm4, %v2723_v39, %v2734_v31 }
 0xcd7   : > { %v2739_v35 = vsel %vm2737_vm5, %v2738_v32, %v2736_v33 }
 0xcd8   : > { %v2740_v36 = vadd.f32 1e-06, %v2739_v35 }
 0xcda   : > { %3416 = vrcp.f32 %v2740_v36  ;;  %v2752_v54 = vand.u32 2147483648, %v2740_v36  ;;  %v2750_v43 = vand.u32 2147483647, %v2740_v36  ;;  %vm2746_vm7 = vweird.f32 %v2740_v36 }
 0xcdc   : > { %v2753_v0 = vor.u32 1.1754944e-38, %v2752_v54  ;;  %vm2751_vm9 = vcmp.eq.f32.partialorder %v2750_v43, 8.507059e+37 }
 0xce0   : > { %v3417_v37 = vpop.eup %3416 }
 0xce1   : > { %v2742_v38 = vmul.f32 %v3417_v37, %v2740_v36  ;;  %vm2747_vm6 = vweird.f32 %v3417_v37 }
 0xce2   : > { %vm2748_vm8 = vmor %vm2746_vm7, %vm2747_vm6 }
 0xce3   : > { %v2743_v41 = vsub.f32 1.0, %v2742_v38 }
 0xce5   : > { %v2744_v42 = vmul.f32 %v3417_v37, %v2743_v41 }
 0xce7   : > { %v2745_v53 = vadd.f32 %v3417_v37, %v2744_v42 }
 0xce9   : > { %v2749_v46 = vsel %vm2748_vm8, %v3417_v37, %v2745_v53 }
 0xcea   : > { %v2754_v48 = vsel %vm2751_vm9, %v2753_v0, %v2749_v46 }
 0xceb   : > { %v2755_v49 = vmul.f32 %v2754_v48, %v2727_v45 }
 0xced   : > { %v2759_v16 = vadd.f32 %v3369_v47, %v2755_v49 }
 0xcef   : > { %v2760_v50 = vpack.c.bf16 %v2759_v16, %v2759_v16 }
 0xcf1   : > { %3160 = vmatmul.msk.bf16.vlgmr.msrb.gmra.mxu1 %vm1020_vm0, %v2760_v50 }
 0xd6e   : > { %v2793_v57 = vpop.f32.mrf.mxu1 }
 0xd6f   : > { %v2794_v1 = vadd.f32 %v3370_v56, %v2793_v57 }
 0xd71   : > { %v2797_v58 = vmax.f32 %v2794_v1, 0.0 }
 0xd73   : > { %v2798_v59 = vpack.c.bf16 %v2797_v58, %v2797_v58 }
 0xd75   : > { %3177 = vmatmul.msk.bf16.vlgmr.msrb.gmra.mxu2 %vm2835_vm10, %v2798_v59 }
 0xd76   : > { %v2795_v60 = vpop.f32.mrf.mxu1 }
 0xdf8   : > { %v2848_v23 = vpop.f32.mrf.mxu2 }
 0xdf9   : > { %v2849_v62 = vadd.f32 %v3371_v61, %v2848_v23 }
 0xdfb   : > { %v2852_v63 = vadd.f32 %v2849_v62, %v4658_v15 }
 0xdfd   : > { %2853 = vst.msk [vmem:[%s1015_s24] sm:$0xff] %vm1020_vm0, %v2852_v63 }
 0xe00   : > { %v2850_v3 = vpop.f32.mrf.mxu2 }
 0xe01 PF: > { %s44_s27 = sadd.s32 1, %s3876_s27  }
 0xe02   : > { %p41_p7 = scmp.ge.s32.totalorder %s44_s27, 4  }
 0xe04   :  { %43 = sbr.rel (!%p41_p7) target bundleno = 23 (0x17), region = 214 }
 0xe09   :  { %2873 = vsyncpa [#allocation3], 1 }
 0xe0a   :  { %2875 = vsyncpa [#allocation3 + $0x1], 1 }
 0xe0b   :  { %2876 = vsyncpa [#allocation5], 1 }
 0xe0c   :  { %2877 = vsyncpa [#allocation8], 1 }
 0xe0d   :  { %2878 = vsyncpa [#allocation11], 1 }
 0xe0e   :  { %2879 = vsyncpa [#allocation14], 1 }
 0xe0f   :  { %2880 = vsyncpa [#allocation17], 1 }
 0xe10   :  { %2881 = vsyncpa [#allocation20], 1 }
 0xe11   :  { %2882 = vsyncpa [#allocation23], 1 }

</bundles_post_ra>
